<compile_context>
chip_gen: v7x
topology: tpu7x:2x2x1
jax: 0.10.0
libtpu: 0.0.40
codegen_flags: <defaults>
</compile_context>

<pallas_src>
import jax
import jax.numpy as jnp
from jax.experimental import pallas as pl
from jax.experimental.pallas import tpu as pltpu

IN_EPS = 1e-5


def _round_up(x, m):
    return ((x + m - 1) // m) * m


# ----------------------------- Pallas kernel ---------------------------------
def _make_skconv_kernel(*, M, G, C, H, W, padf, pad_max, HW_pad):
    HW = H * W
    Cg = C // G
    inv_hw = 1.0 / HW
    p_list = [1 + i for i in range(M)]          # per-branch padding
    k_list = [3 + 2 * i for i in range(M)]      # per-branch kernel size

    def kernel(*refs):
        x_ref = refs[0]                                   # (1, C, hwp_pad) f32, lane-padded
        cmask_ref = refs[1]                               # (2*pad_max+1, 1, HW) bf16 border masks
        w_refs = refs[2:2 + M]                            # branch i: (C, k_i^2*Cg) bf16
        (wfc_ref, bfc_ref, wfcs_ref, bfcs_ref,
         gamma_ref, beta_ref) = refs[2 + M:8 + M]
        out_ref = refs[8 + M]                             # (1, C, HW_pad)

        # hoist weight / mask loads out of the tap loop
        w_vals = [w_refs[i][...] for i in range(M)]       # (C, kk_i*Cg) bf16
        cm = cmask_ref[...]                               # (2*pad_max+1, 1, HW) bf16

        # per-branch, per-group f32 accumulators (no im2col scratch)
        accs = [[jnp.zeros((Cg, HW), jnp.float32) for _ in range(G)]
                for _ in range(M)]

        # --- conv phase: tap-outer loop over the LARGEST kernel footprint.
        # Each distinct (dh, dw) window is sliced, cast to bf16 and masked
        # exactly once, then reused by every branch/group that covers it. ---
        for dh in range(-pad_max, pad_max + 1):
            for dw in range(-pad_max, pad_max + 1):
                start = padf + dh * W + dw
                win = x_ref[0, :, start:start + HW].astype(jnp.bfloat16)   # (C, HW)
                if dw != 0:
                    # zero the columns that wrapped across the image W border
                    win = win * cm[dw + pad_max]                           # (1, HW) bf16
                for i in range(M):
                    p, k = p_list[i], k_list[i]
                    if abs(dh) > p or abs(dw) > p:
                        continue
                    t = (dh + p) * k + (dw + p)
                    for g in range(G):
                        wgt = w_vals[i][g * Cg:(g + 1) * Cg,
                                        t * Cg:(t + 1) * Cg]               # (Cg, Cg) bf16
                        wing = win[g * Cg:(g + 1) * Cg, :]                 # (Cg, HW) bf16
                        accs[i][g] = accs[i][g] + jnp.dot(
                            wgt, wing, preferred_element_type=jnp.float32)

        feas_f32 = [jnp.concatenate(accs[i], axis=0) for i in range(M)]    # (C, HW) f32

        # --- global average pool over spatial (f32) ---
        fea_U = feas_f32[0]
        for i in range(1, M):
            fea_U = fea_U + feas_f32[i]
        fea_s = jnp.sum(fea_U, axis=1, keepdims=True) * inv_hw             # (C, 1)

        # hold branch outputs in bf16 across the attention phase (VMEM win)
        feas = [f.astype(jnp.bfloat16) for f in feas_f32]

        # --- squeeze fc: z = W_fc @ s + b ---
        z = jnp.dot(wfc_ref[...], fea_s,
                    preferred_element_type=jnp.float32) + bfc_ref[...]     # (d, 1)

        # --- per-branch attention logits + softmax over branches (torch dim=1) ---
        logits = [jnp.dot(wfcs_ref[i], z,
                          preferred_element_type=jnp.float32) + bfcs_ref[i]
                  for i in range(M)]                                       # (C, 1) each
        mmax = logits[0]
        for i in range(1, M):
            mmax = jnp.maximum(mmax, logits[i])
        exps = [jnp.exp(l - mmax) for l in logits]
        denom = exps[0]
        for i in range(1, M):
            denom = denom + exps[i]
        inv_denom = pl.reciprocal(denom, approx=True)

        # --- attention-weighted fusion (bf16 feas * f32 attention -> f32) ---
        fea_v = (exps[0] * inv_denom) * feas[0]
        for i in range(1, M):
            fea_v = fea_v + (exps[i] * inv_denom) * feas[i]                # (C, HW) f32

        # --- InstanceNorm2d (affine, biased variance), two-pass centered stats ---
        mu = jnp.sum(fea_v, axis=1, keepdims=True) * inv_hw
        cent = fea_v - mu
        var = jnp.sum(cent * cent, axis=1, keepdims=True) * inv_hw
        out = cent * jax.lax.rsqrt(var + IN_EPS)
        out = out * gamma_ref[...] + beta_ref[...]

        # lane-dense store: pad the last dim to the 128-multiple block width
        if HW_pad > HW:
            out = jnp.concatenate(
                [out, jnp.zeros((C, HW_pad - HW), out.dtype)], axis=1)
        out_ref[0] = out.astype(out_ref.dtype)

    return kernel


# ------------------------------ JAX glue --------------------------------------
def _reorder_grouped_weight(w, G):
    # (C_out, C_in/G, k, k) grouped conv weight -> (C, k*k*Cg) bf16,
    # columns tap-major (kh, kw, c_in) to match the in-kernel window layout.
    C = w.shape[0]
    Cg = C // G
    k = w.shape[-1]
    blocks = []
    for g in range(G):
        wg = w[g * Cg:(g + 1) * Cg]                  # (Cg, Cg, k, k)
        wg = jnp.transpose(wg, (0, 2, 3, 1))         # (Cg, k, k, Cg)
        blocks.append(wg.reshape(Cg, k * k * Cg))
    return jnp.concatenate(blocks, axis=0).astype(jnp.bfloat16)


def skconv_forward(x, params, *, M, G):
    N, C, H, W = x.shape
    HW = H * W
    d = params["wfc"].shape[0]
    # NOTE: Cg = C // G should be a multiple of 16 for clean bf16 sublane tiling
    # (true for the sizes used here).

    pad_max = 1 + (M - 1)                   # padding of the largest branch kernel
    padf = pad_max * (W + 1)                # flat-lane padding needed for any tap shift
    hwp = HW + 2 * padf
    hwp_pad = _round_up(hwp, 128)           # round lane dim up to a 128 multiple
    HW_pad = _round_up(HW, 128)             # lane-dense output width

    # raw input, flattened spatially and zero-padded along the lane axis
    x_flat = x.reshape(N, C, HW)
    x_pad = jnp.zeros((N, C, hwp_pad), x.dtype).at[:, :, padf:padf + HW].set(x_flat)

    # precomputed horizontal-border masks (0/1), one per column offset dw, bf16
    col = jnp.arange(HW, dtype=jnp.int32) % W
    cmask = jnp.stack(
        [((col + dw >= 0) & (col + dw < W)) for dw in range(-pad_max, pad_max + 1)],
        axis=0).astype(jnp.bfloat16).reshape(2 * pad_max + 1, 1, HW)

    w_list = [_reorder_grouped_weight(params["conv_w"][i], G) for i in range(M)]

    wfc = params["wfc"]                                   # (d, C)
    bfc = params["bfc"].reshape(d, 1)                     # (d, 1)
    wfcs = jnp.stack(params["wfcs"], axis=0)              # (M, C, d)
    bfcs = jnp.stack(params["bfcs"], axis=0).reshape(M, C, 1)
    gamma = params["gamma"].reshape(C, 1)
    beta = params["beta"].reshape(C, 1)

    in_specs = [
        pl.BlockSpec((1, C, hwp_pad), lambda n: (n, 0, 0)),
        pl.BlockSpec(cmask.shape, lambda n: (0, 0, 0)),
    ]
    for w in w_list:
        in_specs.append(pl.BlockSpec(w.shape, lambda n: (0, 0)))
    in_specs += [
        pl.BlockSpec(wfc.shape, lambda n: (0, 0)),
        pl.BlockSpec(bfc.shape, lambda n: (0, 0)),
        pl.BlockSpec(wfcs.shape, lambda n: (0, 0, 0)),
        pl.BlockSpec(bfcs.shape, lambda n: (0, 0, 0)),
        pl.BlockSpec(gamma.shape, lambda n: (0, 0)),
        pl.BlockSpec(beta.shape, lambda n: (0, 0)),
    ]

    # size scoped VMEM to the actual working set (with headroom), clamped
    vmem_est = (
        2 * C * hwp_pad * 4                               # double-buffered input block
        + 2 * C * HW_pad * 4                              # double-buffered output block
        + 2 * sum(int(w.size) * 2 for w in w_list)        # bf16 weights
        + (2 * M + 2) * C * HW * 4                        # feas (f32 + bf16) + fea_U/fea_v
        + 4 * 1024 * 1024                                 # pipeline / spill headroom
    )
    vmem_limit = int(min(max(vmem_est, 32 * 1024 * 1024), 60 * 1024 * 1024))

    out = pl.pallas_call(
        _make_skconv_kernel(M=M, G=G, C=C, H=H, W=W,
                            padf=padf, pad_max=pad_max, HW_pad=HW_pad),
        out_shape=jax.ShapeDtypeStruct((N, C, HW_pad), x.dtype),
        grid_spec=pltpu.PrefetchScalarGridSpec(
            num_scalar_prefetch=0,
            grid=(N,),
            in_specs=in_specs,
            out_specs=pl.BlockSpec((1, C, HW_pad), lambda n: (n, 0, 0)),
        ),
        compiler_params=pltpu.CompilerParams(
            dimension_semantics=("parallel",),
            vmem_limit_bytes=vmem_limit),
    )(x_pad, cmask, *w_list, wfc, bfc, wfcs, bfcs, gamma, beta)

    return out[:, :, :HW].reshape(N, C, H, W)


# ------------------------- deterministic parameters ----------------------------
def init_params(key, C, d, M, G):
    keys = jax.random.split(key, 3 * M + 2)
    conv_w = []
    for i in range(M):
        k = 3 + 2 * i
        # NOTE: the PyTorch module zero-fills conv weights; we use small random
        # deterministic values so the kernel computes something non-trivial.
        conv_w.append(0.05 * jax.random.normal(keys[i], (C, C // G, k, k), jnp.float32))
    wfc = 0.1 * jax.random.normal(keys[M], (d, C), jnp.float32)
    bfc = 0.1 * jax.random.normal(keys[M + 1], (d,), jnp.float32)
    wfcs, bfcs = [], []
    for i in range(M):
        wfcs.append(0.1 * jax.random.normal(keys[M + 2 + i], (C, d), jnp.float32))
        bfcs.append(0.1 * jax.random.normal(keys[2 * M + 2 + i], (C,), jnp.float32))
    gamma = jnp.ones((C,), jnp.float32)   # InstanceNorm2d affine default init
    beta = jnp.zeros((C,), jnp.float32)
    return dict(conv_w=conv_w, wfc=wfc, bfc=bfc, wfcs=wfcs, bfcs=bfcs,
                gamma=gamma, beta=beta)


# ----------------------------- pure-JAX reference ------------------------------
def ref_forward(x, params, *, G):
    M = len(params["conv_w"])
    feas = []
    for i in range(M):
        w = params["conv_w"][i]
        k = w.shape[-1]
        pad = (k - 1) // 2
        y = jax.lax.conv_general_dilated(
            x, w, window_strides=(1, 1), padding=[(pad, pad), (pad, pad)],
            feature_group_count=G, dimension_numbers=("NCHW", "OIHW", "NCHW"))
        feas.append(y)
    feas = jnp.stack(feas, axis=1)                                 # (N, M, C, H, W)
    fea_U = feas.sum(axis=1)
    fea_s = fea_U.mean(axis=(-1, -2))                              # (N, C)
    z = fea_s @ params["wfc"].T + params["bfc"]                    # (N, d)
    vecs = jnp.stack([z @ w.T + b for w, b in zip(params["wfcs"], params["bfcs"])],
                     axis=1)                                       # (N, M, C)
    att = jax.nn.softmax(vecs, axis=1)
    fea_v = (feas * att[..., None, None]).sum(axis=1)              # (N, C, H, W)
    mu = fea_v.mean(axis=(-1, -2), keepdims=True)
    var = fea_v.var(axis=(-1, -2), keepdims=True)
    out = (fea_v - mu) / jnp.sqrt(var + IN_EPS)
    return out * params["gamma"][None, :, None, None] + params["beta"][None, :, None, None]


# ----------------------------------- main ---------------------------------------
if __name__ == "__main__":
    N, C, H, W = 2, 32, 16, 16          # batch, features, spatial (WH=16)
    M, G, r, L = 2, 2, 2, 32            # branches, conv groups, ratio, min dim
    d = max(int(C / r), L)

    key = jax.random.PRNGKey(0)
    kx, kp = jax.random.split(key)
    x = jax.random.normal(kx, (N, C, H, W), jnp.float32)
    params = init_params(kp, C, d, M, G)

    out = skconv_forward(x, params, M=M, G=G)
    out = jax.block_until_ready(out)

    ref = ref_forward(x, params, G=G)
    err = float(jnp.max(jnp.abs(out - ref)))
    assert out.shape == (N, C, H, W)
    assert err < 5e-2, f"max abs err too large: {err}"
    print("KERNEL_OK")
</pallas_src>

<mosaic_0001>
module attributes {stable_mosaic.version = 11 : i64} {
  func.func @kernel(%arg0: i32, %arg1: memref<1x32x384xf32, #tpu.memory_space<vmem>>, %arg2: memref<5x1x256xbf16, #tpu.memory_space<vmem>>, %arg3: memref<32x144xbf16, #tpu.memory_space<vmem>>, %arg4: memref<32x400xbf16, #tpu.memory_space<vmem>>, %arg5: memref<32x32xf32, #tpu.memory_space<vmem>>, %arg6: memref<32x1xf32, #tpu.memory_space<vmem>>, %arg7: memref<2x32x32xf32, #tpu.memory_space<vmem>>, %arg8: memref<2x32x1xf32, #tpu.memory_space<vmem>>, %arg9: memref<32x1xf32, #tpu.memory_space<vmem>>, %arg10: memref<32x1xf32, #tpu.memory_space<vmem>>, %arg11: memref<1x32x256xf32, #tpu.memory_space<vmem>>) attributes {dimension_semantics = [#tpu.dimension_semantics<parallel>], iteration_bounds = array<i64: 2>, scalar_prefetch = 0 : i64, scratch_operands = 0 : i64, tpu.core_type = #tpu.core_type<tc>, window_params = [{transform_indices = @transform_0, window_bounds = array<i64: 1, 32, 384>}, {pipeline_mode = #tpu.pipeline_mode<synchronous>, transform_indices = @transform_1, window_bounds = array<i64: 5, 1, 256>}, {pipeline_mode = #tpu.pipeline_mode<synchronous>, transform_indices = @transform_2, window_bounds = array<i64: 32, 144>}, {pipeline_mode = #tpu.pipeline_mode<synchronous>, transform_indices = @transform_3, window_bounds = array<i64: 32, 400>}, {pipeline_mode = #tpu.pipeline_mode<synchronous>, transform_indices = @transform_4, window_bounds = array<i64: 32, 32>}, {pipeline_mode = #tpu.pipeline_mode<synchronous>, transform_indices = @transform_5, window_bounds = array<i64: 32, 1>}, {pipeline_mode = #tpu.pipeline_mode<synchronous>, transform_indices = @transform_6, window_bounds = array<i64: 2, 32, 32>}, {pipeline_mode = #tpu.pipeline_mode<synchronous>, transform_indices = @transform_7, window_bounds = array<i64: 2, 32, 1>}, {pipeline_mode = #tpu.pipeline_mode<synchronous>, transform_indices = @transform_8, window_bounds = array<i64: 32, 1>}, {pipeline_mode = #tpu.pipeline_mode<synchronous>, transform_indices = @transform_9, window_bounds = array<i64: 32, 1>}, {transform_indices = @transform_10, window_bounds = array<i64: 1, 32, 256>}]} {
    %c0 = arith.constant 0 : index
    %c0_0 = arith.constant 0 : index
    %0 = vector.load %arg3[%c0, %c0_0] : memref<32x144xbf16, #tpu.memory_space<vmem>>, vector<32x144xbf16>
    %c0_1 = arith.constant 0 : index
    %c0_2 = arith.constant 0 : index
    %1 = vector.load %arg4[%c0_1, %c0_2] : memref<32x400xbf16, #tpu.memory_space<vmem>>, vector<32x400xbf16>
    %c0_3 = arith.constant 0 : index
    %c0_4 = arith.constant 0 : index
    %c0_5 = arith.constant 0 : index
    %2 = vector.load %arg2[%c0_3, %c0_4, %c0_5] : memref<5x1x256xbf16, #tpu.memory_space<vmem>>, vector<5x1x256xbf16>
    %cst = arith.constant 0.000000e+00 : f32
    %3 = vector.broadcast %cst : f32 to vector<16x256xf32>
    %cst_6 = arith.constant 0.000000e+00 : f32
    %4 = vector.broadcast %cst_6 : f32 to vector<16x256xf32>
    %cst_7 = arith.constant 0.000000e+00 : f32
    %5 = vector.broadcast %cst_7 : f32 to vector<16x256xf32>
    %cst_8 = arith.constant 0.000000e+00 : f32
    %6 = vector.broadcast %cst_8 : f32 to vector<16x256xf32>
    %c0_9 = arith.constant 0 : index
    %c0_10 = arith.constant 0 : index
    %c0_11 = arith.constant 0 : index
    %7 = vector.load %arg1[%c0_9, %c0_10, %c0_11] : memref<1x32x384xf32, #tpu.memory_space<vmem>>, vector<1x32x256xf32>
    %8 = vector.shape_cast %7 : vector<1x32x256xf32> to vector<32x256xf32>
    %9 = arith.truncf %8 : vector<32x256xf32> to vector<32x256xbf16>
    %10 = vector.extract_strided_slice %2 {offsets = [0, 0, 0], sizes = [1, 1, 256], strides = [1, 1, 1]} : vector<5x1x256xbf16> to vector<1x1x256xbf16>
    %11 = vector.shape_cast %10 : vector<1x1x256xbf16> to vector<1x256xbf16>
    %12 = vector.broadcast %11 : vector<1x256xbf16> to vector<32x256xbf16>
    %13 = arith.mulf %9, %12 : vector<32x256xbf16>
    %14 = vector.extract_strided_slice %1 {offsets = [0, 0], sizes = [16, 16], strides = [1, 1]} : vector<32x400xbf16> to vector<16x16xbf16>
    %15 = vector.extract_strided_slice %13 {offsets = [0, 0], sizes = [16, 256], strides = [1, 1]} : vector<32x256xbf16> to vector<16x256xbf16>
    %cst_12 = arith.constant dense<0.000000e+00> : vector<16x256xf32>
    %16 = tpu.matmul %14, %15, %cst_12 {dimension_numbers = #tpu.dot_dimension_numbers<[1], [0], [0], [1], [0, 0, 1, 1], [], []>} : vector<16x16xbf16>, vector<16x256xbf16>, vector<16x256xf32> -> vector<16x256xf32>
    %17 = arith.addf %5, %16 : vector<16x256xf32>
    %18 = vector.extract_strided_slice %1 {offsets = [16, 0], sizes = [16, 16], strides = [1, 1]} : vector<32x400xbf16> to vector<16x16xbf16>
    %19 = vector.extract_strided_slice %13 {offsets = [16, 0], sizes = [16, 256], strides = [1, 1]} : vector<32x256xbf16> to vector<16x256xbf16>
    %cst_13 = arith.constant dense<0.000000e+00> : vector<16x256xf32>
    %20 = tpu.matmul %18, %19, %cst_13 {dimension_numbers = #tpu.dot_dimension_numbers<[1], [0], [0], [1], [0, 0, 1, 1], [], []>} : vector<16x16xbf16>, vector<16x256xbf16>, vector<16x256xf32> -> vector<16x256xf32>
    %21 = arith.addf %6, %20 : vector<16x256xf32>
    %c0_14 = arith.constant 0 : index
    %c0_15 = arith.constant 0 : index
    %c1 = arith.constant 1 : index
    %22 = vector.load %arg1[%c0_14, %c0_15, %c1] : memref<1x32x384xf32, #tpu.memory_space<vmem>>, vector<1x32x256xf32>
    %23 = vector.shape_cast %22 : vector<1x32x256xf32> to vector<32x256xf32>
    %24 = arith.truncf %23 : vector<32x256xf32> to vector<32x256xbf16>
    %25 = vector.extract_strided_slice %2 {offsets = [1, 0, 0], sizes = [1, 1, 256], strides = [1, 1, 1]} : vector<5x1x256xbf16> to vector<1x1x256xbf16>
    %26 = vector.shape_cast %25 : vector<1x1x256xbf16> to vector<1x256xbf16>
    %27 = vector.broadcast %26 : vector<1x256xbf16> to vector<32x256xbf16>
    %28 = arith.mulf %24, %27 : vector<32x256xbf16>
    %29 = vector.extract_strided_slice %1 {offsets = [0, 16], sizes = [16, 16], strides = [1, 1]} : vector<32x400xbf16> to vector<16x16xbf16>
    %30 = vector.extract_strided_slice %28 {offsets = [0, 0], sizes = [16, 256], strides = [1, 1]} : vector<32x256xbf16> to vector<16x256xbf16>
    %cst_16 = arith.constant dense<0.000000e+00> : vector<16x256xf32>
    %31 = tpu.matmul %29, %30, %cst_16 {dimension_numbers = #tpu.dot_dimension_numbers<[1], [0], [0], [1], [0, 0, 1, 1], [], []>} : vector<16x16xbf16>, vector<16x256xbf16>, vector<16x256xf32> -> vector<16x256xf32>
    %32 = arith.addf %17, %31 : vector<16x256xf32>
    %33 = vector.extract_strided_slice %1 {offsets = [16, 16], sizes = [16, 16], strides = [1, 1]} : vector<32x400xbf16> to vector<16x16xbf16>
    %34 = vector.extract_strided_slice %28 {offsets = [16, 0], sizes = [16, 256], strides = [1, 1]} : vector<32x256xbf16> to vector<16x256xbf16>
    %cst_17 = arith.constant dense<0.000000e+00> : vector<16x256xf32>
    %35 = tpu.matmul %33, %34, %cst_17 {dimension_numbers = #tpu.dot_dimension_numbers<[1], [0], [0], [1], [0, 0, 1, 1], [], []>} : vector<16x16xbf16>, vector<16x256xbf16>, vector<16x256xf32> -> vector<16x256xf32>
    %36 = arith.addf %21, %35 : vector<16x256xf32>
    %c0_18 = arith.constant 0 : index
    %c0_19 = arith.constant 0 : index
    %c2 = arith.constant 2 : index
    %37 = vector.load %arg1[%c0_18, %c0_19, %c2] : memref<1x32x384xf32, #tpu.memory_space<vmem>>, vector<1x32x256xf32>
    %38 = vector.shape_cast %37 : vector<1x32x256xf32> to vector<32x256xf32>
    %39 = arith.truncf %38 : vector<32x256xf32> to vector<32x256xbf16>
    %40 = vector.extract_strided_slice %1 {offsets = [0, 32], sizes = [16, 16], strides = [1, 1]} : vector<32x400xbf16> to vector<16x16xbf16>
    %41 = vector.extract_strided_slice %39 {offsets = [0, 0], sizes = [16, 256], strides = [1, 1]} : vector<32x256xbf16> to vector<16x256xbf16>
    %cst_20 = arith.constant dense<0.000000e+00> : vector<16x256xf32>
    %42 = tpu.matmul %40, %41, %cst_20 {dimension_numbers = #tpu.dot_dimension_numbers<[1], [0], [0], [1], [0, 0, 1, 1], [], []>} : vector<16x16xbf16>, vector<16x256xbf16>, vector<16x256xf32> -> vector<16x256xf32>
    %43 = arith.addf %32, %42 : vector<16x256xf32>
    %44 = vector.extract_strided_slice %1 {offsets = [16, 32], sizes = [16, 16], strides = [1, 1]} : vector<32x400xbf16> to vector<16x16xbf16>
    %45 = vector.extract_strided_slice %39 {offsets = [16, 0], sizes = [16, 256], strides = [1, 1]} : vector<32x256xbf16> to vector<16x256xbf16>
    %cst_21 = arith.constant dense<0.000000e+00> : vector<16x256xf32>
    %46 = tpu.matmul %44, %45, %cst_21 {dimension_numbers = #tpu.dot_dimension_numbers<[1], [0], [0], [1], [0, 0, 1, 1], [], []>} : vector<16x16xbf16>, vector<16x256xbf16>, vector<16x256xf32> -> vector<16x256xf32>
    %47 = arith.addf %36, %46 : vector<16x256xf32>
    %c0_22 = arith.constant 0 : index
    %c0_23 = arith.constant 0 : index
    %c3 = arith.constant 3 : index
    %48 = vector.load %arg1[%c0_22, %c0_23, %c3] : memref<1x32x384xf32, #tpu.memory_space<vmem>>, vector<1x32x256xf32>
    %49 = vector.shape_cast %48 : vector<1x32x256xf32> to vector<32x256xf32>
    %50 = arith.truncf %49 : vector<32x256xf32> to vector<32x256xbf16>
    %51 = vector.extract_strided_slice %2 {offsets = [3, 0, 0], sizes = [1, 1, 256], strides = [1, 1, 1]} : vector<5x1x256xbf16> to vector<1x1x256xbf16>
    %52 = vector.shape_cast %51 : vector<1x1x256xbf16> to vector<1x256xbf16>
    %53 = vector.broadcast %52 : vector<1x256xbf16> to vector<32x256xbf16>
    %54 = arith.mulf %50, %53 : vector<32x256xbf16>
    %55 = vector.extract_strided_slice %1 {offsets = [0, 48], sizes = [16, 16], strides = [1, 1]} : vector<32x400xbf16> to vector<16x16xbf16>
    %56 = vector.extract_strided_slice %54 {offsets = [0, 0], sizes = [16, 256], strides = [1, 1]} : vector<32x256xbf16> to vector<16x256xbf16>
    %cst_24 = arith.constant dense<0.000000e+00> : vector<16x256xf32>
    %57 = tpu.matmul %55, %56, %cst_24 {dimension_numbers = #tpu.dot_dimension_numbers<[1], [0], [0], [1], [0, 0, 1, 1], [], []>} : vector<16x16xbf16>, vector<16x256xbf16>, vector<16x256xf32> -> vector<16x256xf32>
    %58 = arith.addf %43, %57 : vector<16x256xf32>
    %59 = vector.extract_strided_slice %1 {offsets = [16, 48], sizes = [16, 16], strides = [1, 1]} : vector<32x400xbf16> to vector<16x16xbf16>
    %60 = vector.extract_strided_slice %54 {offsets = [16, 0], sizes = [16, 256], strides = [1, 1]} : vector<32x256xbf16> to vector<16x256xbf16>
    %cst_25 = arith.constant dense<0.000000e+00> : vector<16x256xf32>
    %61 = tpu.matmul %59, %60, %cst_25 {dimension_numbers = #tpu.dot_dimension_numbers<[1], [0], [0], [1], [0, 0, 1, 1], [], []>} : vector<16x16xbf16>, vector<16x256xbf16>, vector<16x256xf32> -> vector<16x256xf32>
    %62 = arith.addf %47, %61 : vector<16x256xf32>
    %c0_26 = arith.constant 0 : index
    %c0_27 = arith.constant 0 : index
    %c4 = arith.constant 4 : index
    %63 = vector.load %arg1[%c0_26, %c0_27, %c4] : memref<1x32x384xf32, #tpu.memory_space<vmem>>, vector<1x32x256xf32>
    %64 = vector.shape_cast %63 : vector<1x32x256xf32> to vector<32x256xf32>
    %65 = arith.truncf %64 : vector<32x256xf32> to vector<32x256xbf16>
    %66 = vector.extract_strided_slice %2 {offsets = [4, 0, 0], sizes = [1, 1, 256], strides = [1, 1, 1]} : vector<5x1x256xbf16> to vector<1x1x256xbf16>
    %67 = vector.shape_cast %66 : vector<1x1x256xbf16> to vector<1x256xbf16>
    %68 = vector.broadcast %67 : vector<1x256xbf16> to vector<32x256xbf16>
    %69 = arith.mulf %65, %68 : vector<32x256xbf16>
    %70 = vector.extract_strided_slice %1 {offsets = [0, 64], sizes = [16, 16], strides = [1, 1]} : vector<32x400xbf16> to vector<16x16xbf16>
    %71 = vector.extract_strided_slice %69 {offsets = [0, 0], sizes = [16, 256], strides = [1, 1]} : vector<32x256xbf16> to vector<16x256xbf16>
    %cst_28 = arith.constant dense<0.000000e+00> : vector<16x256xf32>
    %72 = tpu.matmul %70, %71, %cst_28 {dimension_numbers = #tpu.dot_dimension_numbers<[1], [0], [0], [1], [0, 0, 1, 1], [], []>} : vector<16x16xbf16>, vector<16x256xbf16>, vector<16x256xf32> -> vector<16x256xf32>
    %73 = arith.addf %58, %72 : vector<16x256xf32>
    %74 = vector.extract_strided_slice %1 {offsets = [16, 64], sizes = [16, 16], strides = [1, 1]} : vector<32x400xbf16> to vector<16x16xbf16>
    %75 = vector.extract_strided_slice %69 {offsets = [16, 0], sizes = [16, 256], strides = [1, 1]} : vector<32x256xbf16> to vector<16x256xbf16>
    %cst_29 = arith.constant dense<0.000000e+00> : vector<16x256xf32>
    %76 = tpu.matmul %74, %75, %cst_29 {dimension_numbers = #tpu.dot_dimension_numbers<[1], [0], [0], [1], [0, 0, 1, 1], [], []>} : vector<16x16xbf16>, vector<16x256xbf16>, vector<16x256xf32> -> vector<16x256xf32>
    %77 = arith.addf %62, %76 : vector<16x256xf32>
    %c0_30 = arith.constant 0 : index
    %c0_31 = arith.constant 0 : index
    %c16 = arith.constant 16 : index
    %78 = vector.load %arg1[%c0_30, %c0_31, %c16] : memref<1x32x384xf32, #tpu.memory_space<vmem>>, vector<1x32x256xf32>
    %79 = vector.shape_cast %78 : vector<1x32x256xf32> to vector<32x256xf32>
    %80 = arith.truncf %79 : vector<32x256xf32> to vector<32x256xbf16>
    %81 = vector.extract_strided_slice %2 {offsets = [0, 0, 0], sizes = [1, 1, 256], strides = [1, 1, 1]} : vector<5x1x256xbf16> to vector<1x1x256xbf16>
    %82 = vector.shape_cast %81 : vector<1x1x256xbf16> to vector<1x256xbf16>
    %83 = vector.broadcast %82 : vector<1x256xbf16> to vector<32x256xbf16>
    %84 = arith.mulf %80, %83 : vector<32x256xbf16>
    %85 = vector.extract_strided_slice %1 {offsets = [0, 80], sizes = [16, 16], strides = [1, 1]} : vector<32x400xbf16> to vector<16x16xbf16>
    %86 = vector.extract_strided_slice %84 {offsets = [0, 0], sizes = [16, 256], strides = [1, 1]} : vector<32x256xbf16> to vector<16x256xbf16>
    %cst_32 = arith.constant dense<0.000000e+00> : vector<16x256xf32>
    %87 = tpu.matmul %85, %86, %cst_32 {dimension_numbers = #tpu.dot_dimension_numbers<[1], [0], [0], [1], [0, 0, 1, 1], [], []>} : vector<16x16xbf16>, vector<16x256xbf16>, vector<16x256xf32> -> vector<16x256xf32>
    %88 = arith.addf %73, %87 : vector<16x256xf32>
    %89 = vector.extract_strided_slice %1 {offsets = [16, 80], sizes = [16, 16], strides = [1, 1]} : vector<32x400xbf16> to vector<16x16xbf16>
    %90 = vector.extract_strided_slice %84 {offsets = [16, 0], sizes = [16, 256], strides = [1, 1]} : vector<32x256xbf16> to vector<16x256xbf16>
    %cst_33 = arith.constant dense<0.000000e+00> : vector<16x256xf32>
    %91 = tpu.matmul %89, %90, %cst_33 {dimension_numbers = #tpu.dot_dimension_numbers<[1], [0], [0], [1], [0, 0, 1, 1], [], []>} : vector<16x16xbf16>, vector<16x256xbf16>, vector<16x256xf32> -> vector<16x256xf32>
    %92 = arith.addf %77, %91 : vector<16x256xf32>
    %c0_34 = arith.constant 0 : index
    %c0_35 = arith.constant 0 : index
    %c17 = arith.constant 17 : index
    %93 = vector.load %arg1[%c0_34, %c0_35, %c17] : memref<1x32x384xf32, #tpu.memory_space<vmem>>, vector<1x32x256xf32>
    %94 = vector.shape_cast %93 : vector<1x32x256xf32> to vector<32x256xf32>
    %95 = arith.truncf %94 : vector<32x256xf32> to vector<32x256xbf16>
    %96 = vector.extract_strided_slice %2 {offsets = [1, 0, 0], sizes = [1, 1, 256], strides = [1, 1, 1]} : vector<5x1x256xbf16> to vector<1x1x256xbf16>
    %97 = vector.shape_cast %96 : vector<1x1x256xbf16> to vector<1x256xbf16>
    %98 = vector.broadcast %97 : vector<1x256xbf16> to vector<32x256xbf16>
    %99 = arith.mulf %95, %98 : vector<32x256xbf16>
    %100 = vector.extract_strided_slice %0 {offsets = [0, 0], sizes = [16, 16], strides = [1, 1]} : vector<32x144xbf16> to vector<16x16xbf16>
    %101 = vector.extract_strided_slice %99 {offsets = [0, 0], sizes = [16, 256], strides = [1, 1]} : vector<32x256xbf16> to vector<16x256xbf16>
    %cst_36 = arith.constant dense<0.000000e+00> : vector<16x256xf32>
    %102 = tpu.matmul %100, %101, %cst_36 {dimension_numbers = #tpu.dot_dimension_numbers<[1], [0], [0], [1], [0, 0, 1, 1], [], []>} : vector<16x16xbf16>, vector<16x256xbf16>, vector<16x256xf32> -> vector<16x256xf32>
    %103 = arith.addf %3, %102 : vector<16x256xf32>
    %104 = vector.extract_strided_slice %0 {offsets = [16, 0], sizes = [16, 16], strides = [1, 1]} : vector<32x144xbf16> to vector<16x16xbf16>
    %105 = vector.extract_strided_slice %99 {offsets = [16, 0], sizes = [16, 256], strides = [1, 1]} : vector<32x256xbf16> to vector<16x256xbf16>
    %cst_37 = arith.constant dense<0.000000e+00> : vector<16x256xf32>
    %106 = tpu.matmul %104, %105, %cst_37 {dimension_numbers = #tpu.dot_dimension_numbers<[1], [0], [0], [1], [0, 0, 1, 1], [], []>} : vector<16x16xbf16>, vector<16x256xbf16>, vector<16x256xf32> -> vector<16x256xf32>
    %107 = arith.addf %4, %106 : vector<16x256xf32>
    %108 = vector.extract_strided_slice %1 {offsets = [0, 96], sizes = [16, 16], strides = [1, 1]} : vector<32x400xbf16> to vector<16x16xbf16>
    %109 = vector.extract_strided_slice %99 {offsets = [0, 0], sizes = [16, 256], strides = [1, 1]} : vector<32x256xbf16> to vector<16x256xbf16>
    %cst_38 = arith.constant dense<0.000000e+00> : vector<16x256xf32>
    %110 = tpu.matmul %108, %109, %cst_38 {dimension_numbers = #tpu.dot_dimension_numbers<[1], [0], [0], [1], [0, 0, 1, 1], [], []>} : vector<16x16xbf16>, vector<16x256xbf16>, vector<16x256xf32> -> vector<16x256xf32>
    %111 = arith.addf %88, %110 : vector<16x256xf32>
    %112 = vector.extract_strided_slice %1 {offsets = [16, 96], sizes = [16, 16], strides = [1, 1]} : vector<32x400xbf16> to vector<16x16xbf16>
    %113 = vector.extract_strided_slice %99 {offsets = [16, 0], sizes = [16, 256], strides = [1, 1]} : vector<32x256xbf16> to vector<16x256xbf16>
    %cst_39 = arith.constant dense<0.000000e+00> : vector<16x256xf32>
    %114 = tpu.matmul %112, %113, %cst_39 {dimension_numbers = #tpu.dot_dimension_numbers<[1], [0], [0], [1], [0, 0, 1, 1], [], []>} : vector<16x16xbf16>, vector<16x256xbf16>, vector<16x256xf32> -> vector<16x256xf32>
    %115 = arith.addf %92, %114 : vector<16x256xf32>
    %c0_40 = arith.constant 0 : index
    %c0_41 = arith.constant 0 : index
    %c18 = arith.constant 18 : index
    %116 = vector.load %arg1[%c0_40, %c0_41, %c18] : memref<1x32x384xf32, #tpu.memory_space<vmem>>, vector<1x32x256xf32>
    %117 = vector.shape_cast %116 : vector<1x32x256xf32> to vector<32x256xf32>
    %118 = arith.truncf %117 : vector<32x256xf32> to vector<32x256xbf16>
    %119 = vector.extract_strided_slice %0 {offsets = [0, 16], sizes = [16, 16], strides = [1, 1]} : vector<32x144xbf16> to vector<16x16xbf16>
    %120 = vector.extract_strided_slice %118 {offsets = [0, 0], sizes = [16, 256], strides = [1, 1]} : vector<32x256xbf16> to vector<16x256xbf16>
    %cst_42 = arith.constant dense<0.000000e+00> : vector<16x256xf32>
    %121 = tpu.matmul %119, %120, %cst_42 {dimension_numbers = #tpu.dot_dimension_numbers<[1], [0], [0], [1], [0, 0, 1, 1], [], []>} : vector<16x16xbf16>, vector<16x256xbf16>, vector<16x256xf32> -> vector<16x256xf32>
    %122 = arith.addf %103, %121 : vector<16x256xf32>
    %123 = vector.extract_strided_slice %0 {offsets = [16, 16], sizes = [16, 16], strides = [1, 1]} : vector<32x144xbf16> to vector<16x16xbf16>
    %124 = vector.extract_strided_slice %118 {offsets = [16, 0], sizes = [16, 256], strides = [1, 1]} : vector<32x256xbf16> to vector<16x256xbf16>
    %cst_43 = arith.constant dense<0.000000e+00> : vector<16x256xf32>
    %125 = tpu.matmul %123, %124, %cst_43 {dimension_numbers = #tpu.dot_dimension_numbers<[1], [0], [0], [1], [0, 0, 1, 1], [], []>} : vector<16x16xbf16>, vector<16x256xbf16>, vector<16x256xf32> -> vector<16x256xf32>
    %126 = arith.addf %107, %125 : vector<16x256xf32>
    %127 = vector.extract_strided_slice %1 {offsets = [0, 112], sizes = [16, 16], strides = [1, 1]} : vector<32x400xbf16> to vector<16x16xbf16>
    %128 = vector.extract_strided_slice %118 {offsets = [0, 0], sizes = [16, 256], strides = [1, 1]} : vector<32x256xbf16> to vector<16x256xbf16>
    %cst_44 = arith.constant dense<0.000000e+00> : vector<16x256xf32>
    %129 = tpu.matmul %127, %128, %cst_44 {dimension_numbers = #tpu.dot_dimension_numbers<[1], [0], [0], [1], [0, 0, 1, 1], [], []>} : vector<16x16xbf16>, vector<16x256xbf16>, vector<16x256xf32> -> vector<16x256xf32>
    %130 = arith.addf %111, %129 : vector<16x256xf32>
    %131 = vector.extract_strided_slice %1 {offsets = [16, 112], sizes = [16, 16], strides = [1, 1]} : vector<32x400xbf16> to vector<16x16xbf16>
    %132 = vector.extract_strided_slice %118 {offsets = [16, 0], sizes = [16, 256], strides = [1, 1]} : vector<32x256xbf16> to vector<16x256xbf16>
    %cst_45 = arith.constant dense<0.000000e+00> : vector<16x256xf32>
    %133 = tpu.matmul %131, %132, %cst_45 {dimension_numbers = #tpu.dot_dimension_numbers<[1], [0], [0], [1], [0, 0, 1, 1], [], []>} : vector<16x16xbf16>, vector<16x256xbf16>, vector<16x256xf32> -> vector<16x256xf32>
    %134 = arith.addf %115, %133 : vector<16x256xf32>
    %c0_46 = arith.constant 0 : index
    %c0_47 = arith.constant 0 : index
    %c19 = arith.constant 19 : index
    %135 = vector.load %arg1[%c0_46, %c0_47, %c19] : memref<1x32x384xf32, #tpu.memory_space<vmem>>, vector<1x32x256xf32>
    %136 = vector.shape_cast %135 : vector<1x32x256xf32> to vector<32x256xf32>
    %137 = arith.truncf %136 : vector<32x256xf32> to vector<32x256xbf16>
    %138 = vector.extract_strided_slice %2 {offsets = [3, 0, 0], sizes = [1, 1, 256], strides = [1, 1, 1]} : vector<5x1x256xbf16> to vector<1x1x256xbf16>
    %139 = vector.shape_cast %138 : vector<1x1x256xbf16> to vector<1x256xbf16>
    %140 = vector.broadcast %139 : vector<1x256xbf16> to vector<32x256xbf16>
    %141 = arith.mulf %137, %140 : vector<32x256xbf16>
    %142 = vector.extract_strided_slice %0 {offsets = [0, 32], sizes = [16, 16], strides = [1, 1]} : vector<32x144xbf16> to vector<16x16xbf16>
    %143 = vector.extract_strided_slice %141 {offsets = [0, 0], sizes = [16, 256], strides = [1, 1]} : vector<32x256xbf16> to vector<16x256xbf16>
    %cst_48 = arith.constant dense<0.000000e+00> : vector<16x256xf32>
    %144 = tpu.matmul %142, %143, %cst_48 {dimension_numbers = #tpu.dot_dimension_numbers<[1], [0], [0], [1], [0, 0, 1, 1], [], []>} : vector<16x16xbf16>, vector<16x256xbf16>, vector<16x256xf32> -> vector<16x256xf32>
    %145 = arith.addf %122, %144 : vector<16x256xf32>
    %146 = vector.extract_strided_slice %0 {offsets = [16, 32], sizes = [16, 16], strides = [1, 1]} : vector<32x144xbf16> to vector<16x16xbf16>
    %147 = vector.extract_strided_slice %141 {offsets = [16, 0], sizes = [16, 256], strides = [1, 1]} : vector<32x256xbf16> to vector<16x256xbf16>
    %cst_49 = arith.constant dense<0.000000e+00> : vector<16x256xf32>
    %148 = tpu.matmul %146, %147, %cst_49 {dimension_numbers = #tpu.dot_dimension_numbers<[1], [0], [0], [1], [0, 0, 1, 1], [], []>} : vector<16x16xbf16>, vector<16x256xbf16>, vector<16x256xf32> -> vector<16x256xf32>
    %149 = arith.addf %126, %148 : vector<16x256xf32>
    %150 = vector.extract_strided_slice %1 {offsets = [0, 128], sizes = [16, 16], strides = [1, 1]} : vector<32x400xbf16> to vector<16x16xbf16>
    %151 = vector.extract_strided_slice %141 {offsets = [0, 0], sizes = [16, 256], strides = [1, 1]} : vector<32x256xbf16> to vector<16x256xbf16>
    %cst_50 = arith.constant dense<0.000000e+00> : vector<16x256xf32>
    %152 = tpu.matmul %150, %151, %cst_50 {dimension_numbers = #tpu.dot_dimension_numbers<[1], [0], [0], [1], [0, 0, 1, 1], [], []>} : vector<16x16xbf16>, vector<16x256xbf16>, vector<16x256xf32> -> vector<16x256xf32>
    %153 = arith.addf %130, %152 : vector<16x256xf32>
    %154 = vector.extract_strided_slice %1 {offsets = [16, 128], sizes = [16, 16], strides = [1, 1]} : vector<32x400xbf16> to vector<16x16xbf16>
    %155 = vector.extract_strided_slice %141 {offsets = [16, 0], sizes = [16, 256], strides = [1, 1]} : vector<32x256xbf16> to vector<16x256xbf16>
    %cst_51 = arith.constant dense<0.000000e+00> : vector<16x256xf32>
    %156 = tpu.matmul %154, %155, %cst_51 {dimension_numbers = #tpu.dot_dimension_numbers<[1], [0], [0], [1], [0, 0, 1, 1], [], []>} : vector<16x16xbf16>, vector<16x256xbf16>, vector<16x256xf32> -> vector<16x256xf32>
    %157 = arith.addf %134, %156 : vector<16x256xf32>
    %c0_52 = arith.constant 0 : index
    %c0_53 = arith.constant 0 : index
    %c20 = arith.constant 20 : index
    %158 = vector.load %arg1[%c0_52, %c0_53, %c20] : memref<1x32x384xf32, #tpu.memory_space<vmem>>, vector<1x32x256xf32>
    %159 = vector.shape_cast %158 : vector<1x32x256xf32> to vector<32x256xf32>
    %160 = arith.truncf %159 : vector<32x256xf32> to vector<32x256xbf16>
    %161 = vector.extract_strided_slice %2 {offsets = [4, 0, 0], sizes = [1, 1, 256], strides = [1, 1, 1]} : vector<5x1x256xbf16> to vector<1x1x256xbf16>
    %162 = vector.shape_cast %161 : vector<1x1x256xbf16> to vector<1x256xbf16>
    %163 = vector.broadcast %162 : vector<1x256xbf16> to vector<32x256xbf16>
    %164 = arith.mulf %160, %163 : vector<32x256xbf16>
    %165 = vector.extract_strided_slice %1 {offsets = [0, 144], sizes = [16, 16], strides = [1, 1]} : vector<32x400xbf16> to vector<16x16xbf16>
    %166 = vector.extract_strided_slice %164 {offsets = [0, 0], sizes = [16, 256], strides = [1, 1]} : vector<32x256xbf16> to vector<16x256xbf16>
    %cst_54 = arith.constant dense<0.000000e+00> : vector<16x256xf32>
    %167 = tpu.matmul %165, %166, %cst_54 {dimension_numbers = #tpu.dot_dimension_numbers<[1], [0], [0], [1], [0, 0, 1, 1], [], []>} : vector<16x16xbf16>, vector<16x256xbf16>, vector<16x256xf32> -> vector<16x256xf32>
    %168 = arith.addf %153, %167 : vector<16x256xf32>
    %169 = vector.extract_strided_slice %1 {offsets = [16, 144], sizes = [16, 16], strides = [1, 1]} : vector<32x400xbf16> to vector<16x16xbf16>
    %170 = vector.extract_strided_slice %164 {offsets = [16, 0], sizes = [16, 256], strides = [1, 1]} : vector<32x256xbf16> to vector<16x256xbf16>
    %cst_55 = arith.constant dense<0.000000e+00> : vector<16x256xf32>
    %171 = tpu.matmul %169, %170, %cst_55 {dimension_numbers = #tpu.dot_dimension_numbers<[1], [0], [0], [1], [0, 0, 1, 1], [], []>} : vector<16x16xbf16>, vector<16x256xbf16>, vector<16x256xf32> -> vector<16x256xf32>
    %172 = arith.addf %157, %171 : vector<16x256xf32>
    %c0_56 = arith.constant 0 : index
    %c0_57 = arith.constant 0 : index
    %c32 = arith.constant 32 : index
    %173 = vector.load %arg1[%c0_56, %c0_57, %c32] : memref<1x32x384xf32, #tpu.memory_space<vmem>>, vector<1x32x256xf32>
    %174 = vector.shape_cast %173 : vector<1x32x256xf32> to vector<32x256xf32>
    %175 = arith.truncf %174 : vector<32x256xf32> to vector<32x256xbf16>
    %176 = vector.extract_strided_slice %2 {offsets = [0, 0, 0], sizes = [1, 1, 256], strides = [1, 1, 1]} : vector<5x1x256xbf16> to vector<1x1x256xbf16>
    %177 = vector.shape_cast %176 : vector<1x1x256xbf16> to vector<1x256xbf16>
    %178 = vector.broadcast %177 : vector<1x256xbf16> to vector<32x256xbf16>
    %179 = arith.mulf %175, %178 : vector<32x256xbf16>
    %180 = vector.extract_strided_slice %1 {offsets = [0, 160], sizes = [16, 16], strides = [1, 1]} : vector<32x400xbf16> to vector<16x16xbf16>
    %181 = vector.extract_strided_slice %179 {offsets = [0, 0], sizes = [16, 256], strides = [1, 1]} : vector<32x256xbf16> to vector<16x256xbf16>
    %cst_58 = arith.constant dense<0.000000e+00> : vector<16x256xf32>
    %182 = tpu.matmul %180, %181, %cst_58 {dimension_numbers = #tpu.dot_dimension_numbers<[1], [0], [0], [1], [0, 0, 1, 1], [], []>} : vector<16x16xbf16>, vector<16x256xbf16>, vector<16x256xf32> -> vector<16x256xf32>
    %183 = arith.addf %168, %182 : vector<16x256xf32>
    %184 = vector.extract_strided_slice %1 {offsets = [16, 160], sizes = [16, 16], strides = [1, 1]} : vector<32x400xbf16> to vector<16x16xbf16>
    %185 = vector.extract_strided_slice %179 {offsets = [16, 0], sizes = [16, 256], strides = [1, 1]} : vector<32x256xbf16> to vector<16x256xbf16>
    %cst_59 = arith.constant dense<0.000000e+00> : vector<16x256xf32>
    %186 = tpu.matmul %184, %185, %cst_59 {dimension_numbers = #tpu.dot_dimension_numbers<[1], [0], [0], [1], [0, 0, 1, 1], [], []>} : vector<16x16xbf16>, vector<16x256xbf16>, vector<16x256xf32> -> vector<16x256xf32>
    %187 = arith.addf %172, %186 : vector<16x256xf32>
    %c0_60 = arith.constant 0 : index
    %c0_61 = arith.constant 0 : index
    %c33 = arith.constant 33 : index
    %188 = vector.load %arg1[%c0_60, %c0_61, %c33] : memref<1x32x384xf32, #tpu.memory_space<vmem>>, vector<1x32x256xf32>
    %189 = vector.shape_cast %188 : vector<1x32x256xf32> to vector<32x256xf32>
    %190 = arith.truncf %189 : vector<32x256xf32> to vector<32x256xbf16>
    %191 = vector.extract_strided_slice %2 {offsets = [1, 0, 0], sizes = [1, 1, 256], strides = [1, 1, 1]} : vector<5x1x256xbf16> to vector<1x1x256xbf16>
    %192 = vector.shape_cast %191 : vector<1x1x256xbf16> to vector<1x256xbf16>
    %193 = vector.broadcast %192 : vector<1x256xbf16> to vector<32x256xbf16>
    %194 = arith.mulf %190, %193 : vector<32x256xbf16>
    %195 = vector.extract_strided_slice %0 {offsets = [0, 48], sizes = [16, 16], strides = [1, 1]} : vector<32x144xbf16> to vector<16x16xbf16>
    %196 = vector.extract_strided_slice %194 {offsets = [0, 0], sizes = [16, 256], strides = [1, 1]} : vector<32x256xbf16> to vector<16x256xbf16>
    %cst_62 = arith.constant dense<0.000000e+00> : vector<16x256xf32>
    %197 = tpu.matmul %195, %196, %cst_62 {dimension_numbers = #tpu.dot_dimension_numbers<[1], [0], [0], [1], [0, 0, 1, 1], [], []>} : vector<16x16xbf16>, vector<16x256xbf16>, vector<16x256xf32> -> vector<16x256xf32>
    %198 = arith.addf %145, %197 : vector<16x256xf32>
    %199 = vector.extract_strided_slice %0 {offsets = [16, 48], sizes = [16, 16], strides = [1, 1]} : vector<32x144xbf16> to vector<16x16xbf16>
    %200 = vector.extract_strided_slice %194 {offsets = [16, 0], sizes = [16, 256], strides = [1, 1]} : vector<32x256xbf16> to vector<16x256xbf16>
    %cst_63 = arith.constant dense<0.000000e+00> : vector<16x256xf32>
    %201 = tpu.matmul %199, %200, %cst_63 {dimension_numbers = #tpu.dot_dimension_numbers<[1], [0], [0], [1], [0, 0, 1, 1], [], []>} : vector<16x16xbf16>, vector<16x256xbf16>, vector<16x256xf32> -> vector<16x256xf32>
    %202 = arith.addf %149, %201 : vector<16x256xf32>
    %203 = vector.extract_strided_slice %1 {offsets = [0, 176], sizes = [16, 16], strides = [1, 1]} : vector<32x400xbf16> to vector<16x16xbf16>
    %204 = vector.extract_strided_slice %194 {offsets = [0, 0], sizes = [16, 256], strides = [1, 1]} : vector<32x256xbf16> to vector<16x256xbf16>
    %cst_64 = arith.constant dense<0.000000e+00> : vector<16x256xf32>
    %205 = tpu.matmul %203, %204, %cst_64 {dimension_numbers = #tpu.dot_dimension_numbers<[1], [0], [0], [1], [0, 0, 1, 1], [], []>} : vector<16x16xbf16>, vector<16x256xbf16>, vector<16x256xf32> -> vector<16x256xf32>
    %206 = arith.addf %183, %205 : vector<16x256xf32>
    %207 = vector.extract_strided_slice %1 {offsets = [16, 176], sizes = [16, 16], strides = [1, 1]} : vector<32x400xbf16> to vector<16x16xbf16>
    %208 = vector.extract_strided_slice %194 {offsets = [16, 0], sizes = [16, 256], strides = [1, 1]} : vector<32x256xbf16> to vector<16x256xbf16>
    %cst_65 = arith.constant dense<0.000000e+00> : vector<16x256xf32>
    %209 = tpu.matmul %207, %208, %cst_65 {dimension_numbers = #tpu.dot_dimension_numbers<[1], [0], [0], [1], [0, 0, 1, 1], [], []>} : vector<16x16xbf16>, vector<16x256xbf16>, vector<16x256xf32> -> vector<16x256xf32>
    %210 = arith.addf %187, %209 : vector<16x256xf32>
    %c0_66 = arith.constant 0 : index
    %c0_67 = arith.constant 0 : index
    %c34 = arith.constant 34 : index
    %211 = vector.load %arg1[%c0_66, %c0_67, %c34] : memref<1x32x384xf32, #tpu.memory_space<vmem>>, vector<1x32x256xf32>
    %212 = vector.shape_cast %211 : vector<1x32x256xf32> to vector<32x256xf32>
    %213 = arith.truncf %212 : vector<32x256xf32> to vector<32x256xbf16>
    %214 = vector.extract_strided_slice %0 {offsets = [0, 64], sizes = [16, 16], strides = [1, 1]} : vector<32x144xbf16> to vector<16x16xbf16>
    %215 = vector.extract_strided_slice %213 {offsets = [0, 0], sizes = [16, 256], strides = [1, 1]} : vector<32x256xbf16> to vector<16x256xbf16>
    %cst_68 = arith.constant dense<0.000000e+00> : vector<16x256xf32>
    %216 = tpu.matmul %214, %215, %cst_68 {dimension_numbers = #tpu.dot_dimension_numbers<[1], [0], [0], [1], [0, 0, 1, 1], [], []>} : vector<16x16xbf16>, vector<16x256xbf16>, vector<16x256xf32> -> vector<16x256xf32>
    %217 = arith.addf %198, %216 : vector<16x256xf32>
    %218 = vector.extract_strided_slice %0 {offsets = [16, 64], sizes = [16, 16], strides = [1, 1]} : vector<32x144xbf16> to vector<16x16xbf16>
    %219 = vector.extract_strided_slice %213 {offsets = [16, 0], sizes = [16, 256], strides = [1, 1]} : vector<32x256xbf16> to vector<16x256xbf16>
    %cst_69 = arith.constant dense<0.000000e+00> : vector<16x256xf32>
    %220 = tpu.matmul %218, %219, %cst_69 {dimension_numbers = #tpu.dot_dimension_numbers<[1], [0], [0], [1], [0, 0, 1, 1], [], []>} : vector<16x16xbf16>, vector<16x256xbf16>, vector<16x256xf32> -> vector<16x256xf32>
    %221 = arith.addf %202, %220 : vector<16x256xf32>
    %222 = vector.extract_strided_slice %1 {offsets = [0, 192], sizes = [16, 16], strides = [1, 1]} : vector<32x400xbf16> to vector<16x16xbf16>
    %223 = vector.extract_strided_slice %213 {offsets = [0, 0], sizes = [16, 256], strides = [1, 1]} : vector<32x256xbf16> to vector<16x256xbf16>
    %cst_70 = arith.constant dense<0.000000e+00> : vector<16x256xf32>
    %224 = tpu.matmul %222, %223, %cst_70 {dimension_numbers = #tpu.dot_dimension_numbers<[1], [0], [0], [1], [0, 0, 1, 1], [], []>} : vector<16x16xbf16>, vector<16x256xbf16>, vector<16x256xf32> -> vector<16x256xf32>
    %225 = arith.addf %206, %224 : vector<16x256xf32>
    %226 = vector.extract_strided_slice %1 {offsets = [16, 192], sizes = [16, 16], strides = [1, 1]} : vector<32x400xbf16> to vector<16x16xbf16>
    %227 = vector.extract_strided_slice %213 {offsets = [16, 0], sizes = [16, 256], strides = [1, 1]} : vector<32x256xbf16> to vector<16x256xbf16>
    %cst_71 = arith.constant dense<0.000000e+00> : vector<16x256xf32>
    %228 = tpu.matmul %226, %227, %cst_71 {dimension_numbers = #tpu.dot_dimension_numbers<[1], [0], [0], [1], [0, 0, 1, 1], [], []>} : vector<16x16xbf16>, vector<16x256xbf16>, vector<16x256xf32> -> vector<16x256xf32>
    %229 = arith.addf %210, %228 : vector<16x256xf32>
    %c0_72 = arith.constant 0 : index
    %c0_73 = arith.constant 0 : index
    %c35 = arith.constant 35 : index
    %230 = vector.load %arg1[%c0_72, %c0_73, %c35] : memref<1x32x384xf32, #tpu.memory_space<vmem>>, vector<1x32x256xf32>
    %231 = vector.shape_cast %230 : vector<1x32x256xf32> to vector<32x256xf32>
    %232 = arith.truncf %231 : vector<32x256xf32> to vector<32x256xbf16>
    %233 = vector.extract_strided_slice %2 {offsets = [3, 0, 0], sizes = [1, 1, 256], strides = [1, 1, 1]} : vector<5x1x256xbf16> to vector<1x1x256xbf16>
    %234 = vector.shape_cast %233 : vector<1x1x256xbf16> to vector<1x256xbf16>
    %235 = vector.broadcast %234 : vector<1x256xbf16> to vector<32x256xbf16>
    %236 = arith.mulf %232, %235 : vector<32x256xbf16>
    %237 = vector.extract_strided_slice %0 {offsets = [0, 80], sizes = [16, 16], strides = [1, 1]} : vector<32x144xbf16> to vector<16x16xbf16>
    %238 = vector.extract_strided_slice %236 {offsets = [0, 0], sizes = [16, 256], strides = [1, 1]} : vector<32x256xbf16> to vector<16x256xbf16>
    %cst_74 = arith.constant dense<0.000000e+00> : vector<16x256xf32>
    %239 = tpu.matmul %237, %238, %cst_74 {dimension_numbers = #tpu.dot_dimension_numbers<[1], [0], [0], [1], [0, 0, 1, 1], [], []>} : vector<16x16xbf16>, vector<16x256xbf16>, vector<16x256xf32> -> vector<16x256xf32>
    %240 = arith.addf %217, %239 : vector<16x256xf32>
    %241 = vector.extract_strided_slice %0 {offsets = [16, 80], sizes = [16, 16], strides = [1, 1]} : vector<32x144xbf16> to vector<16x16xbf16>
    %242 = vector.extract_strided_slice %236 {offsets = [16, 0], sizes = [16, 256], strides = [1, 1]} : vector<32x256xbf16> to vector<16x256xbf16>
    %cst_75 = arith.constant dense<0.000000e+00> : vector<16x256xf32>
    %243 = tpu.matmul %241, %242, %cst_75 {dimension_numbers = #tpu.dot_dimension_numbers<[1], [0], [0], [1], [0, 0, 1, 1], [], []>} : vector<16x16xbf16>, vector<16x256xbf16>, vector<16x256xf32> -> vector<16x256xf32>
    %244 = arith.addf %221, %243 : vector<16x256xf32>
    %245 = vector.extract_strided_slice %1 {offsets = [0, 208], sizes = [16, 16], strides = [1, 1]} : vector<32x400xbf16> to vector<16x16xbf16>
    %246 = vector.extract_strided_slice %236 {offsets = [0, 0], sizes = [16, 256], strides = [1, 1]} : vector<32x256xbf16> to vector<16x256xbf16>
    %cst_76 = arith.constant dense<0.000000e+00> : vector<16x256xf32>
    %247 = tpu.matmul %245, %246, %cst_76 {dimension_numbers = #tpu.dot_dimension_numbers<[1], [0], [0], [1], [0, 0, 1, 1], [], []>} : vector<16x16xbf16>, vector<16x256xbf16>, vector<16x256xf32> -> vector<16x256xf32>
    %248 = arith.addf %225, %247 : vector<16x256xf32>
    %249 = vector.extract_strided_slice %1 {offsets = [16, 208], sizes = [16, 16], strides = [1, 1]} : vector<32x400xbf16> to vector<16x16xbf16>
    %250 = vector.extract_strided_slice %236 {offsets = [16, 0], sizes = [16, 256], strides = [1, 1]} : vector<32x256xbf16> to vector<16x256xbf16>
    %cst_77 = arith.constant dense<0.000000e+00> : vector<16x256xf32>
    %251 = tpu.matmul %249, %250, %cst_77 {dimension_numbers = #tpu.dot_dimension_numbers<[1], [0], [0], [1], [0, 0, 1, 1], [], []>} : vector<16x16xbf16>, vector<16x256xbf16>, vector<16x256xf32> -> vector<16x256xf32>
    %252 = arith.addf %229, %251 : vector<16x256xf32>
    %c0_78 = arith.constant 0 : index
    %c0_79 = arith.constant 0 : index
    %c36 = arith.constant 36 : index
    %253 = vector.load %arg1[%c0_78, %c0_79, %c36] : memref<1x32x384xf32, #tpu.memory_space<vmem>>, vector<1x32x256xf32>
    %254 = vector.shape_cast %253 : vector<1x32x256xf32> to vector<32x256xf32>
    %255 = arith.truncf %254 : vector<32x256xf32> to vector<32x256xbf16>
    %256 = vector.extract_strided_slice %2 {offsets = [4, 0, 0], sizes = [1, 1, 256], strides = [1, 1, 1]} : vector<5x1x256xbf16> to vector<1x1x256xbf16>
    %257 = vector.shape_cast %256 : vector<1x1x256xbf16> to vector<1x256xbf16>
    %258 = vector.broadcast %257 : vector<1x256xbf16> to vector<32x256xbf16>
    %259 = arith.mulf %255, %258 : vector<32x256xbf16>
    %260 = vector.extract_strided_slice %1 {offsets = [0, 224], sizes = [16, 16], strides = [1, 1]} : vector<32x400xbf16> to vector<16x16xbf16>
    %261 = vector.extract_strided_slice %259 {offsets = [0, 0], sizes = [16, 256], strides = [1, 1]} : vector<32x256xbf16> to vector<16x256xbf16>
    %cst_80 = arith.constant dense<0.000000e+00> : vector<16x256xf32>
    %262 = tpu.matmul %260, %261, %cst_80 {dimension_numbers = #tpu.dot_dimension_numbers<[1], [0], [0], [1], [0, 0, 1, 1], [], []>} : vector<16x16xbf16>, vector<16x256xbf16>, vector<16x256xf32> -> vector<16x256xf32>
    %263 = arith.addf %248, %262 : vector<16x256xf32>
    %264 = vector.extract_strided_slice %1 {offsets = [16, 224], sizes = [16, 16], strides = [1, 1]} : vector<32x400xbf16> to vector<16x16xbf16>
    %265 = vector.extract_strided_slice %259 {offsets = [16, 0], sizes = [16, 256], strides = [1, 1]} : vector<32x256xbf16> to vector<16x256xbf16>
    %cst_81 = arith.constant dense<0.000000e+00> : vector<16x256xf32>
    %266 = tpu.matmul %264, %265, %cst_81 {dimension_numbers = #tpu.dot_dimension_numbers<[1], [0], [0], [1], [0, 0, 1, 1], [], []>} : vector<16x16xbf16>, vector<16x256xbf16>, vector<16x256xf32> -> vector<16x256xf32>
    %267 = arith.addf %252, %266 : vector<16x256xf32>
    %c0_82 = arith.constant 0 : index
    %c0_83 = arith.constant 0 : index
    %c48 = arith.constant 48 : index
    %268 = vector.load %arg1[%c0_82, %c0_83, %c48] : memref<1x32x384xf32, #tpu.memory_space<vmem>>, vector<1x32x256xf32>
    %269 = vector.shape_cast %268 : vector<1x32x256xf32> to vector<32x256xf32>
    %270 = arith.truncf %269 : vector<32x256xf32> to vector<32x256xbf16>
    %271 = vector.extract_strided_slice %2 {offsets = [0, 0, 0], sizes = [1, 1, 256], strides = [1, 1, 1]} : vector<5x1x256xbf16> to vector<1x1x256xbf16>
    %272 = vector.shape_cast %271 : vector<1x1x256xbf16> to vector<1x256xbf16>
    %273 = vector.broadcast %272 : vector<1x256xbf16> to vector<32x256xbf16>
    %274 = arith.mulf %270, %273 : vector<32x256xbf16>
    %275 = vector.extract_strided_slice %1 {offsets = [0, 240], sizes = [16, 16], strides = [1, 1]} : vector<32x400xbf16> to vector<16x16xbf16>
    %276 = vector.extract_strided_slice %274 {offsets = [0, 0], sizes = [16, 256], strides = [1, 1]} : vector<32x256xbf16> to vector<16x256xbf16>
    %cst_84 = arith.constant dense<0.000000e+00> : vector<16x256xf32>
    %277 = tpu.matmul %275, %276, %cst_84 {dimension_numbers = #tpu.dot_dimension_numbers<[1], [0], [0], [1], [0, 0, 1, 1], [], []>} : vector<16x16xbf16>, vector<16x256xbf16>, vector<16x256xf32> -> vector<16x256xf32>
    %278 = arith.addf %263, %277 : vector<16x256xf32>
    %279 = vector.extract_strided_slice %1 {offsets = [16, 240], sizes = [16, 16], strides = [1, 1]} : vector<32x400xbf16> to vector<16x16xbf16>
    %280 = vector.extract_strided_slice %274 {offsets = [16, 0], sizes = [16, 256], strides = [1, 1]} : vector<32x256xbf16> to vector<16x256xbf16>
    %cst_85 = arith.constant dense<0.000000e+00> : vector<16x256xf32>
    %281 = tpu.matmul %279, %280, %cst_85 {dimension_numbers = #tpu.dot_dimension_numbers<[1], [0], [0], [1], [0, 0, 1, 1], [], []>} : vector<16x16xbf16>, vector<16x256xbf16>, vector<16x256xf32> -> vector<16x256xf32>
    %282 = arith.addf %267, %281 : vector<16x256xf32>
    %c0_86 = arith.constant 0 : index
    %c0_87 = arith.constant 0 : index
    %c49 = arith.constant 49 : index
    %283 = vector.load %arg1[%c0_86, %c0_87, %c49] : memref<1x32x384xf32, #tpu.memory_space<vmem>>, vector<1x32x256xf32>
    %284 = vector.shape_cast %283 : vector<1x32x256xf32> to vector<32x256xf32>
    %285 = arith.truncf %284 : vector<32x256xf32> to vector<32x256xbf16>
    %286 = vector.extract_strided_slice %2 {offsets = [1, 0, 0], sizes = [1, 1, 256], strides = [1, 1, 1]} : vector<5x1x256xbf16> to vector<1x1x256xbf16>
    %287 = vector.shape_cast %286 : vector<1x1x256xbf16> to vector<1x256xbf16>
    %288 = vector.broadcast %287 : vector<1x256xbf16> to vector<32x256xbf16>
    %289 = arith.mulf %285, %288 : vector<32x256xbf16>
    %290 = vector.extract_strided_slice %0 {offsets = [0, 96], sizes = [16, 16], strides = [1, 1]} : vector<32x144xbf16> to vector<16x16xbf16>
    %291 = vector.extract_strided_slice %289 {offsets = [0, 0], sizes = [16, 256], strides = [1, 1]} : vector<32x256xbf16> to vector<16x256xbf16>
    %cst_88 = arith.constant dense<0.000000e+00> : vector<16x256xf32>
    %292 = tpu.matmul %290, %291, %cst_88 {dimension_numbers = #tpu.dot_dimension_numbers<[1], [0], [0], [1], [0, 0, 1, 1], [], []>} : vector<16x16xbf16>, vector<16x256xbf16>, vector<16x256xf32> -> vector<16x256xf32>
    %293 = arith.addf %240, %292 : vector<16x256xf32>
    %294 = vector.extract_strided_slice %0 {offsets = [16, 96], sizes = [16, 16], strides = [1, 1]} : vector<32x144xbf16> to vector<16x16xbf16>
    %295 = vector.extract_strided_slice %289 {offsets = [16, 0], sizes = [16, 256], strides = [1, 1]} : vector<32x256xbf16> to vector<16x256xbf16>
    %cst_89 = arith.constant dense<0.000000e+00> : vector<16x256xf32>
    %296 = tpu.matmul %294, %295, %cst_89 {dimension_numbers = #tpu.dot_dimension_numbers<[1], [0], [0], [1], [0, 0, 1, 1], [], []>} : vector<16x16xbf16>, vector<16x256xbf16>, vector<16x256xf32> -> vector<16x256xf32>
    %297 = arith.addf %244, %296 : vector<16x256xf32>
    %298 = vector.extract_strided_slice %1 {offsets = [0, 256], sizes = [16, 16], strides = [1, 1]} : vector<32x400xbf16> to vector<16x16xbf16>
    %299 = vector.extract_strided_slice %289 {offsets = [0, 0], sizes = [16, 256], strides = [1, 1]} : vector<32x256xbf16> to vector<16x256xbf16>
    %cst_90 = arith.constant dense<0.000000e+00> : vector<16x256xf32>
    %300 = tpu.matmul %298, %299, %cst_90 {dimension_numbers = #tpu.dot_dimension_numbers<[1], [0], [0], [1], [0, 0, 1, 1], [], []>} : vector<16x16xbf16>, vector<16x256xbf16>, vector<16x256xf32> -> vector<16x256xf32>
    %301 = arith.addf %278, %300 : vector<16x256xf32>
    %302 = vector.extract_strided_slice %1 {offsets = [16, 256], sizes = [16, 16], strides = [1, 1]} : vector<32x400xbf16> to vector<16x16xbf16>
    %303 = vector.extract_strided_slice %289 {offsets = [16, 0], sizes = [16, 256], strides = [1, 1]} : vector<32x256xbf16> to vector<16x256xbf16>
    %cst_91 = arith.constant dense<0.000000e+00> : vector<16x256xf32>
    %304 = tpu.matmul %302, %303, %cst_91 {dimension_numbers = #tpu.dot_dimension_numbers<[1], [0], [0], [1], [0, 0, 1, 1], [], []>} : vector<16x16xbf16>, vector<16x256xbf16>, vector<16x256xf32> -> vector<16x256xf32>
    %305 = arith.addf %282, %304 : vector<16x256xf32>
    %c0_92 = arith.constant 0 : index
    %c0_93 = arith.constant 0 : index
    %c50 = arith.constant 50 : index
    %306 = vector.load %arg1[%c0_92, %c0_93, %c50] : memref<1x32x384xf32, #tpu.memory_space<vmem>>, vector<1x32x256xf32>
    %307 = vector.shape_cast %306 : vector<1x32x256xf32> to vector<32x256xf32>
    %308 = arith.truncf %307 : vector<32x256xf32> to vector<32x256xbf16>
    %309 = vector.extract_strided_slice %0 {offsets = [0, 112], sizes = [16, 16], strides = [1, 1]} : vector<32x144xbf16> to vector<16x16xbf16>
    %310 = vector.extract_strided_slice %308 {offsets = [0, 0], sizes = [16, 256], strides = [1, 1]} : vector<32x256xbf16> to vector<16x256xbf16>
    %cst_94 = arith.constant dense<0.000000e+00> : vector<16x256xf32>
    %311 = tpu.matmul %309, %310, %cst_94 {dimension_numbers = #tpu.dot_dimension_numbers<[1], [0], [0], [1], [0, 0, 1, 1], [], []>} : vector<16x16xbf16>, vector<16x256xbf16>, vector<16x256xf32> -> vector<16x256xf32>
    %312 = arith.addf %293, %311 : vector<16x256xf32>
    %313 = vector.extract_strided_slice %0 {offsets = [16, 112], sizes = [16, 16], strides = [1, 1]} : vector<32x144xbf16> to vector<16x16xbf16>
    %314 = vector.extract_strided_slice %308 {offsets = [16, 0], sizes = [16, 256], strides = [1, 1]} : vector<32x256xbf16> to vector<16x256xbf16>
    %cst_95 = arith.constant dense<0.000000e+00> : vector<16x256xf32>
    %315 = tpu.matmul %313, %314, %cst_95 {dimension_numbers = #tpu.dot_dimension_numbers<[1], [0], [0], [1], [0, 0, 1, 1], [], []>} : vector<16x16xbf16>, vector<16x256xbf16>, vector<16x256xf32> -> vector<16x256xf32>
    %316 = arith.addf %297, %315 : vector<16x256xf32>
    %317 = vector.extract_strided_slice %1 {offsets = [0, 272], sizes = [16, 16], strides = [1, 1]} : vector<32x400xbf16> to vector<16x16xbf16>
    %318 = vector.extract_strided_slice %308 {offsets = [0, 0], sizes = [16, 256], strides = [1, 1]} : vector<32x256xbf16> to vector<16x256xbf16>
    %cst_96 = arith.constant dense<0.000000e+00> : vector<16x256xf32>
    %319 = tpu.matmul %317, %318, %cst_96 {dimension_numbers = #tpu.dot_dimension_numbers<[1], [0], [0], [1], [0, 0, 1, 1], [], []>} : vector<16x16xbf16>, vector<16x256xbf16>, vector<16x256xf32> -> vector<16x256xf32>
    %320 = arith.addf %301, %319 : vector<16x256xf32>
    %321 = vector.extract_strided_slice %1 {offsets = [16, 272], sizes = [16, 16], strides = [1, 1]} : vector<32x400xbf16> to vector<16x16xbf16>
    %322 = vector.extract_strided_slice %308 {offsets = [16, 0], sizes = [16, 256], strides = [1, 1]} : vector<32x256xbf16> to vector<16x256xbf16>
    %cst_97 = arith.constant dense<0.000000e+00> : vector<16x256xf32>
    %323 = tpu.matmul %321, %322, %cst_97 {dimension_numbers = #tpu.dot_dimension_numbers<[1], [0], [0], [1], [0, 0, 1, 1], [], []>} : vector<16x16xbf16>, vector<16x256xbf16>, vector<16x256xf32> -> vector<16x256xf32>
    %324 = arith.addf %305, %323 : vector<16x256xf32>
    %c0_98 = arith.constant 0 : index
    %c0_99 = arith.constant 0 : index
    %c51 = arith.constant 51 : index
    %325 = vector.load %arg1[%c0_98, %c0_99, %c51] : memref<1x32x384xf32, #tpu.memory_space<vmem>>, vector<1x32x256xf32>
    %326 = vector.shape_cast %325 : vector<1x32x256xf32> to vector<32x256xf32>
    %327 = arith.truncf %326 : vector<32x256xf32> to vector<32x256xbf16>
    %328 = vector.extract_strided_slice %2 {offsets = [3, 0, 0], sizes = [1, 1, 256], strides = [1, 1, 1]} : vector<5x1x256xbf16> to vector<1x1x256xbf16>
    %329 = vector.shape_cast %328 : vector<1x1x256xbf16> to vector<1x256xbf16>
    %330 = vector.broadcast %329 : vector<1x256xbf16> to vector<32x256xbf16>
    %331 = arith.mulf %327, %330 : vector<32x256xbf16>
    %332 = vector.extract_strided_slice %0 {offsets = [0, 128], sizes = [16, 16], strides = [1, 1]} : vector<32x144xbf16> to vector<16x16xbf16>
    %333 = vector.extract_strided_slice %331 {offsets = [0, 0], sizes = [16, 256], strides = [1, 1]} : vector<32x256xbf16> to vector<16x256xbf16>
    %cst_100 = arith.constant dense<0.000000e+00> : vector<16x256xf32>
    %334 = tpu.matmul %332, %333, %cst_100 {dimension_numbers = #tpu.dot_dimension_numbers<[1], [0], [0], [1], [0, 0, 1, 1], [], []>} : vector<16x16xbf16>, vector<16x256xbf16>, vector<16x256xf32> -> vector<16x256xf32>
    %335 = arith.addf %312, %334 : vector<16x256xf32>
    %336 = vector.extract_strided_slice %0 {offsets = [16, 128], sizes = [16, 16], strides = [1, 1]} : vector<32x144xbf16> to vector<16x16xbf16>
    %337 = vector.extract_strided_slice %331 {offsets = [16, 0], sizes = [16, 256], strides = [1, 1]} : vector<32x256xbf16> to vector<16x256xbf16>
    %cst_101 = arith.constant dense<0.000000e+00> : vector<16x256xf32>
    %338 = tpu.matmul %336, %337, %cst_101 {dimension_numbers = #tpu.dot_dimension_numbers<[1], [0], [0], [1], [0, 0, 1, 1], [], []>} : vector<16x16xbf16>, vector<16x256xbf16>, vector<16x256xf32> -> vector<16x256xf32>
    %339 = arith.addf %316, %338 : vector<16x256xf32>
    %340 = vector.extract_strided_slice %1 {offsets = [0, 288], sizes = [16, 16], strides = [1, 1]} : vector<32x400xbf16> to vector<16x16xbf16>
    %341 = vector.extract_strided_slice %331 {offsets = [0, 0], sizes = [16, 256], strides = [1, 1]} : vector<32x256xbf16> to vector<16x256xbf16>
    %cst_102 = arith.constant dense<0.000000e+00> : vector<16x256xf32>
    %342 = tpu.matmul %340, %341, %cst_102 {dimension_numbers = #tpu.dot_dimension_numbers<[1], [0], [0], [1], [0, 0, 1, 1], [], []>} : vector<16x16xbf16>, vector<16x256xbf16>, vector<16x256xf32> -> vector<16x256xf32>
    %343 = arith.addf %320, %342 : vector<16x256xf32>
    %344 = vector.extract_strided_slice %1 {offsets = [16, 288], sizes = [16, 16], strides = [1, 1]} : vector<32x400xbf16> to vector<16x16xbf16>
    %345 = vector.extract_strided_slice %331 {offsets = [16, 0], sizes = [16, 256], strides = [1, 1]} : vector<32x256xbf16> to vector<16x256xbf16>
    %cst_103 = arith.constant dense<0.000000e+00> : vector<16x256xf32>
    %346 = tpu.matmul %344, %345, %cst_103 {dimension_numbers = #tpu.dot_dimension_numbers<[1], [0], [0], [1], [0, 0, 1, 1], [], []>} : vector<16x16xbf16>, vector<16x256xbf16>, vector<16x256xf32> -> vector<16x256xf32>
    %347 = arith.addf %324, %346 : vector<16x256xf32>
    %c0_104 = arith.constant 0 : index
    %c0_105 = arith.constant 0 : index
    %c52 = arith.constant 52 : index
    %348 = vector.load %arg1[%c0_104, %c0_105, %c52] : memref<1x32x384xf32, #tpu.memory_space<vmem>>, vector<1x32x256xf32>
    %349 = vector.shape_cast %348 : vector<1x32x256xf32> to vector<32x256xf32>
    %350 = arith.truncf %349 : vector<32x256xf32> to vector<32x256xbf16>
    %351 = vector.extract_strided_slice %2 {offsets = [4, 0, 0], sizes = [1, 1, 256], strides = [1, 1, 1]} : vector<5x1x256xbf16> to vector<1x1x256xbf16>
    %352 = vector.shape_cast %351 : vector<1x1x256xbf16> to vector<1x256xbf16>
    %353 = vector.broadcast %352 : vector<1x256xbf16> to vector<32x256xbf16>
    %354 = arith.mulf %350, %353 : vector<32x256xbf16>
    %355 = vector.extract_strided_slice %1 {offsets = [0, 304], sizes = [16, 16], strides = [1, 1]} : vector<32x400xbf16> to vector<16x16xbf16>
    %356 = vector.extract_strided_slice %354 {offsets = [0, 0], sizes = [16, 256], strides = [1, 1]} : vector<32x256xbf16> to vector<16x256xbf16>
    %cst_106 = arith.constant dense<0.000000e+00> : vector<16x256xf32>
    %357 = tpu.matmul %355, %356, %cst_106 {dimension_numbers = #tpu.dot_dimension_numbers<[1], [0], [0], [1], [0, 0, 1, 1], [], []>} : vector<16x16xbf16>, vector<16x256xbf16>, vector<16x256xf32> -> vector<16x256xf32>
    %358 = arith.addf %343, %357 : vector<16x256xf32>
    %359 = vector.extract_strided_slice %1 {offsets = [16, 304], sizes = [16, 16], strides = [1, 1]} : vector<32x400xbf16> to vector<16x16xbf16>
    %360 = vector.extract_strided_slice %354 {offsets = [16, 0], sizes = [16, 256], strides = [1, 1]} : vector<32x256xbf16> to vector<16x256xbf16>
    %cst_107 = arith.constant dense<0.000000e+00> : vector<16x256xf32>
    %361 = tpu.matmul %359, %360, %cst_107 {dimension_numbers = #tpu.dot_dimension_numbers<[1], [0], [0], [1], [0, 0, 1, 1], [], []>} : vector<16x16xbf16>, vector<16x256xbf16>, vector<16x256xf32> -> vector<16x256xf32>
    %362 = arith.addf %347, %361 : vector<16x256xf32>
    %c0_108 = arith.constant 0 : index
    %c0_109 = arith.constant 0 : index
    %c64 = arith.constant 64 : index
    %363 = vector.load %arg1[%c0_108, %c0_109, %c64] : memref<1x32x384xf32, #tpu.memory_space<vmem>>, vector<1x32x256xf32>
    %364 = vector.shape_cast %363 : vector<1x32x256xf32> to vector<32x256xf32>
    %365 = arith.truncf %364 : vector<32x256xf32> to vector<32x256xbf16>
    %366 = vector.extract_strided_slice %2 {offsets = [0, 0, 0], sizes = [1, 1, 256], strides = [1, 1, 1]} : vector<5x1x256xbf16> to vector<1x1x256xbf16>
    %367 = vector.shape_cast %366 : vector<1x1x256xbf16> to vector<1x256xbf16>
    %368 = vector.broadcast %367 : vector<1x256xbf16> to vector<32x256xbf16>
    %369 = arith.mulf %365, %368 : vector<32x256xbf16>
    %370 = vector.extract_strided_slice %1 {offsets = [0, 320], sizes = [16, 16], strides = [1, 1]} : vector<32x400xbf16> to vector<16x16xbf16>
    %371 = vector.extract_strided_slice %369 {offsets = [0, 0], sizes = [16, 256], strides = [1, 1]} : vector<32x256xbf16> to vector<16x256xbf16>
    %cst_110 = arith.constant dense<0.000000e+00> : vector<16x256xf32>
    %372 = tpu.matmul %370, %371, %cst_110 {dimension_numbers = #tpu.dot_dimension_numbers<[1], [0], [0], [1], [0, 0, 1, 1], [], []>} : vector<16x16xbf16>, vector<16x256xbf16>, vector<16x256xf32> -> vector<16x256xf32>
    %373 = arith.addf %358, %372 : vector<16x256xf32>
    %374 = vector.extract_strided_slice %1 {offsets = [16, 320], sizes = [16, 16], strides = [1, 1]} : vector<32x400xbf16> to vector<16x16xbf16>
    %375 = vector.extract_strided_slice %369 {offsets = [16, 0], sizes = [16, 256], strides = [1, 1]} : vector<32x256xbf16> to vector<16x256xbf16>
    %cst_111 = arith.constant dense<0.000000e+00> : vector<16x256xf32>
    %376 = tpu.matmul %374, %375, %cst_111 {dimension_numbers = #tpu.dot_dimension_numbers<[1], [0], [0], [1], [0, 0, 1, 1], [], []>} : vector<16x16xbf16>, vector<16x256xbf16>, vector<16x256xf32> -> vector<16x256xf32>
    %377 = arith.addf %362, %376 : vector<16x256xf32>
    %c0_112 = arith.constant 0 : index
    %c0_113 = arith.constant 0 : index
    %c65 = arith.constant 65 : index
    %378 = vector.load %arg1[%c0_112, %c0_113, %c65] : memref<1x32x384xf32, #tpu.memory_space<vmem>>, vector<1x32x256xf32>
    %379 = vector.shape_cast %378 : vector<1x32x256xf32> to vector<32x256xf32>
    %380 = arith.truncf %379 : vector<32x256xf32> to vector<32x256xbf16>
    %381 = vector.extract_strided_slice %2 {offsets = [1, 0, 0], sizes = [1, 1, 256], strides = [1, 1, 1]} : vector<5x1x256xbf16> to vector<1x1x256xbf16>
    %382 = vector.shape_cast %381 : vector<1x1x256xbf16> to vector<1x256xbf16>
    %383 = vector.broadcast %382 : vector<1x256xbf16> to vector<32x256xbf16>
    %384 = arith.mulf %380, %383 : vector<32x256xbf16>
    %385 = vector.extract_strided_slice %1 {offsets = [0, 336], sizes = [16, 16], strides = [1, 1]} : vector<32x400xbf16> to vector<16x16xbf16>
    %386 = vector.extract_strided_slice %384 {offsets = [0, 0], sizes = [16, 256], strides = [1, 1]} : vector<32x256xbf16> to vector<16x256xbf16>
    %cst_114 = arith.constant dense<0.000000e+00> : vector<16x256xf32>
    %387 = tpu.matmul %385, %386, %cst_114 {dimension_numbers = #tpu.dot_dimension_numbers<[1], [0], [0], [1], [0, 0, 1, 1], [], []>} : vector<16x16xbf16>, vector<16x256xbf16>, vector<16x256xf32> -> vector<16x256xf32>
    %388 = arith.addf %373, %387 : vector<16x256xf32>
    %389 = vector.extract_strided_slice %1 {offsets = [16, 336], sizes = [16, 16], strides = [1, 1]} : vector<32x400xbf16> to vector<16x16xbf16>
    %390 = vector.extract_strided_slice %384 {offsets = [16, 0], sizes = [16, 256], strides = [1, 1]} : vector<32x256xbf16> to vector<16x256xbf16>
    %cst_115 = arith.constant dense<0.000000e+00> : vector<16x256xf32>
    %391 = tpu.matmul %389, %390, %cst_115 {dimension_numbers = #tpu.dot_dimension_numbers<[1], [0], [0], [1], [0, 0, 1, 1], [], []>} : vector<16x16xbf16>, vector<16x256xbf16>, vector<16x256xf32> -> vector<16x256xf32>
    %392 = arith.addf %377, %391 : vector<16x256xf32>
    %c0_116 = arith.constant 0 : index
    %c0_117 = arith.constant 0 : index
    %c66 = arith.constant 66 : index
    %393 = vector.load %arg1[%c0_116, %c0_117, %c66] : memref<1x32x384xf32, #tpu.memory_space<vmem>>, vector<1x32x256xf32>
    %394 = vector.shape_cast %393 : vector<1x32x256xf32> to vector<32x256xf32>
    %395 = arith.truncf %394 : vector<32x256xf32> to vector<32x256xbf16>
    %396 = vector.extract_strided_slice %1 {offsets = [0, 352], sizes = [16, 16], strides = [1, 1]} : vector<32x400xbf16> to vector<16x16xbf16>
    %397 = vector.extract_strided_slice %395 {offsets = [0, 0], sizes = [16, 256], strides = [1, 1]} : vector<32x256xbf16> to vector<16x256xbf16>
    %cst_118 = arith.constant dense<0.000000e+00> : vector<16x256xf32>
    %398 = tpu.matmul %396, %397, %cst_118 {dimension_numbers = #tpu.dot_dimension_numbers<[1], [0], [0], [1], [0, 0, 1, 1], [], []>} : vector<16x16xbf16>, vector<16x256xbf16>, vector<16x256xf32> -> vector<16x256xf32>
    %399 = arith.addf %388, %398 : vector<16x256xf32>
    %400 = vector.extract_strided_slice %1 {offsets = [16, 352], sizes = [16, 16], strides = [1, 1]} : vector<32x400xbf16> to vector<16x16xbf16>
    %401 = vector.extract_strided_slice %395 {offsets = [16, 0], sizes = [16, 256], strides = [1, 1]} : vector<32x256xbf16> to vector<16x256xbf16>
    %cst_119 = arith.constant dense<0.000000e+00> : vector<16x256xf32>
    %402 = tpu.matmul %400, %401, %cst_119 {dimension_numbers = #tpu.dot_dimension_numbers<[1], [0], [0], [1], [0, 0, 1, 1], [], []>} : vector<16x16xbf16>, vector<16x256xbf16>, vector<16x256xf32> -> vector<16x256xf32>
    %403 = arith.addf %392, %402 : vector<16x256xf32>
    %c0_120 = arith.constant 0 : index
    %c0_121 = arith.constant 0 : index
    %c67 = arith.constant 67 : index
    %404 = vector.load %arg1[%c0_120, %c0_121, %c67] : memref<1x32x384xf32, #tpu.memory_space<vmem>>, vector<1x32x256xf32>
    %405 = vector.shape_cast %404 : vector<1x32x256xf32> to vector<32x256xf32>
    %406 = arith.truncf %405 : vector<32x256xf32> to vector<32x256xbf16>
    %407 = vector.extract_strided_slice %2 {offsets = [3, 0, 0], sizes = [1, 1, 256], strides = [1, 1, 1]} : vector<5x1x256xbf16> to vector<1x1x256xbf16>
    %408 = vector.shape_cast %407 : vector<1x1x256xbf16> to vector<1x256xbf16>
    %409 = vector.broadcast %408 : vector<1x256xbf16> to vector<32x256xbf16>
    %410 = arith.mulf %406, %409 : vector<32x256xbf16>
    %411 = vector.extract_strided_slice %1 {offsets = [0, 368], sizes = [16, 16], strides = [1, 1]} : vector<32x400xbf16> to vector<16x16xbf16>
    %412 = vector.extract_strided_slice %410 {offsets = [0, 0], sizes = [16, 256], strides = [1, 1]} : vector<32x256xbf16> to vector<16x256xbf16>
    %cst_122 = arith.constant dense<0.000000e+00> : vector<16x256xf32>
    %413 = tpu.matmul %411, %412, %cst_122 {dimension_numbers = #tpu.dot_dimension_numbers<[1], [0], [0], [1], [0, 0, 1, 1], [], []>} : vector<16x16xbf16>, vector<16x256xbf16>, vector<16x256xf32> -> vector<16x256xf32>
    %414 = arith.addf %399, %413 : vector<16x256xf32>
    %415 = vector.extract_strided_slice %1 {offsets = [16, 368], sizes = [16, 16], strides = [1, 1]} : vector<32x400xbf16> to vector<16x16xbf16>
    %416 = vector.extract_strided_slice %410 {offsets = [16, 0], sizes = [16, 256], strides = [1, 1]} : vector<32x256xbf16> to vector<16x256xbf16>
    %cst_123 = arith.constant dense<0.000000e+00> : vector<16x256xf32>
    %417 = tpu.matmul %415, %416, %cst_123 {dimension_numbers = #tpu.dot_dimension_numbers<[1], [0], [0], [1], [0, 0, 1, 1], [], []>} : vector<16x16xbf16>, vector<16x256xbf16>, vector<16x256xf32> -> vector<16x256xf32>
    %418 = arith.addf %403, %417 : vector<16x256xf32>
    %c0_124 = arith.constant 0 : index
    %c0_125 = arith.constant 0 : index
    %c68 = arith.constant 68 : index
    %419 = vector.load %arg1[%c0_124, %c0_125, %c68] : memref<1x32x384xf32, #tpu.memory_space<vmem>>, vector<1x32x256xf32>
    %420 = vector.shape_cast %419 : vector<1x32x256xf32> to vector<32x256xf32>
    %421 = arith.truncf %420 : vector<32x256xf32> to vector<32x256xbf16>
    %422 = vector.extract_strided_slice %2 {offsets = [4, 0, 0], sizes = [1, 1, 256], strides = [1, 1, 1]} : vector<5x1x256xbf16> to vector<1x1x256xbf16>
    %423 = vector.shape_cast %422 : vector<1x1x256xbf16> to vector<1x256xbf16>
    %424 = vector.broadcast %423 : vector<1x256xbf16> to vector<32x256xbf16>
    %425 = arith.mulf %421, %424 : vector<32x256xbf16>
    %426 = vector.extract_strided_slice %1 {offsets = [0, 384], sizes = [16, 16], strides = [1, 1]} : vector<32x400xbf16> to vector<16x16xbf16>
    %427 = vector.extract_strided_slice %425 {offsets = [0, 0], sizes = [16, 256], strides = [1, 1]} : vector<32x256xbf16> to vector<16x256xbf16>
    %cst_126 = arith.constant dense<0.000000e+00> : vector<16x256xf32>
    %428 = tpu.matmul %426, %427, %cst_126 {dimension_numbers = #tpu.dot_dimension_numbers<[1], [0], [0], [1], [0, 0, 1, 1], [], []>} : vector<16x16xbf16>, vector<16x256xbf16>, vector<16x256xf32> -> vector<16x256xf32>
    %429 = arith.addf %414, %428 : vector<16x256xf32>
    %430 = vector.extract_strided_slice %1 {offsets = [16, 384], sizes = [16, 16], strides = [1, 1]} : vector<32x400xbf16> to vector<16x16xbf16>
    %431 = vector.extract_strided_slice %425 {offsets = [16, 0], sizes = [16, 256], strides = [1, 1]} : vector<32x256xbf16> to vector<16x256xbf16>
    %cst_127 = arith.constant dense<0.000000e+00> : vector<16x256xf32>
    %432 = tpu.matmul %430, %431, %cst_127 {dimension_numbers = #tpu.dot_dimension_numbers<[1], [0], [0], [1], [0, 0, 1, 1], [], []>} : vector<16x16xbf16>, vector<16x256xbf16>, vector<16x256xf32> -> vector<16x256xf32>
    %433 = arith.addf %418, %432 : vector<16x256xf32>
    %434 = tpu.concatenate %335, %339 in 0 : vector<16x256xf32>, vector<16x256xf32> -> vector<32x256xf32>
    %435 = tpu.concatenate %429, %433 in 0 : vector<16x256xf32>, vector<16x256xf32> -> vector<32x256xf32>
    %436 = arith.addf %434, %435 : vector<32x256xf32>
    %cst_128 = arith.constant dense<0.000000e+00> : vector<32xf32>
    %437 = vector.multi_reduction <add>, %436, %cst_128 [1] : vector<32x256xf32> to vector<32xf32>
    %438 = vector.shape_cast %437 : vector<32xf32> to vector<32x1xf32>
    %cst_129 = arith.constant 3.906250e-03 : f32
    %439 = vector.broadcast %cst_129 : f32 to vector<32x1xf32>
    %440 = arith.mulf %438, %439 : vector<32x1xf32>
    %441 = arith.truncf %434 : vector<32x256xf32> to vector<32x256xbf16>
    %442 = arith.truncf %435 : vector<32x256xf32> to vector<32x256xbf16>
    %c0_130 = arith.constant 0 : index
    %c0_131 = arith.constant 0 : index
    %443 = vector.load %arg5[%c0_130, %c0_131] : memref<32x32xf32, #tpu.memory_space<vmem>>, vector<32x32xf32>
    %cst_132 = arith.constant dense<0.000000e+00> : vector<32x1xf32>
    %444 = tpu.matmul %443, %440, %cst_132 {dimension_numbers = #tpu.dot_dimension_numbers<[1], [0], [0], [1], [0, 0, 1, 1], [], []>} : vector<32x32xf32>, vector<32x1xf32>, vector<32x1xf32> -> vector<32x1xf32>
    %c0_133 = arith.constant 0 : index
    %c0_134 = arith.constant 0 : index
    %445 = vector.load %arg6[%c0_133, %c0_134] : memref<32x1xf32, #tpu.memory_space<vmem>>, vector<32x1xf32>
    %446 = arith.addf %444, %445 : vector<32x1xf32>
    %c0_135 = arith.constant 0 : index
    %c0_136 = arith.constant 0 : index
    %c0_137 = arith.constant 0 : index
    %447 = vector.load %arg7[%c0_135, %c0_136, %c0_137] : memref<2x32x32xf32, #tpu.memory_space<vmem>>, vector<1x32x32xf32>
    %448 = vector.shape_cast %447 : vector<1x32x32xf32> to vector<32x32xf32>
    %cst_138 = arith.constant dense<0.000000e+00> : vector<32x1xf32>
    %449 = tpu.matmul %448, %446, %cst_138 {dimension_numbers = #tpu.dot_dimension_numbers<[1], [0], [0], [1], [0, 0, 1, 1], [], []>} : vector<32x32xf32>, vector<32x1xf32>, vector<32x1xf32> -> vector<32x1xf32>
    %c0_139 = arith.constant 0 : index
    %c0_140 = arith.constant 0 : index
    %c0_141 = arith.constant 0 : index
    %450 = vector.load %arg8[%c0_139, %c0_140, %c0_141] : memref<2x32x1xf32, #tpu.memory_space<vmem>>, vector<1x32x1xf32>
    %451 = vector.shape_cast %450 : vector<1x32x1xf32> to vector<32x1xf32>
    %452 = arith.addf %449, %451 : vector<32x1xf32>
    %c1_142 = arith.constant 1 : index
    %c0_143 = arith.constant 0 : index
    %c0_144 = arith.constant 0 : index
    %453 = vector.load %arg7[%c1_142, %c0_143, %c0_144] : memref<2x32x32xf32, #tpu.memory_space<vmem>>, vector<1x32x32xf32>
    %454 = vector.shape_cast %453 : vector<1x32x32xf32> to vector<32x32xf32>
    %cst_145 = arith.constant dense<0.000000e+00> : vector<32x1xf32>
    %455 = tpu.matmul %454, %446, %cst_145 {dimension_numbers = #tpu.dot_dimension_numbers<[1], [0], [0], [1], [0, 0, 1, 1], [], []>} : vector<32x32xf32>, vector<32x1xf32>, vector<32x1xf32> -> vector<32x1xf32>
    %c1_146 = arith.constant 1 : index
    %c0_147 = arith.constant 0 : index
    %c0_148 = arith.constant 0 : index
    %456 = vector.load %arg8[%c1_146, %c0_147, %c0_148] : memref<2x32x1xf32, #tpu.memory_space<vmem>>, vector<1x32x1xf32>
    %457 = vector.shape_cast %456 : vector<1x32x1xf32> to vector<32x1xf32>
    %458 = arith.addf %455, %457 : vector<32x1xf32>
    %459 = arith.maximumf %452, %458 : vector<32x1xf32>
    %460 = arith.subf %452, %459 : vector<32x1xf32>
    %461 = math.exp %460 : vector<32x1xf32>
    %462 = arith.subf %458, %459 : vector<32x1xf32>
    %463 = math.exp %462 : vector<32x1xf32>
    %464 = arith.addf %461, %463 : vector<32x1xf32>
    %465 = tpu.reciprocal %464 {approx = true} : vector<32x1xf32> -> vector<32x1xf32>
    %466 = arith.mulf %461, %465 : vector<32x1xf32>
    %467 = arith.extf %441 : vector<32x256xbf16> to vector<32x256xf32>
    %468 = vector.broadcast %466 : vector<32x1xf32> to vector<32x256xf32>
    %469 = arith.mulf %468, %467 : vector<32x256xf32>
    %470 = arith.mulf %463, %465 : vector<32x1xf32>
    %471 = arith.extf %442 : vector<32x256xbf16> to vector<32x256xf32>
    %472 = vector.broadcast %470 : vector<32x1xf32> to vector<32x256xf32>
    %473 = arith.mulf %472, %471 : vector<32x256xf32>
    %474 = arith.addf %469, %473 : vector<32x256xf32>
    %cst_149 = arith.constant dense<0.000000e+00> : vector<32xf32>
    %475 = vector.multi_reduction <add>, %474, %cst_149 [1] : vector<32x256xf32> to vector<32xf32>
    %476 = vector.shape_cast %475 : vector<32xf32> to vector<32x1xf32>
    %cst_150 = arith.constant 3.906250e-03 : f32
    %477 = vector.broadcast %cst_150 : f32 to vector<32x1xf32>
    %478 = arith.mulf %476, %477 : vector<32x1xf32>
    %479 = vector.broadcast %478 : vector<32x1xf32> to vector<32x256xf32>
    %480 = arith.subf %474, %479 : vector<32x256xf32>
    %481 = arith.mulf %480, %480 : vector<32x256xf32>
    %cst_151 = arith.constant dense<0.000000e+00> : vector<32xf32>
    %482 = vector.multi_reduction <add>, %481, %cst_151 [1] : vector<32x256xf32> to vector<32xf32>
    %483 = vector.shape_cast %482 : vector<32xf32> to vector<32x1xf32>
    %cst_152 = arith.constant 3.906250e-03 : f32
    %484 = vector.broadcast %cst_152 : f32 to vector<32x1xf32>
    %485 = arith.mulf %483, %484 : vector<32x1xf32>
    %cst_153 = arith.constant 9.99999974E-6 : f32
    %486 = vector.broadcast %cst_153 : f32 to vector<32x1xf32>
    %487 = arith.addf %485, %486 : vector<32x1xf32>
    %488 = math.rsqrt %487 : vector<32x1xf32>
    %489 = vector.broadcast %488 : vector<32x1xf32> to vector<32x256xf32>
    %490 = arith.mulf %480, %489 : vector<32x256xf32>
    %c0_154 = arith.constant 0 : index
    %c0_155 = arith.constant 0 : index
    %491 = vector.load %arg9[%c0_154, %c0_155] : memref<32x1xf32, #tpu.memory_space<vmem>>, vector<32x1xf32>
    %492 = vector.broadcast %491 : vector<32x1xf32> to vector<32x256xf32>
    %493 = arith.mulf %490, %492 : vector<32x256xf32>
    %c0_156 = arith.constant 0 : index
    %c0_157 = arith.constant 0 : index
    %494 = vector.load %arg10[%c0_156, %c0_157] : memref<32x1xf32, #tpu.memory_space<vmem>>, vector<32x1xf32>
    %495 = vector.broadcast %494 : vector<32x1xf32> to vector<32x256xf32>
    %496 = arith.addf %493, %495 : vector<32x256xf32>
    %c0_158 = arith.constant 0 : index
    %c0_159 = arith.constant 0 : index
    %c0_160 = arith.constant 0 : index
    %497 = vector.load %arg11[%c0_158, %c0_159, %c0_160] : memref<1x32x256xf32, #tpu.memory_space<vmem>>, vector<1x32x256xf32>
    %498 = vector.shape_cast %497 : vector<1x32x256xf32> to vector<32x256xf32>
    %499 = vector.shape_cast %496 : vector<32x256xf32> to vector<1x32x256xf32>
    tpu.vector_store %arg11[%c0_158, %c0_159, %c0_160], %499 {strides = array<i32>} : memref<1x32x256xf32, #tpu.memory_space<vmem>>, vector<1x32x256xf32>,
    return
  }
  func.func @transform_0(%arg0: i32) -> (i32, i32, i32) {
    %c0_i32 = arith.constant 0 : i32
    %c0_i32_0 = arith.constant 0 : i32
    %c0_i32_1 = arith.constant 0 : i32
    return %arg0, %c0_i32, %c0_i32_0 : i32, i32, i32
  }
  func.func @transform_1(%arg0: i32) -> (i32, i32, i32) {
    %c0_i32 = arith.constant 0 : i32
    %c0_i32_0 = arith.constant 0 : i32
    %c0_i32_1 = arith.constant 0 : i32
    %c0_i32_2 = arith.constant 0 : i32
    return %c0_i32, %c0_i32_0, %c0_i32_1 : i32, i32, i32
  }
  func.func @transform_2(%arg0: i32) -> (i32, i32) {
    %c0_i32 = arith.constant 0 : i32
    %c0_i32_0 = arith.constant 0 : i32
    %c0_i32_1 = arith.constant 0 : i32
    return %c0_i32, %c0_i32_0 : i32, i32
  }
  func.func @transform_3(%arg0: i32) -> (i32, i32) {
    %c0_i32 = arith.constant 0 : i32
    %c0_i32_0 = arith.constant 0 : i32
    %c0_i32_1 = arith.constant 0 : i32
    return %c0_i32, %c0_i32_0 : i32, i32
  }
  func.func @transform_4(%arg0: i32) -> (i32, i32) {
    %c0_i32 = arith.constant 0 : i32
    %c0_i32_0 = arith.constant 0 : i32
    %c0_i32_1 = arith.constant 0 : i32
    return %c0_i32, %c0_i32_0 : i32, i32
  }
  func.func @transform_5(%arg0: i32) -> (i32, i32) {
    %c0_i32 = arith.constant 0 : i32
    %c0_i32_0 = arith.constant 0 : i32
    %c0_i32_1 = arith.constant 0 : i32
    return %c0_i32, %c0_i32_0 : i32, i32
  }
  func.func @transform_6(%arg0: i32) -> (i32, i32, i32) {
    %c0_i32 = arith.constant 0 : i32
    %c0_i32_0 = arith.constant 0 : i32
    %c0_i32_1 = arith.constant 0 : i32
    %c0_i32_2 = arith.constant 0 : i32
    return %c0_i32, %c0_i32_0, %c0_i32_1 : i32, i32, i32
  }
  func.func @transform_7(%arg0: i32) -> (i32, i32, i32) {
    %c0_i32 = arith.constant 0 : i32
    %c0_i32_0 = arith.constant 0 : i32
    %c0_i32_1 = arith.constant 0 : i32
    %c0_i32_2 = arith.constant 0 : i32
    return %c0_i32, %c0_i32_0, %c0_i32_1 : i32, i32, i32
  }
  func.func @transform_8(%arg0: i32) -> (i32, i32) {
    %c0_i32 = arith.constant 0 : i32
    %c0_i32_0 = arith.constant 0 : i32
    %c0_i32_1 = arith.constant 0 : i32
    return %c0_i32, %c0_i32_0 : i32, i32
  }
  func.func @transform_9(%arg0: i32) -> (i32, i32) {
    %c0_i32 = arith.constant 0 : i32
    %c0_i32_0 = arith.constant 0 : i32
    %c0_i32_1 = arith.constant 0 : i32
    return %c0_i32, %c0_i32_0 : i32, i32
  }
  func.func @transform_10(%arg0: i32) -> (i32, i32, i32) {
    %c0_i32 = arith.constant 0 : i32
    %c0_i32_0 = arith.constant 0 : i32
    %c0_i32_1 = arith.constant 0 : i32
    return %arg0, %c0_i32, %c0_i32_0 : i32, i32, i32
  }
}

</mosaic_0001>

<bundles_post_ra>
// kernel: tpu_custom_call.1
= control target key start
LH: loop header
LB: loop body
LE: loop exit
PB: predicated region body
PF: predicated region fallthrough
CT: control target
= control target key end

     0   :  { %15 = vsyncpa [#allocation3], 0  ;;  %s7898_s0 = inlined_call_operand.hbm [shape: f32[2,32,384], index: 0, kind: input, shape index: {}]   ;;  %s7899_s1 = inlined_call_operand.vmem [shape: bf16[5,1,256], index: 1, kind: input, shape index: {}]   ;;  %s7900_s2 = inlined_call_operand.vmem [shape: bf16[32,144], index: 2, kind: input, shape index: {}]   ;;  %s7901_s3 = inlined_call_operand.vmem [shape: bf16[32,400], index: 3, kind: input, shape index: {}]   ;;  %s7902_s4 = inlined_call_operand.vmem [shape: f32[32,32], index: 4, kind: input, shape index: {}]   ;;  %s7903_s5 = inlined_call_operand.vmem [shape: f32[32,1], index: 5, kind: input, shape index: {}]   ;;  %s7904_s6 = inlined_call_operand.vmem [shape: f32[2,32,32], index: 6, kind: input, shape index: {}]   ;;  %s7905_s7 = inlined_call_operand.vmem [shape: f32[2,32,1], index: 7, kind: input, shape index: {}]   ;;  %s7906_s8 = inlined_call_operand.vmem [shape: f32[32,1], index: 8, kind: input, shape index: {}]   ;;  %s7907_s9 = inlined_call_operand.vmem [shape: f32[32,1], index: 9, kind: input, shape index: {}]   ;;  %s7908_s10 = inlined_call_operand.hbm [shape: f32[2,32,256], index: 10, kind: output, shape index: {}]  }
   0x1   :  { %17 = vsyncpa [#allocation3 + $0x1], 0 }
   0x2   :  { %18 = vsyncpa [#allocation4], 0 }
   0x3   :  { %20 = vsyncpa [#allocation4 + $0x1], 0  ;;  %s6597_s13 = smov 0   ;;  %s6599_s14 = smov 0  }
   0x4   :  { %s6601_s15 = smov 0   ;;  %s6603_s16 = smov 0  }
   0x5 LB: > { %7927 = sst [smem:[#allocation8_spill]] %s6487_s15  ;;  %s6618_s17 = sadd.s32 4294967295, %s6491_s16   ;;  %s6491_s16 = sphi %s6603_s16, %s7947_s16   ;;  %s6487_s15 = sphi %s6601_s15, %s7949_s15   ;;  %s6483_s14 = sphi %s6599_s14, %s7951_s14   ;;  %s6479_s13 = sphi %s6597_s13, %s7950_s13  }
   0x6   : > { %s5779_s18 = sadd.s32 4294967294, %s6491_s16   ;;  %s6622_s19 = sadd.s32 1, %s6491_s16  }
   0x7   : > { %7928 = sst [smem:[#allocation9_spill]] %s6622_s19  ;;  %s33_s20 = sadd.s32 1, %s6487_s15 }
   0x8   : > { %s30_s21 = ssub.s32 %s6491_s16, %s6622_s19  ;;  %p40_p0 = scmp.ne.s32.totalorder %s6487_s15, %s6483_s14 }
   0x9   : > { %p31_p1 = scmp.eq.s32.totalorder %s30_s21, 0  ;;  %p41_p2 = scmp.eq.s32.totalorder %s6491_s16, 0 }
   0xa   : > { %p46_p3 = scmp.ne.s32.totalorder %s6483_s14, %s6479_s13  ;;  %p47_p4 = scmp.eq.s32.totalorder %s6618_s17, 0 }
   0xb   : > { %s6634_s22 = scalar_select %p31_p1, %s6487_s15, %s33_s20  }
   0xc   : > { %p42_p5 = por %p41_p2, %p40_p0  ;;  %p6636_p6 = por %p47_p4, %p46_p3 }
   0xd   : > { %7929 = sst [smem:[#allocation10_spill]] %s6634_s22  ;;  %p259_p7 = scmp.eq.s32.totalorder %s6618_s17, 1 }
   0xe   : > { %p265_p8 = scmp.eq.s32.totalorder %s5779_s18, 1  ;;  %p6260_p10 = scmp.lt.s32.totalorder %s6491_s16, 2 }
   0xf   : > { %p6643_p11 = por %p259_p7, %p40_p0  ;;  %s312_s26 = sand.u32 1, %s6487_s15  }
  0x10   : > { %p6647_p12 = por %p265_p8, %p46_p3  ;;  %s6246_s27 = smul.u32 1536, %s6491_s16 }
  0x11   : > { %s7931_s24 = scalar_select %p6643_p11, 1, 0 }
  0x12   : > { %s7932_s25 = scalar_select %p6647_p12, 1, 0 }
  0x13   : > { %s6245_s28 = smul.u32 96, %s312_s26  ;;  %s6656_s11 = scalar_lea.hbm %s7898_s0, %s6246_s27 }
  0x14   : > { %p6658_p13 = pnand %p6260_p10, %p42_p5  ;;  %s6664_s21 = scalar_lea.sflag [#allocation3], %s312_s26 }
  0x15   : > { %s316_s18 = scalar_lea.vmem [#allocation2], %s6245_s28  ;;  %s6395_s22 = scalar_lea.hbm %s6656_s11, 1536 }
  0x16   : > { %s323_s20 = sshll.u32 %s316_s18, 4  ;;  %p6396_p0 = scmp.ne.s32.totalorder %s6656_s11, %s6395_s22  ;;  %s6662_s20 = int_to_ptr.vmem [resolvable:$true] %s323_s20 }
  0x17   : > { %p6397_p1 = pneg %p6658_p13  ;;  %s6400_s30 = scalar_lea.hbm %s7898_s0, 3072 }
  0x18   : > { %p6401_p4 = scmp.lt.u32.totalorder %s6656_s11, %s7898_s0  ;;  %p6402_p5 = scmp.lt.u32.totalorder %s6400_s30, %s6395_s22 }
  0x19   : > { %p6398_p2 = pnand %p6397_p1, %p6396_p0  ;;  %p6404_p8 = scmp.lt.u32.totalorder %s6395_s22, %s6656_s11 }
  0x1a   : > { %p6403_p7 = por %p6402_p5, %p6401_p4 }
  0x1b   : > { %p6399_p3 = pneg %p6398_p2 }
  0x1c   : > { %p6405_p10 = por %p6404_p8, %p6403_p7 }
  0x1e   : > { %p6406_p9 = pnand %p6405_p10, %p6399_p3 }
  0x20   : > { %6409 = shalt.err (!%p6406_p9)
}
  0x21   : > { %s6410_s26 = scalar_lea.vmem %s6662_s20, 1536  ;;  %s6493_s28 = smov [#allocation2]  }
  0x22   : > { %p6411_p0 = scmp.ne.s32.totalorder %s6662_s20, %s6410_s26  ;;  %s6415_s18 = sshll.u32 %s6493_s28, 4  ;;  %s6416_s18 = int_to_ptr.vmem [resolvable:$false] %s6415_s18 }
  0x23   : > { %s6417_s15 = scalar_lea.vmem %s6416_s18, 3072  ;;  %p6418_p11 = scmp.lt.s32.totalorder %s6662_s20, %s6416_s18 }
  0x24   : > { %p6413_p2 = pnand %p6411_p0, %p6397_p1  ;;  %p6419_p4 = scmp.lt.s32.totalorder %s6417_s15, %s6410_s26 }
  0x26   : > { %p6414_p12 = pneg %p6413_p2  ;;  %p6420_p5 = por %p6419_p4, %p6418_p11 }
  0x28   : > { %p6421_p7 = pnand %p6420_p5, %p6414_p12 }
  0x2a   : > { %6424 = shalt.err (!%p6421_p7)
}
  0x2b   : > { %s6494_s19 = smov 384   ;;  %s6495_s22 = smov 24  }
  0x2c   : > { %6255 = dma.hbm_to_vmem [thread:$0]  (!%p6658_p13), %s6656_s11, 1536, %s6662_s20, %s6664_s21, %s6494_s19, %s6494_s19, %s6495_s22  }
  0x2d   : > { %p5783_p9 = scmp.ge.s32.totalorder %s6491_s16, 1  ;;  %p331_p1 = scmp.lt.s32.totalorder %s6491_s16, 3 }
  0x2f   : > { %p332_p3 = pnand %p5783_p9, %p331_p1 }
  0x31   : > { %335 = sbr.rel (%p332_p3) target bundleno = 2191 (0x88f), region = 60 }
  0x38   : > { %s6695_s27 = sand.u32 1, %s6483_s14  }
  0x39   : > { %s6247_s29 = smul.u32 96, %s6695_s27  ;;  %s338_s30 = scalar_lea.sflag [#allocation3], %s6695_s27 }
  0x3b   : > { %s6699_s26 = scalar_lea.vmem [#allocation2], %s6247_s29 }
  0x3c   : > { %6470 = dma.done.wait (%p6636_p6), %s338_s30, 1536  }
  0x3d   : > { %6472 = vsyncadd (%p6636_p6), %s338_s30, 4294965760  ;;  %v419_v0 = vlaneseq  ;;  %v6496_v1 = vmov 1966171168   ;;  %v6711_v9 = vld [vmem:[%s7901_s3] ss:$16 sps:$4 sm:$0xff]   ;;  %s6497_s19 = smov 112  }
  0x3e   : > { %v417_v2 = vunpack.c.l.s4 %v6496_v1  ;;  %v5786_v7 = vld.sshfl [vmem:[%s7899_s1 + $0x2] sm:$0x11 pattern:$0x75316420]  ;;  %525 = vrot.lane.b32.xlu1 %v6711_v9, %s6497_s19  ;;  %s6498_s30 = smov 1   ;;  %s6499_s11 = smov 3  }
  0x3f   : > { %v420_v3 = vshrl.u32 %v419_v0, 7  ;;  %v5798_v10 = vld.sshfl [vmem:[%s7899_s1 + $0x8] sm:$0x11 pattern:$0x75316420]  ;;  %v474_v13 = vcombine.high %v5786_v7, %v5786_v7  ;;  %s6500_s12 = smov 4  }
  0x40   : > { %v418_v4 = vunpack.c.0.s8 %v417_v2  ;;  %v5795_v12 = vld.sshfl [vmem:[%s7899_s1 + $0x6] sm:$0x11 pattern:$0x75316420]  ;;  %v1106_v14 = vcombine.high %v5798_v10, %v5798_v10  ;;  %s6501_s20 = smov 16   ;;  %v747_v40 = vld [vmem:[%s6699_s26 + $0x8] sm:$0xff] }
  0x41   : > { %v435_v6 = vsub.s32 0, %v420_v3  ;;  %v5785_v17 = vld.sshfl [vmem:[%s7899_s1] sm:$0x11 pattern:$0x75316420]  ;;  %v903_v18 = vcombine.high %v5795_v12, %v5795_v12  ;;  %s6502_s23 = smov 17  }
  0x42   : > { %v421_v5 = vsub.s32 %v418_v4, %v420_v3  ;;  %v415_v25 = vcombine.high %v5785_v17, %v5785_v17  ;;  %v750_v41 = vld [vmem:[%s6699_s26 + $0x20] sm:$0xff]  ;;  %v749_v45 = vld [vmem:[%s6699_s26 + $0x18] sm:$0xff]  ;;  %v748_v46 = vld [vmem:[%s6699_s26 + $0x10] sm:$0xff]  ;;  %s6503_s18 = smov 126   ;;  %s6504_s15 = smov 96   ;;  %vm509_vm0 = vcmask 7168  }
  0x43   : > { %v6755_v42 = vld [vmem:[%s7901_s3 + $0x20] ss:$16 sps:$4 sm:$0xff]   ;;  %v6758_v43 = vpack.c.bf16 %v750_v41, %v747_v40  ;;  %v751_v47 = vld [vmem:[%s6699_s26 + $0x28] sm:$0xff]  ;;  %v757_v50 = vld [vmem:[%s6699_s26 + $0x58] sm:$0xff]  ;;  %s6505_s22 = smov 19   ;;  %s7917_s29 = smov 80  }
  0x44   : > { %v481_v8 = vrot.slane %v5786_v7, %v421_v5  ;;  %v1113_v11 = vrot.slane %v5798_v10, %v421_v5  ;;  %v910_v16 = vrot.slane %v5795_v12, %v421_v5  ;;  %v422_v20 = vrot.slane %v5785_v17, %v421_v5  ;;  %v746_v44 = vld [vmem:[%s6699_s26] sm:$0xff]  ;;  %v753_v52 = vld [vmem:[%s6699_s26 + $0x38] sm:$0xff]  ;;  %v756_v53 = vld [vmem:[%s6699_s26 + $0x50] sm:$0xff]  ;;  %s6511_s21 = smov 48   ;;  %s6512_s28 = smov 127  }
  0x45   : > { %v1120_v21 = vrot.slane %v1106_v14, %v421_v5  ;;  %v917_v24 = vrot.slane %v903_v18, %v421_v5  ;;  %v488_v26 = vrot.slane %v474_v13, %v421_v5  ;;  %v429_v33 = vrot.slane %v415_v25, %v421_v5  ;;  %v754_v49 = vld [vmem:[%s6699_s26 + $0x40] sm:$0xff]  ;;  %v752_v55 = vld [vmem:[%s6699_s26 + $0x30] sm:$0xff]  ;;  %v755_v56 = vld [vmem:[%s6699_s26 + $0x48] sm:$0xff]  ;;  %s6506_s26 = smov 20   ;;  %p7944_p11 = scmp.ne.s32.totalorder %s7931_s24, 0 }
  0x46   : > { %v490_v15 = vpack.i.b16 %v481_v8, %v481_v8  ;;  %v1122_v19 = vpack.i.b16 %v1113_v11, %v1113_v11  ;;  %v919_v23 = vpack.i.b16 %v910_v16, %v910_v16  ;;  %v431_v29 = vpack.i.b16 %v422_v20, %v422_v20 }
  0x47   : > { %v926_v30 = vpack.i.b16 %v917_v24, %v917_v24  ;;  %v1129_v32 = vpack.i.b16 %v1120_v21, %v1120_v21  ;;  %v497_v35 = vpack.i.b16 %v488_v26, %v488_v26  ;;  %v438_v37 = vpack.i.b16 %v429_v33, %v429_v33 }
  0x48   : > { %v6724_v22 = vrot.slane %v490_v15, %v435_v6  ;;  %v6727_v27 = vrot.slane %v1122_v19, %v435_v6  ;;  %v6729_v28 = vrot.slane %v919_v23, %v435_v6  ;;  %v6735_v34 = vrot.slane %v431_v29, %v435_v6 }
  0x49   : > { %v6732_v31 = vrot.slane %v926_v30, %v435_v6  ;;  %v6738_v36 = vrot.slane %v1129_v32, %v435_v6  ;;  %v6742_v38 = vrot.slane %v497_v35, %v435_v6  ;;  %v6745_v39 = vrot.slane %v438_v37, %v435_v6 }
  0x4a   : > { %505 = vrot.lane.b32.xlu0 %v6724_v22, %s6498_s30  ;;  %7934 = vst [vmem:[#allocation11_spill] sm:$0xff] %v6727_v27  ;;  %934 = vrot.lane.b32.xlu1 %v6729_v28, %s6499_s11  ;;  %v6767_v48 = vpack.c.bf16 %v749_v45, %v746_v44  ;;  %v6772_v51 = vpack.c.bf16 %v751_v47, %v748_v46  ;;  %vm938_vm1 = vcmask 23552   ;;  %v7919_v33 = vmov 0  }
  0x4b   : > { %7935 = vst [vmem:[#allocation12_spill] sm:$0xff] %v6732_v31  ;;  %7936 = vst [vmem:[#allocation13_spill] sm:$0xff] %v6738_v36  ;;  %v6777_v54 = vpack.c.bf16 %v757_v50, %v754_v49  ;;  %v6782_v57 = vpack.c.bf16 %v756_v53, %v753_v52  ;;  %v6785_v58 = vpack.c.bf16 %v755_v56, %v752_v55  ;;  %689 = vmatprep.mubr.bf16.mxu1 %v7919_v33  ;;  %vm1141_vm2 = vcmask 31744  }
  0x4c   : > { %577 = vmatprep.mubr.bf16.mxu0 %v7919_v33  ;;  %6342 = vset.pattern.permute.xlu1 %v7919_v33  ;;  %vm541_vm3 = vcmask 130048   ;;  %vm1453_vm4 = vcmask 138240   ;;  %vm1928_vm5 = vcmask 154624   ;;  %vm2180_vm6 = vcmask 162816  }
  0x4d   : > { %6341 = vset.pattern.permute.xlu0 %v7919_v33  ;;  %vm2326_vm7 = vcmask 261120   ;;  %vm536_vm8 = vcmask 1039360   ;;  %vm775_vm9 = vcmask 1031168   ;;  %vm960_vm10 = vcmask 1022976  }
  0x4e   : > { %1137 = vrot.lane.b32.xlu0 %v6727_v27, %s6500_s12  ;;  %936 = vrot.lane.b32.xlu1 %v6732_v31, %s6499_s11  ;;  %s6509_s11 = smov 110   ;;  %vm1163_vm11 = vcmask 1014784   ;;  %vm1329_vm12 = vcmask 916480   ;;  %vm2472_vm13 = vcmask 269312   ;;  %vm1475_vm14 = vcmask 908288  }
  0x4f   : > { %vm1611_vm15 = vcmask 900096  }
  0x52   : > { %1303 = vrot.lane.b32.xlu0 %v6735_v34, %s6501_s20  ;;  %1139 = vrot.lane.b32.xlu1 %v6738_v36, %s6500_s12  ;;  %s7915_s12 = smov 64  }
  0x56   : > { %507 = vrot.lane.b32.xlu0 %v6742_v38, %s6498_s30  ;;  %1305 = vrot.lane.b32.xlu1 %v6745_v39, %s6501_s20  ;;  %s7913_s30 = smov 32  }
  0x5a   : > { %1449 = vrot.lane.b32.xlu0 %v6724_v22, %s6502_s23  ;;  %639 = vrot.lane.b32.xlu1 %v6755_v42, %s6497_s19 }
  0x5e   : > { %771 = vrot.lane.b32.xlu0 %v6758_v43, %s6503_s18  ;;  %1451 = vrot.lane.b32.xlu1 %v6742_v38, %s6502_s23  ;;  %s6513_s23 = smov 125  }
  0x62   : > { %769 = vrot.lane.b32.xlu0 %v6767_v48, %s6503_s18  ;;  %773 = vrot.lane.b32.xlu1 %v6772_v51, %s6503_s18 }
  0x66   : > { %839 = vrot.lane.b32.xlu0 %v6777_v54, %s6503_s18  ;;  %837 = vrot.lane.b32.xlu1 %v6782_v57, %s6503_s18 }
  0x6a   : > { %835 = vrot.lane.b32.xlu0 %v6785_v58, %s6503_s18  ;;  %764 = vrot.lane.b32.xlu1 %v6711_v9, %s6504_s15  ;;  %s6514_s18 = smov 124  }
  0x6e   : > { %1924 = vrot.lane.b32.xlu0 %v6729_v28, %s6505_s22  ;;  %830 = vrot.lane.b32.xlu1 %v6755_v42, %s6504_s15 }
  0x72   : > { %2178 = vrot.lane.b32.xlu0 %v6738_v36, %s6506_s26  ;;  %949 = vrot.lane.b32.xlu1 %v6711_v9, %s7917_s29 }
  0x76   : > { %2324 = vrot.lane.b32.xlu0 %v6745_v39, %s7913_s30  ;;  %1015 = vrot.lane.b32.xlu1 %v6755_v42, %s7917_s29  ;;  %s6518_s29 = smov 109  }
  0x7a   : > { %1609 = vrot.lane.b32.xlu0 %v6772_v51, %s6509_s11  ;;  %1926 = vrot.lane.b32.xlu1 %v6732_v31, %s6505_s22  ;;  %s6515_s22 = smov 111  }
  0x7e   : > { %1605 = vrot.lane.b32.xlu0 %v6767_v48, %s6509_s11  ;;  %1152 = vrot.lane.b32.xlu1 %v6711_v9, %s7915_s12 }
  0x82   : > { %1218 = vrot.lane.b32.xlu1 %v6755_v42, %s7915_s12  ;;  %s6519_s12 = smov 35  }
  0x86   : > { %1318 = vrot.lane.b32.xlu1 %v6711_v9, %s6511_s21 }
  0x8a   : > { %2176 = vrot.lane.b32.xlu1 %v6727_v27, %s6506_s26  ;;  %s7938_s26 = smov 80  }
  0x8e   : > { %1384 = vrot.lane.b32.xlu1 %v6755_v42, %s6511_s21 }
  0x92   : > { %1464 = vrot.lane.b32.xlu1 %v6711_v9, %s7913_s30 }
  0x96   : > { %2322 = vrot.lane.b32.xlu1 %v6735_v34, %s7913_s30 }
  0x9a   : > { %1607 = vrot.lane.b32.xlu1 %v6758_v43, %s6509_s11 }
  0x9e   : > { %1530 = vrot.lane.b32.xlu1 %v6755_v42, %s7913_s30  ;;  %s6517_s30 = smov 33  }
  0xa2   : > { %1720 = vrot.lane.b32.xlu1 %v6782_v57, %s6509_s11 }
  0xb0   : > { %v6825_v59 = vpop.permute.xlu1 %525 }
  0xbc   : > { %v506_v60 = vpop.permute.xlu0 %505  ;;  %v935_v62 = vpop.permute.xlu1 %934 }
  0xbd   : > { %v514_v61 = vmul.bf16 %v6767_v48, %v506_v60  ;;  %v517_v0 = vmul.bf16 %v6785_v58, %v506_v60  ;;  %v943_v2 = vmul.bf16 %v935_v62, %v6767_v48  ;;  %v946_v7 = vmul.bf16 %v935_v62, %v6785_v58 }
  0xbf   : > { %530 = vrot.lane.b32.xlu0 %v514_v61, %s6512_s28  ;;  %v6917_v61 = vld [vmem:[%s7900_s2] ss:$8 sps:$4 sm:$0xff]  }
  0xc0   : > { %v1138_v63 = vpop.permute.xlu0 %1137  ;;  %v6830_v1 = vpop.permute.xlu1 %936 }
  0xc1   : > { %v1146_v10 = vmul.bf16 %v1138_v63, %v6767_v48  ;;  %v945_v11 = vmul.bf16 %v6830_v1, %v6772_v51  ;;  %v1149_v14 = vmul.bf16 %v1138_v63, %v6785_v58  ;;  %v939_v30 = vsel %vm938_vm1, %v935_v62, %v6830_v1 }
  0xc2   : > { %v947_v37 = vmul.bf16 %v939_v30, %v6782_v57  ;;  %v948_v49 = vmul.bf16 %v6830_v1, %v6777_v54  ;;  %vm1950_vm1 = vcmask 891904  }
  0xc3   : > { %644 = vrot.lane.b32.xlu0 %v517_v0, %s6512_s28 }
  0xc4   : > { %v1304_v3 = vpop.permute.xlu0 %1303  ;;  %v6834_v4 = vpop.permute.xlu1 %1139 }
  0xc5   : > { %v1148_v13 = vmul.bf16 %v6834_v4, %v6772_v51  ;;  %v1312_v16 = vmul.bf16 %v1304_v3, %v6767_v48  ;;  %v1315_v21 = vmul.bf16 %v1304_v3, %v6785_v58  ;;  %v1142_v40 = vsel %vm1141_vm2, %v1138_v63, %v6834_v4 }
  0xc6   : > { %v1150_v46 = vmul.bf16 %v1142_v40, %v6782_v57  ;;  %v1151_v56 = vmul.bf16 %v6834_v4, %v6777_v54  ;;  %v6938_v4 = vld [vmem:[%s7900_s2 + $0x10] ss:$8 sps:$4 sm:$0xff]   ;;  %vm2202_vm2 = vcmask 883712  }
  0xc7   : > { %954 = vrot.lane.b32.xlu0 %v943_v2, %s6513_s23 }
  0xc8   : > { %v508_v5 = vpop.permute.xlu0 %507  ;;  %v6839_v8 = vpop.permute.xlu1 %1305 }
  0xc9   : > { %v516_v6 = vmul.bf16 %v6772_v51, %v508_v5  ;;  %v1314_v17 = vmul.bf16 %v6839_v8, %v6772_v51  ;;  %v510_v23 = vsel %vm509_vm0, %v506_v60, %v508_v5  ;;  %v519_v45 = vmul.bf16 %v6777_v54, %v508_v5 }
  0xca   : > { %v518_v26 = vmul.bf16 %v6782_v57, %v510_v23  ;;  %v1308_v47 = vsel %vm541_vm3, %v1304_v3, %v6839_v8  ;;  %v1317_v0 = vmul.bf16 %v6839_v8, %v6777_v54  ;;  %v944_v8 = vmul.bf16 %v939_v30, %v6758_v43 }
  0xcb   : > { %534 = vrot.lane.b32.xlu1 %v516_v6, %s6512_s28  ;;  %1020 = vrot.lane.b32.xlu0 %v946_v7, %s6513_s23  ;;  %v1316_v50 = vmul.bf16 %v1308_v47, %v6782_v57  ;;  %v515_v6 = vmul.bf16 %v6758_v43, %v510_v23  ;;  %vm2951_vm0 = vcmask 285696  }
  0xcc   : > { %v6846_v12 = vpop.permute.xlu1 %639  ;;  %v1450_v20 = vpop.permute.xlu0 %1449 }
  0xcd   : > { %v1458_v25 = vmul.bf16 %v1450_v20, %v6767_v48  ;;  %v1461_v35 = vmul.bf16 %v1450_v20, %v6785_v58 }
  0xcf   : > { %1157 = vrot.lane.b32.xlu0 %v1146_v10, %s6514_s18  ;;  %958 = vrot.lane.b32.xlu1 %v945_v11, %s6513_s23  ;;  %v1147_v11 = vmul.bf16 %v1142_v40, %v6758_v43 }
  0xd0   : > { %v6853_v15 = vpop.permute.xlu1 %1451  ;;  %v6873_v29 = vpop.permute.xlu0 %771 }
  0xd1   : > { %v1460_v19 = vmul.bf16 %v6853_v15, %v6772_v51  ;;  %v1454_v55 = vsel %vm1453_vm4, %v1450_v20, %v6853_v15  ;;  %v1463_v1 = vmul.bf16 %v6853_v15, %v6777_v54  ;;  %vm3201_vm4 = vcmask 293888  }
  0xd2   : > { %v1462_v60 = vmul.bf16 %v1454_v55, %v6782_v57 }
  0xd3   : > { %1223 = vrot.lane.b32.xlu0 %v1149_v14, %s6514_s18  ;;  %1161 = vrot.lane.b32.xlu1 %v1148_v13, %s6514_s18  ;;  %v1313_v14 = vmul.bf16 %v1308_v47, %v6758_v43 }
  0xd4   : > { %v6860_v18 = vpop.permute.xlu1 %773  ;;  %v6889_v41 = vpop.permute.xlu0 %769 }
  0xd7   : > { %1323 = vrot.lane.b32.xlu0 %v1312_v16, %s6497_s19  ;;  %1327 = vrot.lane.b32.xlu1 %v1314_v17, %s6497_s19  ;;  %v1459_v16 = vmul.bf16 %v1454_v55, %v6758_v43 }
  0xd8   : > { %v6867_v24 = vpop.permute.xlu1 %837  ;;  %v6902_v52 = vpop.permute.xlu0 %839 }
  0xdb   : > { %1389 = vrot.lane.b32.xlu0 %v1315_v21, %s6497_s19  ;;  %1473 = vrot.lane.b32.xlu1 %v1460_v19, %s6515_s22 }
  0xdc   : > { %v6876_v32 = vpop.permute.xlu1 %764  ;;  %v6919_v62 = vpop.permute.xlu0 %835 }
  0xdf   : > { %1469 = vrot.lane.b32.xlu0 %v1458_v25, %s6515_s22  ;;  %646 = vrot.lane.b32.xlu1 %v518_v26, %s6512_s28 }
  0xe0   : > { %v6891_v44 = vpop.permute.xlu1 %830  ;;  %v6930_v2 = vpop.permute.xlu0 %1924 }
  0xe1   : > { %v1936_v55 = vmul.bf16 %v6930_v2, %v6785_v58 }
  0xe3   : > { %1535 = vrot.lane.b32.xlu0 %v1461_v35, %s6515_s22  ;;  %1022 = vrot.lane.b32.xlu1 %v947_v37, %s6513_s23  ;;  %v6989_v35 = vld [vmem:[%s7901_s3 + $0x4] ss:$16 sps:$4 sm:$0xff]  }
  0xe4   : > { %v6904_v53 = vpop.permute.xlu1 %949  ;;  %v2179_v19 = vpop.permute.xlu0 %2178  ;;  %v6997_v37 = vld [vmem:[%s7901_s3 + $0x24] ss:$16 sps:$4 sm:$0xff]  }
  0xe5   : > { %v2187_v21 = vmul.bf16 %v2179_v19, %v6772_v51 }
  0xe7   : > { %648 = vrot.lane.b32.xlu0 %v519_v45, %s6512_s28  ;;  %1225 = vrot.lane.b32.xlu1 %v1150_v46, %s6514_s18  ;;  %v1933_v46 = vmul.bf16 %v6930_v2, %v6767_v48 }
  0xe8   : > { %v6921_v63 = vpop.permute.xlu1 %1015  ;;  %v2325_v40 = vpop.permute.xlu0 %2324 }
  0xeb   : > { %1024 = vrot.lane.b32.xlu0 %v948_v49, %s6513_s23  ;;  %1391 = vrot.lane.b32.xlu1 %v1316_v50, %s6497_s19 }
  0xec   : > { %v1927_v3 = vpop.permute.xlu1 %1926  ;;  %v7007_v49 = vpop.permute.xlu0 %1609 }
  0xed   : > { %v1929_v5 = vsel %vm1928_vm5, %v6930_v2, %v1927_v3  ;;  %v1935_v30 = vmul.bf16 %v1927_v3, %v6772_v51  ;;  %v1938_v47 = vmul.bf16 %v1927_v3, %v6777_v54  ;;  %vm2348_vm5 = vcmask 785408  }
  0xee   : > { %v1934_v7 = vmul.bf16 %v1929_v5, %v6758_v43  ;;  %v1937_v13 = vmul.bf16 %v1929_v5, %v6782_v57 }
  0xef   : > { %1227 = vrot.lane.b32.xlu0 %v1151_v56, %s6514_s18  ;;  %1537 = vrot.lane.b32.xlu1 %v1462_v60, %s6515_s22  ;;  %v2333_v56 = vmul.bf16 %v2325_v40, %v6772_v51 }
  0xf0   : > { %v6949_v10 = vpop.permute.xlu1 %1152 }
  0xf3   : > { %1393 = vrot.lane.b32.xlu0 %v1317_v0, %s6497_s19  ;;  %1600 = vrot.lane.b32.xlu1 %v6917_v61, %s6497_s19  ;;  %v7017_v0 = vpop.permute.xlu0 %1605 }
  0xf4   : > { %v6957_v15 = vpop.permute.xlu1 %1218 }
  0xf7   : > { %1539 = vrot.lane.b32.xlu0 %v1463_v1, %s6515_s22  ;;  %2468 = vrot.lane.b32.xlu1 %v6724_v22, %s6517_s30 }
  0xf8   : > { %v6965_v17 = vpop.permute.xlu1 %1318 }
  0xfb   : > { %532 = vrot.lane.b32.xlu0 %v515_v6, %s6512_s28  ;;  %1713 = vrot.lane.b32.xlu1 %v6938_v4, %s6497_s19  ;;  %s6520_s28 = smov 108  }
  0xfc   : > { %v2177_v20 = vpop.permute.xlu1 %2176 }
  0xfd   : > { %v2181_v23 = vsel %vm2180_vm6, %v2177_v20, %v2179_v19  ;;  %vm2494_vm6 = vcmask 777216  }
  0xfe   : > { %v2189_v25 = vmul.bf16 %v2181_v23, %v6782_v57  ;;  %v2186_v5 = vmul.bf16 %v2181_v23, %v6758_v43 }
  0xff   : > { %956 = vrot.lane.b32.xlu0 %v944_v8, %s6513_s23  ;;  %1946 = vrot.lane.b32.xlu1 %v1934_v7, %s6518_s29  ;;  %v2185_v7 = vmul.bf16 %v2177_v20, %v6767_v48  ;;  %s6525_s23 = smov 93  }
 0x100   : > { %v6983_v26 = vpop.permute.xlu1 %1384 }
 0x103   : > { %1159 = vrot.lane.b32.xlu0 %v1147_v11, %s6514_s18  ;;  %1872 = vrot.lane.b32.xlu1 %v6755_v42, %s6501_s20  ;;  %s6526_s18 = smov 51  }
 0x104   : > { %v6999_v45 = vpop.permute.xlu1 %1464 }
 0x107   : > { %1325 = vrot.lane.b32.xlu0 %v1313_v14, %s6497_s19  ;;  %2012 = vrot.lane.b32.xlu1 %v1937_v13, %s6518_s29  ;;  %v2190_v14 = vmul.bf16 %v2179_v19, %v6777_v54 }
 0x108   : > { %v2323_v50 = vpop.permute.xlu1 %2322 }
 0x109   : > { %v2327_v60 = vsel %vm2326_vm7, %v2323_v50, %v2325_v40 }
 0x10a   : > { %v2335_v1 = vmul.bf16 %v2327_v60, %v6782_v57 }
 0x10b   : > { %1471 = vrot.lane.b32.xlu0 %v1459_v16, %s6515_s22  ;;  %1939 = vrot.lane.b32.xlu1 %v6917_v61, %s6504_s15  ;;  %v2188_v16 = vmul.bf16 %v2177_v20, %v6785_v58  ;;  %s6527_s22 = smov 92  }
 0x10c   : > { %v7020_v3 = vpop.permute.xlu1 %1607 }
 0x10f   : > { %1722 = vrot.lane.b32.xlu0 %v6777_v54, %s6509_s11  ;;  %2005 = vrot.lane.b32.xlu1 %v6938_v4, %s6504_s15 }
 0x110   : > { %v7028_v6 = vpop.permute.xlu1 %1530 }
 0x113   : > { %1718 = vrot.lane.b32.xlu0 %v6785_v58, %s6509_s11  ;;  %2949 = vrot.lane.b32.xlu1 %v6732_v31, %s6519_s12  ;;  %s7939_s11 = smov 64  }
 0x114   : > { %v7035_v11 = vpop.permute.xlu1 %1720 }
 0x117   : > { %2470 = vrot.lane.b32.xlu0 %v6742_v38, %s6517_s30  ;;  %2200 = vrot.lane.b32.xlu1 %v2187_v21, %s6520_s28  ;;  %s6521_s30 = smov 36  }
 0x11b   : > { %1820 = vrot.lane.b32.xlu0 %v6711_v9, %s6501_s20  ;;  %2264 = vrot.lane.b32.xlu1 %v2189_v25, %s6520_s28 }
 0x11f   : > { %1948 = vrot.lane.b32.xlu0 %v1935_v30, %s6518_s29  ;;  %2191 = vrot.lane.b32.xlu1 %v6989_v35, %s6497_s19 }
 0x123   : > { %1944 = vrot.lane.b32.xlu0 %v1933_v46, %s6518_s29  ;;  %2257 = vrot.lane.b32.xlu1 %v6997_v37, %s6497_s19 }
 0x127   : > { %2014 = vrot.lane.b32.xlu0 %v1938_v47, %s6518_s29  ;;  %3199 = vrot.lane.b32.xlu1 %v6738_v36, %s6521_s30  ;;  %v2332_v47 = vmul.bf16 %v2327_v60, %v6758_v43  ;;  %v2334_v60 = vmul.bf16 %v2323_v50, %v6785_v58 }
 0x12b   : > { %2010 = vrot.lane.b32.xlu0 %v1936_v55, %s6518_s29  ;;  %2346 = vrot.lane.b32.xlu1 %v2333_v56, %s6504_s15  ;;  %v2331_v55 = vmul.bf16 %v2323_v50, %v6767_v48  ;;  %v446_v50 = vmul.bf16 %v6785_v58, %v6735_v34  ;;  %s6522_s29 = smov 95  }
 0x12f   : > { %2947 = vrot.lane.b32.xlu0 %v6729_v28, %s6519_s12  ;;  %2410 = vrot.lane.b32.xlu1 %v2335_v1, %s6504_s15  ;;  %v2336_v1 = vmul.bf16 %v2325_v40, %v6777_v54  ;;  %v447_v40 = vmul.bf16 %v6782_v57, %v6745_v39  ;;  %s6523_s12 = smov 49  }
 0x131   : > { %v7025_v2 = vpop.permute.xlu0 %530 }
 0x133   : > { %2198 = vrot.lane.b32.xlu0 %v2186_v5, %s6520_s28  ;;  %2337 = vrot.lane.b32.xlu1 %v6989_v35, %s6504_s15 }
 0x135   : > { %v645_v8 = vpop.permute.xlu0 %644 }
 0x137   : > { %2196 = vrot.lane.b32.xlu0 %v2185_v7, %s6520_s28 }
 0x139   : > { %v7037_v13 = vpop.permute.xlu0 %954 }
 0x13b   : > { %2266 = vrot.lane.b32.xlu0 %v2190_v14, %s6520_s28 }
 0x13d   : > { %v7042_v21 = vpop.permute.xlu0 %1020  ;;  %v535_v23 = vpop.permute.xlu1 %534 }
 0x13f   : > { %2262 = vrot.lane.b32.xlu0 %v2188_v16, %s6520_s28  ;;  %s6524_s28 = smov 94  }
 0x141   : > { %v7045_v25 = vpop.permute.xlu0 %1157  ;;  %v7047_v30 = vpop.permute.xlu1 %958 }
 0x143   : > { %3197 = vrot.lane.b32.xlu0 %v6727_v27, %s6521_s30  ;;  %v7937_v27 = vmov 0   ;;  %s7941_s30 = smov 32  }
 0x145   : > { %v7050_v46 = vpop.permute.xlu0 %1223  ;;  %v7053_v19 = vpop.permute.xlu1 %1161 }
 0x147   : > { %2344 = vrot.lane.b32.xlu0 %v2332_v47, %s6504_s15 }
 0x149   : > { %v7057_v20 = vpop.permute.xlu0 %1323  ;;  %v7060_v56 = vpop.permute.xlu1 %1327 }
 0x14b   : > { %2342 = vrot.lane.b32.xlu0 %v2331_v55, %s6504_s15 }
 0x14d   : > { %v7063_v5 = vpop.permute.xlu0 %1389  ;;  %v7069_v14 = vpop.permute.xlu1 %1473 }
 0x14f   : > { %2412 = vrot.lane.b32.xlu0 %v2336_v1, %s6504_s15 }
 0x151   : > { %v7067_v7 = vpop.permute.xlu0 %1469  ;;  %v647_v47 = vpop.permute.xlu1 %646 }
 0x152   : > { %v650_v1 = vsel %vm536_vm8, %v645_v8, %v647_v47 }
 0x153   : > { %2408 = vrot.lane.b32.xlu0 %v2334_v60, %s6504_s15  ;;  %v842_v60 = vsel %vm775_vm9, %v6867_v24, %v6902_v52 }
 0x155   : > { %v7072_v16 = vpop.permute.xlu0 %1535 }
 0x159   : > { %v649_v55 = vpop.permute.xlu0 %648 }
 0x15a   : > { %v651_v33 = vsel %vm536_vm8, %v647_v47, %v649_v55 }
 0x15b   : > { %657 = vmatprep.subr.bf16.mxu1 %v651_v33  ;;  %v1023_v33 = vpop.permute.xlu1 %1022 }
 0x15c   : > { %658 = vmatpush1.bf16.msra.mxu1 %v650_v1 }
 0x15d   : > { %v1025_v36 = vpop.permute.xlu0 %1024  ;;  %703 = vmatprep.subr.bf16.mxu1 %v447_v40  ;;  %v841_v40 = vsel %vm775_vm9, %v6919_v62, %v6867_v24 }
 0x15f   : > { %5791 = vmatmul.mubr.msk.bf16.vlgmr.msra.gmra.mrb[0].mxu1 %vm541_vm3, %v6846_v12  ;;  %v1226_v47 = vpop.permute.xlu1 %1225  ;;  %v1027_v12 = vsel %vm960_vm10, %v1023_v33, %v1025_v36 }
 0x160   : > { %704 = vmatpush1.bf16.msra.mxu1 %v446_v50  ;;  %735 = vmatprep.mubr.bf16.mxu1 %v7937_v27 }
 0x161   : > { %v1228_v55 = vpop.permute.xlu0 %1227  ;;  %848 = vmatprep.subr.bf16.mxu1 %v842_v60  ;;  %v445_v60 = vmul.bf16 %v6758_v43, %v6745_v39 }
 0x163   : > { %v7095_v52 = vpop.permute.xlu1 %1391 }
 0x165   : > { %v1394_v8 = vpop.permute.xlu0 %1393 }
 0x167   : > { %v7104_v62 = vpop.permute.xlu1 %1537 }
 0x169   : > { %v7086_v1 = vpop.permute.xlu0 %1539 }
 0x16b   : > { %5792 = vmatmul.mubr.msk.bf16.vlgmr.msra.gmra.mrb[0].mxu1 %vm541_vm3, %v6755_v42  ;;  %v444_v42 = vmul.bf16 %v6767_v48, %v6735_v34 }
 0x16c   : > { %849 = vmatpush1.bf16.msra.mxu1 %v841_v40  ;;  %880 = vmatprep.mubr.bf16.mxu1 %v7937_v27  ;;  %v7120_v40 = vpop.permute.xlu1 %1600 }
 0x16d   : > { %1033 = vmatprep.subr.bf16.mxu1 %v1027_v12  ;;  %v533_v50 = vpop.permute.xlu0 %532 }
 0x16e   : > { %v538_v31 = vsel %vm536_vm8, %v533_v50, %v535_v23  ;;  %v537_v24 = vsel %vm536_vm8, %v7025_v2, %v533_v50  ;;  %v777_v23 = vsel %vm775_vm9, %v6873_v29, %v6860_v18  ;;  %vm3347_vm8 = vcmask 392192  }
 0x16f   : > { %545 = vmatprep.subr.bf16.mxu0 %v538_v31  ;;  %v1026_v31 = vsel %vm960_vm10, %v7042_v21, %v1023_v33 }
 0x170   : > { %546 = vmatpush1.bf16.msra.mxu0 %v537_v24  ;;  %v7129_v50 = vpop.permute.xlu1 %2468 }
 0x171   : > { %v957_v36 = vpop.permute.xlu0 %956  ;;  %591 = vmatprep.subr.bf16.mxu0 %v445_v60 }
 0x172   : > { %v962_v21 = vsel %vm960_vm10, %v957_v36, %v7047_v30 }
 0x173   : > { %5788 = vmatmul.mubr.msk.bf16.vlgmr.msra.gmra.mrb[0].mxu0 %vm541_vm3, %v6825_v59  ;;  %v1230_v59 = vsel %vm1163_vm11, %v1226_v47, %v1228_v55  ;;  %v1229_v55 = vsel %vm1163_vm11, %v7050_v46, %v1226_v47 }
 0x174   : > { %592 = vmatpush1.bf16.msra.mxu0 %v444_v42  ;;  %623 = vmatprep.mubr.bf16.mxu0 %v7937_v27 }
 0x175   : > { %v7112_v2 = vpop.permute.xlu0 %1159  ;;  %783 = vmatprep.subr.bf16.mxu0 %v777_v23  ;;  %v2477_v23 = vmul.bf16 %v7129_v50, %v6767_v48 }
 0x176   : > { %v1165_v47 = vsel %vm1163_vm11, %v7112_v2, %v7053_v19 }
 0x177   : > { %5794 = vmatmul.mubr.msk.bf16.vlgmr.msra.gmra.mrb[0].mxu1 %vm541_vm3, %v6891_v44  ;;  %v776_v44 = vsel %vm775_vm9, %v6889_v41, %v6873_v29  ;;  %v1396_v29 = vsel %vm1329_vm12, %v7095_v52, %v1394_v8  ;;  %v961_v8 = vsel %vm960_vm10, %v7037_v13, %v957_v36  ;;  %v1542_v13 = vsel %vm1475_vm14, %v7104_v62, %v7086_v1 }
 0x178   : > { %1034 = vmatpush1.bf16.msra.mxu1 %v1026_v31  ;;  %1065 = vmatprep.mubr.bf16.mxu1 %v7937_v27  ;;  %v1164_v31 = vsel %vm1163_vm11, %v7045_v25, %v7112_v2  ;;  %vm3493_vm9 = vcmask 400384   ;;  %vm2726_vm10 = vcmask 769024   ;;  %vm2973_vm11 = vcmask 760832  }
 0x179   : > { %1236 = vmatprep.subr.bf16.mxu1 %v1230_v59  ;;  %v7122_v18 = vpop.permute.xlu0 %1325 }
 0x17a   : > { %v1331_v59 = vsel %vm1329_vm12, %v7122_v18, %v7060_v56 }
 0x17d   : > { %v7124_v12 = vpop.permute.xlu0 %1471 }
 0x17f   : > { %5789 = vmatmul.mubr.msk.bf16.vlgmr.msra.gmra.mrb[0].mxu0 %vm541_vm3, %v6711_v9  ;;  %v7143_v9 = vpop.permute.xlu1 %1713 }
 0x180   : > { %784 = vmatpush1.bf16.msra.mxu0 %v776_v44  ;;  %815 = vmatprep.mubr.bf16.mxu0 %v7937_v27 }
 0x181   : > { %968 = vmatprep.subr.bf16.mxu0 %v962_v21  ;;  %v1723_v33 = vpop.permute.xlu0 %1722  ;;  %v2480_v21 = vmul.bf16 %v7129_v50, %v6785_v58 }
 0x182   : > { %v1725_v25 = vsel %vm1611_vm15, %v7035_v11, %v1723_v33 }
 0x183   : > { %5797 = vmatmul.mubr.msk.bf16.vlgmr.msra.gmra.mrb[0].mxu1 %vm541_vm3, %v6921_v63  ;;  %v7149_v24 = vpop.permute.xlu1 %1946 }
 0x184   : > { %1237 = vmatpush1.bf16.msra.mxu1 %v1229_v55  ;;  %1268 = vmatprep.mubr.bf16.mxu1 %v7937_v27 }
 0x185   : > { %1402 = vmatprep.subr.bf16.mxu1 %v1396_v29  ;;  %v7145_v41 = vpop.permute.xlu0 %1718 }
 0x187   : > { %v7175_v19 = vpop.permute.xlu1 %1872 }
 0x189   : > { %v2471_v30 = vpop.permute.xlu0 %2470 }
 0x18a   : > { %v2473_v60 = vsel %vm2472_vm13, %v7129_v50, %v2471_v30  ;;  %v2479_v63 = vmul.bf16 %v2471_v30, %v6772_v51  ;;  %v1477_v50 = vsel %vm1475_vm14, %v7124_v12, %v7069_v14  ;;  %vm3223_vm13 = vcmask 752640  }
 0x18b   : > { %v2478_v46 = vmul.bf16 %v2473_v60, %v6758_v43  ;;  %5793 = vmatmul.mubr.msk.bf16.vlgmr.msra.gmra.mrb[0].mxu0 %vm541_vm3, %v6876_v32  ;;  %v1395_v32 = vsel %vm1329_vm12, %v7063_v5, %v7095_v52  ;;  %v2482_v5 = vmul.bf16 %v2471_v30, %v6777_v54  ;;  %v7189_v1 = vpop.permute.xlu1 %2012  ;;  %v2481_v52 = vmul.bf16 %v2473_v60, %v6782_v57 }
 0x18c   : > { %969 = vmatpush1.bf16.msra.mxu0 %v961_v8  ;;  %2492 = vrot.lane.b32.xlu0 %v2479_v63, %s6522_s29 }
 0x18d   : > { %1171 = vmatprep.subr.bf16.mxu0 %v1165_v47  ;;  %v7160_v42 = vpop.permute.xlu0 %1820  ;;  %2490 = vrot.lane.b32.xlu1 %v2478_v46, %s6522_s29 }
 0x18e   : > { %1000 = vmatprep.mubr.bf16.mxu0 %v7937_v27 }
 0x18f   : > { %5800 = vmatmul.mubr.msk.bf16.vlgmr.msra.gmra.mrb[0].mxu1 %vm541_vm3, %v6957_v15  ;;  %v7215_v56 = vpop.permute.xlu1 %1939 }
 0x190   : > { %1403 = vmatpush1.bf16.msra.mxu1 %v1395_v32  ;;  %2488 = vrot.lane.b32.xlu0 %v2477_v23, %s6522_s29 }
 0x191   : > { %1548 = vmatprep.subr.bf16.mxu1 %v1542_v13  ;;  %v7177_v36 = vpop.permute.xlu0 %1948  ;;  %2403 = vrot.lane.b32.xlu1 %v6997_v37, %s6504_s15 }
 0x192   : > { %1434 = vmatprep.mubr.bf16.mxu1 %v7937_v27 }
 0x194   : > { %3345 = vrot.lane.b32.xlu0 %v6745_v39, %s6511_s21 }
 0x195   : > { %v7184_v15 = vpop.permute.xlu0 %1944  ;;  %3343 = vrot.lane.b32.xlu1 %v6735_v34, %s6511_s21 }
 0x197   : > { %5796 = vmatmul.mubr.msk.bf16.vlgmr.msra.gmra.mrb[0].mxu0 %vm541_vm3, %v6904_v53  ;;  %v1541_v53 = vsel %vm1475_vm14, %v7072_v16, %v7104_v62  ;;  %v7227_v16 = vpop.permute.xlu1 %2005  ;;  %v1330_v62 = vsel %vm1329_vm12, %v7057_v20, %v7122_v18  ;;  %v1613_v18 = vsel %vm1611_vm15, %v7020_v3, %v7007_v49  ;;  %vm3978_vm12 = vcmask 416768  }
 0x198   : > { %1172 = vmatpush1.bf16.msra.mxu0 %v1164_v31  ;;  %2558 = vrot.lane.b32.xlu0 %v2482_v5, %s6522_s29  ;;  %v1952_v5 = vsel %vm1950_vm1, %v7149_v24, %v7177_v36  ;;  %v7940_v31 = vld [vmem:[#allocation12_spill] sm:$0xff] }
 0x199   : > { %1337 = vmatprep.subr.bf16.mxu0 %v1331_v59  ;;  %v7201_v44 = vpop.permute.xlu0 %2014  ;;  %2556 = vrot.lane.b32.xlu1 %v2481_v52, %s6522_s29 }
 0x19a   : > { %1203 = vmatprep.mubr.bf16.mxu0 %v7937_v27  ;;  %v2017_v30 = vsel %vm1950_vm1, %v7189_v1, %v7201_v44 }
 0x19b   : > { %5802 = vmatmul.mubr.msk.bf16.vlgmr.msra.gmra.mrb[0].mxu1 %vm541_vm3, %v6983_v26  ;;  %v2950_v20 = vpop.permute.xlu1 %2949 }
 0x19c   : > { %1549 = vmatpush1.bf16.msra.mxu1 %v1541_v53  ;;  %2554 = vrot.lane.b32.xlu0 %v2480_v21, %s6522_s29  ;;  %v2958_v55 = vmul.bf16 %v2950_v20, %v6772_v51  ;;  %v2961_v63 = vmul.bf16 %v2950_v20, %v6777_v54  ;;  %s6528_s29 = smov 52  }
 0x19d   : > { %1731 = vmatprep.subr.bf16.mxu1 %v1725_v25  ;;  %v7217_v2 = vpop.permute.xlu0 %2010  ;;  %2483 = vrot.lane.b32.xlu1 %v6917_v61, %s7938_s26 }
 0x19e   : > { %1580 = vmatprep.mubr.bf16.mxu1 %v7937_v27  ;;  %v2016_v60 = vsel %vm1950_vm1, %v7217_v2, %v7189_v1 }
 0x1a0   : > { %3489 = vrot.lane.b32.xlu0 %v6724_v22, %s6523_s12 }
 0x1a1   : > { %v7223_v26 = vpop.permute.xlu0 %2947  ;;  %2549 = vrot.lane.b32.xlu1 %v6938_v4, %s7938_s26 }
 0x1a2   : > { %v2952_v49 = vsel %vm2951_vm0, %v7223_v26, %v2950_v20  ;;  %vm3515_vm0 = vcmask 646144  }
 0x1a3   : > { %5799 = vmatmul.mubr.msk.bf16.vlgmr.msra.gmra.mrb[0].mxu0 %vm541_vm3, %v6949_v10  ;;  %v1724_v10 = vsel %vm1611_vm15, %v7145_v41, %v7035_v11  ;;  %v7256_v11 = vpop.permute.xlu1 %2200  ;;  %v2957_v29 = vmul.bf16 %v2952_v49, %v6758_v43  ;;  %v2960_v46 = vmul.bf16 %v2952_v49, %v6782_v57 }
 0x1a4   : > { %1338 = vmatpush1.bf16.msra.mxu0 %v1330_v62  ;;  %2614 = vrot.lane.b32.xlu0 %v6989_v35, %s7938_s26 }
 0x1a5   : > { %1483 = vmatprep.subr.bf16.mxu0 %v1477_v50  ;;  %3491 = vrot.lane.b32.xlu1 %v6742_v38, %s6523_s12  ;;  %v7244_v33 = vpop.permute.xlu0 %2198  ;;  %s6529_s12 = smov 79  }
 0x1a6   : > { %1369 = vmatprep.mubr.bf16.mxu0 %v7937_v27 }
 0x1a7   : > { %5804 = vmatmul.mubr.msk.bf16.vlgmr.msra.gmra.mrb[0].mxu1 %vm541_vm3, %v7028_v6  ;;  %v1476_v6 = vsel %vm1475_vm14, %v7067_v7, %v7124_v12  ;;  %v7272_v7 = vpop.permute.xlu1 %2264  ;;  %vm4230_vm14 = vcmask 424960  }
 0x1a8   : > { %1732 = vmatpush1.bf16.msra.mxu1 %v1724_v10  ;;  %2724 = vrot.lane.b32.xlu0 %v6772_v51, %s6524_s28 }
 0x1a9   : > { %1777 = vmatprep.subr.bf16.mxu1 %v1542_v13  ;;  %2722 = vrot.lane.b32.xlu1 %v6758_v43, %s6524_s28  ;;  %v7252_v14 = vpop.permute.xlu0 %2196 }
 0x1aa   : > { %1763 = vmatprep.mubr.bf16.mxu1 %v7937_v27 }
 0x1ab   : > { %v7289_v41 = vpop.permute.xlu1 %2191 }
 0x1ac   : > { %2720 = vrot.lane.b32.xlu0 %v6767_v48, %s6524_s28 }
 0x1ad   : > { %2666 = vrot.lane.b32.xlu1 %v6997_v37, %s7938_s26 }
 0x1af   : > { %5801 = vmatmul.mubr.msk.bf16.vlgmr.msra.gmra.mrb[0].mxu0 %vm541_vm3, %v6965_v17  ;;  %5809 = vmatmul.mubr.msk.bf16.vlgmr.msra.gmra.mrb[4].mxu1 %vm541_vm3, %v7143_v9  ;;  %v2267_v17 = vpop.permute.xlu0 %2266  ;;  %v1612_v9 = vsel %vm1611_vm15, %v7017_v0, %v7020_v3  ;;  %v7304_v3 = vpop.permute.xlu1 %2257  ;;  %vm3369_vm15 = vcmask 654336  }
 0x1b0   : > { %1484 = vmatpush1.bf16.msra.mxu0 %v1476_v6  ;;  %1778 = vmatpush1.bf16.msra.mxu1 %v1541_v53  ;;  %v2269_v32 = vsel %vm2202_vm2, %v7272_v7, %v2267_v17 }
 0x1b1   : > { %1619 = vmatprep.subr.bf16.mxu0 %v1613_v18  ;;  %2787 = vrot.lane.b32.xlu0 %v6777_v54, %s6524_s28 }
 0x1b2   : > { %1877 = vmatprep.subr.bf16.mxu1 %v1725_v25  ;;  %2785 = vrot.lane.b32.xlu1 %v6782_v57, %s6524_s28  ;;  %v1951_v25 = vsel %vm1950_vm1, %v7184_v15, %v7149_v24  ;;  %v7942_v15 = vld [vmem:[#allocation11_spill] sm:$0xff]  ;;  %vm4376_vm1 = vcmask 523264  }
 0x1b3   : > { %1515 = vmatprep.mubr.bf16.mxu0 %v7937_v27  ;;  %1809 = vmatprep.mubr.bf16.mxu1 %v7937_v27  ;;  %v7278_v12 = vpop.permute.xlu0 %2262  ;;  %v3200_v47 = vpop.permute.xlu1 %3199 }
 0x1b4   : > { %v2268_v44 = vsel %vm2202_vm2, %v7278_v12, %v7272_v7  ;;  %v3208_v21 = vmul.bf16 %v3200_v47, %v6772_v51  ;;  %v3211_v2 = vmul.bf16 %v3200_v47, %v6777_v54 }
 0x1b5   : > { %2783 = vrot.lane.b32.xlu0 %v6785_v58, %s6524_s28  ;;  %s6530_s28 = smov 65  }
 0x1b6   : > { %2718 = vrot.lane.b32.xlu1 %v6917_v61, %s7939_s11 }
 0x1b7   : > { %v7298_v0 = vpop.permute.xlu0 %3197  ;;  %v2347_v13 = vpop.permute.xlu1 %2346 }
 0x1b8   : > { %v3206_v53 = vmul.bf16 %v7298_v0, %v6767_v48  ;;  %v3209_v62 = vmul.bf16 %v7298_v0, %v6785_v58 }
 0x1b9   : > { %2843 = vrot.lane.b32.xlu0 %v6989_v35, %s7939_s11 }
 0x1ba   : > { %2781 = vrot.lane.b32.xlu1 %v6938_v4, %s7939_s11 }
 0x1bb   : > { %5803 = vmatmul.mubr.msk.bf16.vlgmr.msra.gmra.mrb[0].mxu0 %vm541_vm3, %v6999_v45  ;;  %5810 = vmatmul.mubr.msk.bf16.vlgmr.msra.gmra.mrb[4].mxu1 %vm541_vm3, %v6938_v4  ;;  %v2956_v45 = vmul.bf16 %v7223_v26, %v6767_v48  ;;  %v7317_v8 = vpop.permute.xlu0 %2344  ;;  %v2411_v59 = vpop.permute.xlu1 %2410 }
 0x1bc   : > { %1620 = vmatpush1.bf16.msra.mxu0 %v1612_v9  ;;  %1878 = vmatpush1.bf16.msra.mxu1 %v1724_v10  ;;  %v7943_v10 = vld [vmem:[#allocation13_spill] sm:$0xff] }
 0x1bd   : > { %1665 = vmatprep.subr.bf16.mxu0 %v1477_v50  ;;  %2023 = vmatprep.subr.bf16.mxu1 %v2017_v30  ;;  %v2350_v50 = vsel %vm2348_vm5, %v7317_v8, %v2347_v13 }
 0x1be   : > { %2971 = vrot.lane.b32.xlu0 %v2958_v55, %s6525_s23  ;;  %2969 = vrot.lane.b32.xlu1 %v2957_v29, %s6525_s23 }
 0x1bf   : > { %1651 = vmatprep.mubr.bf16.mxu0 %v7937_v27  ;;  %1909 = vmatprep.mubr.bf16.mxu1 %v7937_v27  ;;  %v7325_v23 = vpop.permute.xlu0 %2342 }
 0x1c0   : > { %v2349_v20 = vsel %vm2348_vm5, %v7325_v23, %v7317_v8 }
 0x1c2   : > { %2967 = vrot.lane.b32.xlu0 %v2956_v45, %s6525_s23  ;;  %2895 = vrot.lane.b32.xlu1 %v6997_v37, %s7939_s11 }
 0x1c3   : > { %5806 = vmatmul.mubr.msk.bf16.vlgmr.msra.gmra.mrb[4].mxu0 %vm541_vm3, %v7120_v40  ;;  %5812 = vmatmul.mubr.msk.bf16.vlgmr.msra.gmra.mrb[0].mxu1 %vm541_vm3, %v7175_v19  ;;  %v2959_v40 = vmul.bf16 %v7223_v26, %v6785_v58  ;;  %v3202_v19 = vsel %vm3201_vm4, %v7298_v0, %v3200_v47  ;;  %v2413_v1 = vpop.permute.xlu0 %2412  ;;  %vm3753_vm4 = vcmask 637952  }
 0x1c4   : > { %1666 = vmatpush1.bf16.msra.mxu0 %v1476_v6  ;;  %2024 = vmatpush1.bf16.msra.mxu1 %v2016_v60  ;;  %v3207_v52 = vmul.bf16 %v3202_v19, %v6758_v43  ;;  %v2415_v36 = vsel %vm2348_vm5, %v2411_v59, %v2413_v1  ;;  %v3210_v26 = vmul.bf16 %v3202_v19, %v6782_v57 }
 0x1c5   : > { %1825 = vmatprep.subr.bf16.mxu0 %v1613_v18  ;;  %2129 = vmatprep.subr.bf16.mxu1 %v2017_v30 }
 0x1c6   : > { %3037 = vrot.lane.b32.xlu0 %v2961_v63, %s6525_s23  ;;  %3035 = vrot.lane.b32.xlu1 %v2960_v46, %s6525_s23 }
 0x1c7   : > { %2055 = vmatprep.mubr.bf16.mxu1 %v7937_v27  ;;  %1697 = vmatprep.mubr.bf16.mxu0 %v7937_v27 }
 0x1ca   : > { %3033 = vrot.lane.b32.xlu0 %v2959_v40, %s6525_s23  ;;  %2962 = vrot.lane.b32.xlu1 %v6917_v61, %s6511_s21  ;;  %s6531_s23 = smov 78  }
 0x1cb   : > { %5814 = vmatmul.mubr.msk.bf16.vlgmr.msra.gmra.mrb[4].mxu1 %vm541_vm3, %v7227_v16  ;;  %v2409_v16 = vpop.permute.xlu0 %2408 }
 0x1cc   : > { %2130 = vmatpush1.bf16.msra.mxu1 %v2016_v60  ;;  %2161 = vmatprep.mubr.bf16.mxu1 %v7937_v27  ;;  %v2414_v24 = vsel %vm2348_vm5, %v2409_v16, %v2411_v59  ;;  %vm4001_vm5 = vcmask 629760  }
 0x1cd   : > { %2275 = vmatprep.subr.bf16.mxu1 %v2269_v32 }
 0x1ce   : > { %3028 = vrot.lane.b32.xlu1 %v6938_v4, %s6511_s21  ;;  %3974 = vrot.lane.b32.xlu0 %v6729_v28, %s6526_s18 }
 0x1cf   : > { %5807 = vmatmul.mubr.msk.bf16.vlgmr.msra.gmra.mrb[4].mxu0 %vm541_vm3, %v6917_v61 }
 0x1d0   : > { %1826 = vmatpush1.bf16.msra.mxu0 %v1612_v9  ;;  %1857 = vmatprep.mubr.bf16.mxu0 %v7937_v27 }
 0x1d1   : > { %1958 = vmatprep.subr.bf16.mxu0 %v1952_v5 }
 0x1d2   : > { %3976 = vrot.lane.b32.xlu1 %v7940_v31, %s6526_s18  ;;  %3093 = vrot.lane.b32.xlu0 %v6989_v35, %s6511_s21  ;;  %s6532_s18 = smov 77  }
 0x1d3   : > { %5818 = vmatmul.mubr.msk.bf16.vlgmr.msra.gmra.mrb[0].mxu1 %vm541_vm3, %v6997_v37 }
 0x1d4   : > { %2276 = vmatpush1.bf16.msra.mxu1 %v2268_v44  ;;  %2307 = vmatprep.mubr.bf16.mxu1 %v7937_v27 }
 0x1d5   : > { %2421 = vmatprep.subr.bf16.mxu1 %v2415_v36 }
 0x1d6   : > { %3219 = vrot.lane.b32.xlu0 %v3207_v52, %s6527_s22  ;;  %3145 = vrot.lane.b32.xlu1 %v6997_v37, %s6511_s21 }
 0x1d7   : > { %5811 = vmatmul.mubr.msk.bf16.vlgmr.msra.gmra.mrb[0].mxu0 %vm541_vm3, %v7160_v42  ;;  %v2204_v42 = vsel %vm2202_vm2, %v7244_v33, %v7256_v11 }
 0x1d8   : > { %1959 = vmatpush1.bf16.msra.mxu0 %v1951_v25  ;;  %1990 = vmatprep.mubr.bf16.mxu0 %v7937_v27 }
 0x1d9   : > { %2076 = vmatprep.subr.bf16.mxu0 %v1952_v5 }
 0x1da   : > { %3217 = vrot.lane.b32.xlu0 %v3206_v53, %s6527_s22  ;;  %3221 = vrot.lane.b32.xlu1 %v3208_v21, %s6527_s22 }
 0x1de   : > { %3287 = vrot.lane.b32.xlu0 %v3211_v2, %s6527_s22  ;;  %3285 = vrot.lane.b32.xlu1 %v3210_v26, %s6527_s22 }
 0x1df   : > { %5813 = vmatmul.mubr.msk.bf16.vlgmr.msra.gmra.mrb[4].mxu0 %vm541_vm3, %v7215_v56  ;;  %5820 = vmatmul.mubr.msk.bf16.vlgmr.msra.gmra.mrb[0].mxu1 %vm541_vm3, %v7304_v3  ;;  %v2203_v56 = vsel %vm2202_vm2, %v7252_v14, %v7244_v33  ;;  %v2338_v33 = vpop.permute.xlu1 %2337  ;;  %vm4521_vm2 = vcmask 531456  }
 0x1e0   : > { %2077 = vmatpush1.bf16.msra.mxu0 %v1951_v25  ;;  %2422 = vmatpush1.bf16.msra.mxu1 %v2414_v24 }
 0x1e1   : > { %2210 = vmatprep.subr.bf16.mxu0 %v2204_v42  ;;  %2108 = vmatprep.mubr.bf16.mxu0 %v7937_v27 }
 0x1e2   : > { %3283 = vrot.lane.b32.xlu0 %v3209_v62, %s6527_s22  ;;  %3212 = vrot.lane.b32.xlu1 %v6989_v35, %s7941_s30  ;;  %s6539_s22 = smov 60  }
 0x1e3   : > { %2453 = vmatprep.mubr.bf16.mxu1 %v7937_v27 }
 0x1e6   : > { %3278 = vrot.lane.b32.xlu1 %v6997_v37, %s7941_s30  ;;  %4226 = vrot.lane.b32.xlu0 %v7942_v15, %s6528_s29 }
 0x1e7   : > { %5816 = vmatmul.mubr.msk.bf16.vlgmr.msra.gmra.mrb[0].mxu0 %vm541_vm3, %v6989_v35 }
 0x1e8   : > { %2211 = vmatpush1.bf16.msra.mxu0 %v2203_v56  ;;  %2242 = vmatprep.mubr.bf16.mxu0 %v7937_v27 }
 0x1e9   : > { %2356 = vmatprep.subr.bf16.mxu0 %v2350_v50 }
 0x1ea   : > { %4228 = vrot.lane.b32.xlu1 %v7943_v10, %s6528_s29 }
 0x1f3   : > { %5819 = vmatmul.mubr.msk.bf16.vlgmr.msra.gmra.mrb[0].mxu0 %vm541_vm3, %v7289_v41 }
 0x1f4   : > { %2357 = vmatpush1.bf16.msra.mxu0 %v2349_v20  ;;  %2388 = vmatprep.mubr.bf16.mxu0 %v7937_v27 }
 0x1fe   : > { %v2493_v14 = vpop.permute.xlu0 %2492 }
 0x1ff   : > { %5821 = vmatmul.mubr.msk.bf16.vlgmr.msra.gmra.mrb[0].mxu0 %vm541_vm3, %v2338_v33  ;;  %v2491_v11 = vpop.permute.xlu1 %2490 }
 0x200   : > { %v2496_v6 = vsel %vm2494_vm6, %v2491_v11, %v2493_v14  ;;  %2534 = vmatprep.mubr.bf16.mxu0 %v7937_v27 }
 0x201   : > { %2502 = vmatprep.subr.bf16.mxu0 %v2496_v6 }
 0x202   : > { %v2489_v18 = vpop.permute.xlu0 %2488 }
 0x203   : > { %v2495_v17 = vsel %vm2494_vm6, %v2489_v18, %v2491_v11  ;;  %v2404_v7 = vpop.permute.xlu1 %2403 }
 0x204   : > { %5822 = vmatmul.mubr.msk.bf16.vlgmr.msra.gmra.mrb[0].mxu1 %vm541_vm3, %v2404_v7  ;;  %2503 = vmatpush1.bf16.msra.mxu0 %v2495_v17  ;;  %v7478_v7 = vld [vmem:[%s7901_s3 + $0x8] ss:$16 sps:$4 sm:$0xff]  }
 0x205   : > { %2619 = vmatprep.subr.bf16.mxu0 %v2496_v6  ;;  %2599 = vmatprep.mubr.bf16.mxu1 %v7937_v27 }
 0x206   : > { %v3346_v49 = vpop.permute.xlu0 %3345 }
 0x207   : > { %v3354_v12 = vmul.bf16 %v3346_v49, %v6772_v51  ;;  %v3344_v55 = vpop.permute.xlu1 %3343  ;;  %v3357_v8 = vmul.bf16 %v3346_v49, %v6777_v54 }
 0x208   : > { %v3348_v29 = vsel %vm3347_vm8, %v3344_v55, %v3346_v49  ;;  %v3352_v3 = vmul.bf16 %v3344_v55, %v6767_v48  ;;  %v3355_v23 = vmul.bf16 %v3344_v55, %v6785_v58  ;;  %v6393_v49 = vld [vmem:[%s7900_s2] ss:$8 sps:$4 sm:$0xff]   ;;  %vm4938_vm8 = vcmask 556032  }
 0x209   : > { %v3353_v9 = vmul.bf16 %v3348_v29, %v6758_v43  ;;  %3367 = vrot.lane.b32.xlu1 %v3354_v12, %s7938_s26  ;;  %v3356_v30 = vmul.bf16 %v3348_v29, %v6782_v57  ;;  %v6394_v29 = vld [vmem:[%s7900_s2 + $0x10] ss:$8 sps:$4 sm:$0xff]  }
 0x20a   : > { %v2559_v41 = vpop.permute.xlu0 %2558 }
 0x20b   : > { %3365 = vrot.lane.b32.xlu0 %v3353_v9, %s7938_s26  ;;  %v2557_v0 = vpop.permute.xlu1 %2556 }
 0x20c   : > { %v2561_v45 = vsel %vm2494_vm6, %v2557_v0, %v2559_v41 }
 0x20d   : > { %3431 = vrot.lane.b32.xlu1 %v3356_v30, %s7938_s26  ;;  %2567 = vmatprep.subr.bf16.mxu1 %v2561_v45 }
 0x20e   : > { %v2555_v60 = vpop.permute.xlu0 %2554 }
 0x20f   : > { %v2560_v63 = vsel %vm2494_vm6, %v2555_v60, %v2557_v0  ;;  %3363 = vrot.lane.b32.xlu0 %v3352_v3, %s7938_s26  ;;  %v2484_v46 = vpop.permute.xlu1 %2483  ;;  %v7500_v3 = vld [vmem:[%s7901_s3 + $0x28] ss:$16 sps:$4 sm:$0xff]   ;;  %vm4792_vm6 = vcmask 547840  }
 0x210   : > { %5823 = vmatmul.mubr.msk.bf16.vlgmr.msra.gmra.mrb[4].mxu0 %vm541_vm3, %v2484_v46  ;;  %2568 = vmatpush1.bf16.msra.mxu1 %v2560_v63 }
 0x211   : > { %2620 = vmatpush1.bf16.msra.mxu0 %v2495_v17  ;;  %2671 = vmatprep.subr.bf16.mxu1 %v2561_v45 }
 0x212   : > { %v3490_v47 = vpop.permute.xlu0 %3489  ;;  %3358 = vrot.lane.b32.xlu1 %v6989_v35, %s6501_s20  ;;  %2651 = vmatprep.mubr.bf16.mxu0 %v7937_v27 }
 0x213   : > { %3433 = vrot.lane.b32.xlu0 %v3357_v8, %s7938_s26  ;;  %v2550_v40 = vpop.permute.xlu1 %2549  ;;  %v3498_v44 = vmul.bf16 %v3490_v47, %v6767_v48 }
 0x214   : > { %5824 = vmatmul.mubr.msk.bf16.vlgmr.msra.gmra.mrb[4].mxu1 %vm541_vm3, %v2550_v40 }
 0x215   : > { %2672 = vmatpush1.bf16.msra.mxu1 %v2560_v63  ;;  %2703 = vmatprep.mubr.bf16.mxu1 %v7937_v27 }
 0x216   : > { %v2615_v32 = vpop.permute.xlu0 %2614 }
 0x217   : > { %3429 = vrot.lane.b32.xlu0 %v3355_v23, %s7938_s26  ;;  %v3492_v13 = vpop.permute.xlu1 %3491 }
 0x218   : > { %v3494_v19 = vsel %vm3493_vm9, %v3490_v47, %v3492_v13  ;;  %v3500_v35 = vmul.bf16 %v3492_v13, %v6772_v51  ;;  %5825 = vmatmul.mubr.msk.bf16.vlgmr.msra.gmra.mrb[0].mxu0 %vm541_vm3, %v2615_v32  ;;  %v3503_v16 = vmul.bf16 %v3492_v13, %v6777_v54  ;;  %vm4252_vm9 = vcmask 621568  }
 0x219   : > { %v3499_v5 = vmul.bf16 %v3494_v19, %v6758_v43  ;;  %2766 = vmatprep.mubr.bf16.mxu0 %v7937_v27  ;;  %v3502_v26 = vmul.bf16 %v3494_v19, %v6782_v57 }
 0x21a   : > { %v2725_v1 = vpop.permute.xlu0 %2724 }
 0x21b   : > { %3513 = vrot.lane.b32.xlu0 %v3500_v35, %s6529_s12  ;;  %3511 = vrot.lane.b32.xlu1 %v3499_v5, %s6529_s12  ;;  %v2723_v52 = vpop.permute.xlu1 %2722 }
 0x21c   : > { %v2728_v59 = vsel %vm2726_vm10, %v2723_v52, %v2725_v1 }
 0x21d   : > { %2734 = vmatprep.subr.bf16.mxu0 %v2728_v59 }
 0x21e   : > { %v2721_v36 = vpop.permute.xlu0 %2720 }
 0x21f   : > { %v2727_v21 = vsel %vm2726_vm10, %v2721_v36, %v2723_v52  ;;  %3509 = vrot.lane.b32.xlu0 %v3498_v44, %s6529_s12  ;;  %3424 = vrot.lane.b32.xlu1 %v6997_v37, %s6501_s20  ;;  %v2667_v53 = vpop.permute.xlu1 %2666 }
 0x220   : > { %5826 = vmatmul.mubr.msk.bf16.vlgmr.msra.gmra.mrb[0].mxu1 %vm541_vm3, %v2667_v53  ;;  %2735 = vmatpush1.bf16.msra.mxu0 %v2727_v21 }
 0x221   : > { %2848 = vmatprep.subr.bf16.mxu0 %v2728_v59  ;;  %2828 = vmatprep.mubr.bf16.mxu1 %v7937_v27 }
 0x223   : > { %v2788_v25 = vpop.permute.xlu0 %2787  ;;  %4374 = vrot.lane.b32.xlu0 %v6745_v39, %s7939_s11  ;;  %4372 = vrot.lane.b32.xlu1 %v6735_v34, %s7939_s11  ;;  %v3501_v39 = vmul.bf16 %v3490_v47, %v6785_v58 }
 0x224   : > { %v2786_v2 = vpop.permute.xlu1 %2785 }
 0x225   : > { %v2790_v37 = vsel %vm2726_vm10, %v2786_v2, %v2788_v25 }
 0x226   : > { %2796 = vmatprep.subr.bf16.mxu1 %v2790_v37 }
 0x227   : > { %v2784_v62 = vpop.permute.xlu0 %2783  ;;  %3579 = vrot.lane.b32.xlu0 %v3503_v16, %s6529_s12  ;;  %3577 = vrot.lane.b32.xlu1 %v3502_v26, %s6529_s12 }
 0x228   : > { %v2789_v24 = vsel %vm2726_vm10, %v2784_v62, %v2786_v2  ;;  %v2719_v42 = vpop.permute.xlu1 %2718  ;;  %vm4543_vm10 = vcmask 515072  }
 0x229   : > { %5827 = vmatmul.mubr.msk.bf16.vlgmr.msra.gmra.mrb[4].mxu0 %vm541_vm3, %v2719_v42  ;;  %2797 = vmatpush1.bf16.msra.mxu1 %v2789_v24 }
 0x22a   : > { %2849 = vmatpush1.bf16.msra.mxu0 %v2727_v21  ;;  %2900 = vmatprep.subr.bf16.mxu1 %v2790_v37 }
 0x22b   : > { %v2844_v34 = vpop.permute.xlu0 %2843  ;;  %3575 = vrot.lane.b32.xlu0 %v3501_v39, %s6529_s12  ;;  %3504 = vrot.lane.b32.xlu1 %v6917_v61, %s7941_s30  ;;  %s6534_s12 = smov 68  }
 0x22c   : > { %v2782_v56 = vpop.permute.xlu1 %2781  ;;  %2880 = vmatprep.mubr.bf16.mxu0 %v7937_v27 }
 0x22d   : > { %5828 = vmatmul.mubr.msk.bf16.vlgmr.msra.gmra.mrb[4].mxu1 %vm541_vm3, %v2782_v56 }
 0x22e   : > { %2901 = vmatpush1.bf16.msra.mxu1 %v2789_v24  ;;  %2932 = vmatprep.mubr.bf16.mxu1 %v7937_v27 }
 0x22f   : > { %4517 = vrot.lane.b32.xlu0 %v6724_v22, %s6530_s28  ;;  %3570 = vrot.lane.b32.xlu1 %v6938_v4, %s7941_s30 }
 0x230   : > { %v2972_v50 = vpop.permute.xlu0 %2971  ;;  %v2970_v20 = vpop.permute.xlu1 %2969 }
 0x231   : > { %5829 = vmatmul.mubr.msk.bf16.vlgmr.msra.gmra.mrb[0].mxu0 %vm541_vm3, %v2844_v34  ;;  %v2975_v61 = vsel %vm2973_vm11, %v2970_v20, %v2972_v50 }
 0x232   : > { %2981 = vmatprep.subr.bf16.mxu0 %v2975_v61  ;;  %3013 = vmatprep.mubr.bf16.mxu0 %v7937_v27 }
 0x233   : > { %3749 = vrot.lane.b32.xlu0 %v6758_v43, %s6531_s23  ;;  %4519 = vrot.lane.b32.xlu1 %v6742_v38, %s6530_s28  ;;  %s6535_s28 = smov 76  }
 0x234   : > { %v2968_v33 = vpop.permute.xlu0 %2967  ;;  %v2896_v14 = vpop.permute.xlu1 %2895 }
 0x235   : > { %v2974_v22 = vsel %vm2973_vm11, %v2968_v33, %v2970_v20  ;;  %5830 = vmatmul.mubr.msk.bf16.vlgmr.msra.gmra.mrb[0].mxu1 %vm541_vm3, %v2896_v14 }
 0x236   : > { %2982 = vmatpush1.bf16.msra.mxu0 %v2974_v22  ;;  %3078 = vmatprep.mubr.bf16.mxu1 %v7937_v27 }
 0x237   : > { %3098 = vmatprep.subr.bf16.mxu0 %v2975_v61  ;;  %3747 = vrot.lane.b32.xlu0 %v6767_v48, %s6531_s23 }
 0x238   : > { %v3038_v4 = vpop.permute.xlu0 %3037  ;;  %3751 = vrot.lane.b32.xlu1 %v6772_v51, %s6531_s23  ;;  %v3036_v11 = vpop.permute.xlu1 %3035 }
 0x239   : > { %v3040_v6 = vsel %vm2973_vm11, %v3036_v11, %v3038_v4 }
 0x23a   : > { %3046 = vmatprep.subr.bf16.mxu1 %v3040_v6 }
 0x23b   : > { %3814 = vrot.lane.b32.xlu0 %v6777_v54, %s6531_s23 }
 0x23c   : > { %v3034_v38 = vpop.permute.xlu0 %3033  ;;  %3812 = vrot.lane.b32.xlu1 %v6782_v57, %s6531_s23  ;;  %v2963_v18 = vpop.permute.xlu1 %2962 }
 0x23d   : > { %v3039_v17 = vsel %vm2973_vm11, %v3034_v38, %v3036_v11  ;;  %5831 = vmatmul.mubr.msk.bf16.vlgmr.msra.gmra.mrb[4].mxu0 %vm541_vm3, %v2963_v18  ;;  %vm4671_vm11 = vcmask 506880  }
 0x23e   : > { %3047 = vmatpush1.bf16.msra.mxu1 %v3039_v17  ;;  %3099 = vmatpush1.bf16.msra.mxu0 %v2974_v22 }
 0x23f   : > { %3150 = vmatprep.subr.bf16.mxu1 %v3040_v6  ;;  %3810 = vrot.lane.b32.xlu0 %v6785_v58, %s6531_s23  ;;  %s5784_s23 = sshll.u32 %s6695_s27, 6 }
 0x240   : > { %3745 = vrot.lane.b32.xlu1 %v6393_v49, %s6501_s20  ;;  %v3029_v12 = vpop.permute.xlu1 %3028  ;;  %v3975_v55 = vpop.permute.xlu0 %3974  ;;  %3130 = vmatprep.mubr.bf16.mxu0 %v7937_v27 }
 0x241   : > { %5832 = vmatmul.mubr.msk.bf16.vlgmr.msra.gmra.mrb[4].mxu1 %vm541_vm3, %v3029_v12  ;;  %v3983_v46 = vmul.bf16 %v3975_v55, %v6767_v48  ;;  %v3986_v1 = vmul.bf16 %v3975_v55, %v6785_v58 }
 0x242   : > { %3151 = vmatpush1.bf16.msra.mxu1 %v3039_v17  ;;  %3182 = vmatprep.mubr.bf16.mxu1 %v7937_v27 }
 0x243   : > { %3870 = vrot.lane.b32.xlu0 %v7478_v7, %s6497_s19 }
 0x244   : > { %3808 = vrot.lane.b32.xlu1 %v6394_v29, %s6501_s20  ;;  %v3977_v9 = vpop.permute.xlu1 %3976  ;;  %v3094_v41 = vpop.permute.xlu0 %3093 }
 0x245   : > { %v3979_v30 = vsel %vm3978_vm12, %v3975_v55, %v3977_v9  ;;  %v3985_v0 = vmul.bf16 %v3977_v9, %v6772_v51  ;;  %5833 = vmatmul.mubr.msk.bf16.vlgmr.msra.gmra.mrb[0].mxu0 %vm541_vm3, %v3094_v41  ;;  %v3988_v40 = vmul.bf16 %v3977_v9, %v6777_v54  ;;  %vm4814_vm12 = vcmask 498688  }
 0x246   : > { %v3984_v45 = vmul.bf16 %v3979_v30, %v6758_v43  ;;  %3263 = vmatprep.mubr.bf16.mxu0 %v7937_v27  ;;  %v3987_v13 = vmul.bf16 %v3979_v30, %v6782_v57 }
 0x247   : > { %3999 = vrot.lane.b32.xlu0 %v3985_v0, %s6532_s18 }
 0x248   : > { %3997 = vrot.lane.b32.xlu1 %v3984_v45, %s6532_s18  ;;  %v3220_v60 = vpop.permute.xlu0 %3219  ;;  %v3146_v63 = vpop.permute.xlu1 %3145 }
 0x249   : > { %5834 = vmatmul.mubr.msk.bf16.vlgmr.msra.gmra.mrb[0].mxu1 %vm541_vm3, %v3146_v63 }
 0x24a   : > { %3328 = vmatprep.mubr.bf16.mxu1 %v7937_v27 }
 0x24b   : > { %3995 = vrot.lane.b32.xlu0 %v3983_v46, %s6532_s18 }
 0x24c   : > { %3922 = vrot.lane.b32.xlu1 %v7500_v3, %s6497_s19  ;;  %v3218_v8 = vpop.permute.xlu0 %3217  ;;  %v3222_v47 = vpop.permute.xlu1 %3221  ;;  %s6533_s19 = smov 67  }
 0x24d   : > { %v3224_v23 = vsel %vm3223_vm13, %v3218_v8, %v3220_v60  ;;  %v3225_v32 = vsel %vm3223_vm13, %v3220_v60, %v3222_v47 }
 0x24e   : > { %3231 = vmatprep.subr.bf16.mxu0 %v3225_v32 }
 0x24f   : > { %4066 = vrot.lane.b32.xlu0 %v3988_v40, %s6532_s18  ;;  %3232 = vmatpush1.bf16.msra.mxu0 %v3224_v23 }
 0x250   : > { %4064 = vrot.lane.b32.xlu1 %v3987_v13, %s6532_s18  ;;  %v3288_v19 = vpop.permute.xlu0 %3287  ;;  %v3286_v35 = vpop.permute.xlu1 %3285 }
 0x251   : > { %v3290_v5 = vsel %vm3223_vm13, %v3286_v35, %v3288_v19 }
 0x252   : > { %3296 = vmatprep.subr.bf16.mxu1 %v3290_v5 }
 0x253   : > { %4788 = vrot.lane.b32.xlu0 %v6729_v28, %s6533_s19 }
 0x254   : > { %4062 = vrot.lane.b32.xlu1 %v3986_v1, %s6532_s18  ;;  %v3284_v52 = vpop.permute.xlu0 %3283  ;;  %v3213_v59 = vpop.permute.xlu1 %3212  ;;  %s7836_s18 = scalar_lea.vmem [#allocation5], %s5784_s23 }
 0x255   : > { %v3289_v44 = vsel %vm3223_vm13, %v3284_v52, %v3286_v35  ;;  %5835 = vmatmul.mubr.msk.bf16.vlgmr.msra.gmra.mrb[0].mxu0 %vm541_vm3, %v3213_v59  ;;  %vm4961_vm13 = vcmask 490496  }
 0x256   : > { %3297 = vmatpush1.bf16.msra.mxu1 %v3289_v44  ;;  %3409 = vmatprep.mubr.bf16.mxu0 %v7937_v27 }
 0x257   : > { %4122 = vrot.lane.b32.xlu0 %v7478_v7, %s6504_s15 }
 0x258   : > { %4790 = vrot.lane.b32.xlu1 %v7940_v31, %s6533_s19  ;;  %v3279_v36 = vpop.permute.xlu1 %3278  ;;  %v4227_v21 = vpop.permute.xlu0 %4226 }
 0x259   : > { %5836 = vmatmul.mubr.msk.bf16.vlgmr.msra.gmra.mrb[0].mxu1 %vm541_vm3, %v3279_v36  ;;  %v4235_v31 = vmul.bf16 %v4227_v21, %v6767_v48 }
 0x25a   : > { %3474 = vmatprep.mubr.bf16.mxu1 %v7937_v27 }
 0x25b   : > { %4934 = vrot.lane.b32.xlu0 %v7942_v15, %s6534_s12  ;;  %v4238_v15 = vmul.bf16 %v4227_v21, %v6785_v58 }
 0x25c   : > { %4174 = vrot.lane.b32.xlu1 %v7500_v3, %s6504_s15  ;;  %v4229_v28 = vpop.permute.xlu1 %4228  ;;  %s6536_s15 = smov 63  }
 0x25d   : > { %v4231_v53 = vsel %vm4230_vm14, %v4227_v21, %v4229_v28  ;;  %v4237_v2 = vmul.bf16 %v4229_v28, %v6772_v51  ;;  %v4240_v16 = vmul.bf16 %v4229_v28, %v6777_v54 }
 0x25e   : > { %v4236_v25 = vmul.bf16 %v4231_v53, %v6758_v43  ;;  %v4239_v26 = vmul.bf16 %v4231_v53, %v6782_v57 }
 0x260   : > { %4936 = vrot.lane.b32.xlu1 %v7943_v10, %s6534_s12  ;;  %4248 = vrot.lane.b32.xlu0 %v4236_v25, %s6535_s28 }
 0x264   : > { %4246 = vrot.lane.b32.xlu0 %v4235_v31, %s6535_s28  ;;  %4250 = vrot.lane.b32.xlu1 %v4237_v2, %s6535_s28 }
 0x268   : > { %4316 = vrot.lane.b32.xlu0 %v4240_v16, %s6535_s28  ;;  %4314 = vrot.lane.b32.xlu1 %v4239_v26, %s6535_s28 }
 0x26c   : > { %4312 = vrot.lane.b32.xlu0 %v4238_v15, %s6535_s28  ;;  %4241 = vrot.lane.b32.xlu1 %v7478_v7, %s7938_s26 }
 0x270   : > { %4307 = vrot.lane.b32.xlu1 %v7500_v3, %s7938_s26  ;;  %s6537_s26 = smov 62  }
 0x27b   : > { %v3368_v10 = vpop.permute.xlu1 %3367 }
 0x27d   : > { %v3366_v37 = vpop.permute.xlu0 %3365 }
 0x27e   : > { %v3371_v62 = vsel %vm3369_vm15, %v3366_v37, %v3368_v10 }
 0x27f   : > { %3377 = vmatprep.subr.bf16.mxu0 %v3371_v62  ;;  %v3432_v24 = vpop.permute.xlu1 %3431 }
 0x281   : > { %v3364_v42 = vpop.permute.xlu0 %3363 }
 0x282   : > { %v3370_v39 = vsel %vm3369_vm15, %v3364_v42, %v3366_v37 }
 0x283   : > { %3378 = vmatpush1.bf16.msra.mxu0 %v3370_v39 }
 0x284   : > { %v3359_v34 = vpop.permute.xlu1 %3358 }
 0x285   : > { %v3434_v56 = vpop.permute.xlu0 %3433 }
 0x286   : > { %v3436_v50 = vsel %vm3369_vm15, %v3432_v24, %v3434_v56  ;;  %5837 = vmatmul.mubr.msk.bf16.vlgmr.msra.gmra.mrb[0].mxu0 %vm541_vm3, %v3359_v34  ;;  %v6357_v34 = vld [vmem:[%s7900_s2 + $0x4] ss:$8 sps:$4 sm:$0xff]  }
 0x287   : > { %3442 = vmatprep.subr.bf16.mxu1 %v3436_v50  ;;  %3555 = vmatprep.mubr.bf16.mxu0 %v7937_v27 }
 0x289   : > { %v3430_v20 = vpop.permute.xlu0 %3429 }
 0x28a   : > { %v3435_v61 = vsel %vm3369_vm15, %v3430_v20, %v3432_v24 }
 0x28b   : > { %3443 = vmatpush1.bf16.msra.mxu1 %v3435_v61 }
 0x28d   : > { %v3514_v33 = vpop.permute.xlu0 %3513  ;;  %v3512_v14 = vpop.permute.xlu1 %3511 }
 0x28e   : > { %v3517_v22 = vsel %vm3515_vm0, %v3512_v14, %v3514_v33 }
 0x28f   : > { %3523 = vmatprep.subr.bf16.mxu0 %v3517_v22 }
 0x291   : > { %v3510_v4 = vpop.permute.xlu0 %3509  ;;  %v3425_v11 = vpop.permute.xlu1 %3424 }
 0x292   : > { %v3516_v6 = vsel %vm3515_vm0, %v3510_v4, %v3512_v14  ;;  %5838 = vmatmul.mubr.msk.bf16.vlgmr.msra.gmra.mrb[0].mxu1 %vm541_vm3, %v3425_v11 }
 0x293   : > { %3524 = vmatpush1.bf16.msra.mxu0 %v3516_v6  ;;  %3620 = vmatprep.mubr.bf16.mxu1 %v7937_v27 }
 0x294   : > { %3643 = vmatprep.subr.bf16.mxu0 %v3517_v22  ;;  %v6358_v22 = vld [vmem:[%s7900_s2 + $0x14] ss:$8 sps:$4 sm:$0xff]  }
 0x295   : > { %v4375_v38 = vpop.permute.xlu0 %4374  ;;  %v4373_v18 = vpop.permute.xlu1 %4372 }
 0x296   : > { %v4383_v17 = vmul.bf16 %v4375_v38, %v6772_v51  ;;  %v4377_v49 = vsel %vm4376_vm1, %v4373_v18, %v4375_v38  ;;  %v4381_v30 = vmul.bf16 %v4373_v18, %v6767_v48  ;;  %v4386_v63 = vmul.bf16 %v4375_v38, %v6777_v54 }
 0x297   : > { %v4382_v12 = vmul.bf16 %v4377_v49, %v6758_v43  ;;  %v4385_v9 = vmul.bf16 %v4377_v49, %v6782_v57  ;;  %v4384_v47 = vmul.bf16 %v4373_v18, %v6785_v58 }
 0x298   : > { %4396 = vrot.lane.b32.xlu1 %v4383_v17, %s7939_s11 }
 0x299   : > { %v3580_v55 = vpop.permute.xlu0 %3579  ;;  %4394 = vrot.lane.b32.xlu0 %v4382_v12, %s7939_s11  ;;  %v3578_v29 = vpop.permute.xlu1 %3577 }
 0x29a   : > { %v3582_v41 = vsel %vm3515_vm0, %v3578_v29, %v3580_v55 }
 0x29b   : > { %3588 = vmatprep.subr.bf16.mxu1 %v3582_v41 }
 0x29c   : > { %4459 = vrot.lane.b32.xlu1 %v4385_v9, %s7939_s11 }
 0x29d   : > { %v3576_v0 = vpop.permute.xlu0 %3575  ;;  %4392 = vrot.lane.b32.xlu0 %v4381_v30, %s7939_s11  ;;  %v3505_v45 = vpop.permute.xlu1 %3504 }
 0x29e   : > { %v3581_v60 = vsel %vm3515_vm0, %v3576_v0, %v3578_v29  ;;  %5839 = vmatmul.mubr.msk.bf16.vlgmr.msra.gmra.mrb[4].mxu0 %vm541_vm3, %v3505_v45 }
 0x29f   : > { %3644 = vmatpush1.bf16.msra.mxu0 %v3516_v6  ;;  %3589 = vmatpush1.bf16.msra.mxu1 %v3581_v60 }
 0x2a0   : > { %4387 = vrot.lane.b32.xlu1 %v7478_v7, %s7939_s11  ;;  %3698 = vmatprep.subr.bf16.mxu1 %v3582_v41 }
 0x2a1   : > { %v4518_v46 = vpop.permute.xlu0 %4517  ;;  %4461 = vrot.lane.b32.xlu0 %v4386_v63, %s7939_s11  ;;  %v3571_v8 = vpop.permute.xlu1 %3570  ;;  %3675 = vmatprep.mubr.bf16.mxu0 %v7937_v27 }
 0x2a2   : > { %5840 = vmatmul.mubr.msk.bf16.vlgmr.msra.gmra.mrb[4].mxu1 %vm541_vm3, %v3571_v8  ;;  %v4526_v59 = vmul.bf16 %v4518_v46, %v6767_v48  ;;  %v4529_v26 = vmul.bf16 %v4518_v46, %v6785_v58 }
 0x2a3   : > { %3699 = vmatpush1.bf16.msra.mxu1 %v3581_v60  ;;  %3730 = vmatprep.mubr.bf16.mxu1 %v7937_v27 }
 0x2a4   : > { %4452 = vrot.lane.b32.xlu1 %v7500_v3, %s7939_s11 }
 0x2a5   : > { %v3750_v40 = vpop.permute.xlu0 %3749  ;;  %4457 = vrot.lane.b32.xlu0 %v4384_v47, %s7939_s11  ;;  %v4520_v23 = vpop.permute.xlu1 %4519 }
 0x2a6   : > { %v4522_v32 = vsel %vm4521_vm2, %v4518_v46, %v4520_v23  ;;  %v4528_v13 = vmul.bf16 %v4520_v23, %v6772_v51  ;;  %5842 = vmatmul.mubr.msk.bf16.vlgmr.msra.gmra.mrb[0].mxu0 %vm541_vm3, %v7478_v7  ;;  %v4531_v28 = vmul.bf16 %v4520_v23, %v6777_v54 }
 0x2a7   : > { %v4527_v19 = vmul.bf16 %v4522_v32, %v6758_v43  ;;  %3793 = vmatprep.mubr.bf16.mxu0 %v7937_v27  ;;  %v4530_v5 = vmul.bf16 %v4522_v32, %v6782_v57 }
 0x2a8   : > { %4541 = vrot.lane.b32.xlu1 %v4528_v13, %s6536_s15 }
 0x2a9   : > { %v3748_v35 = vpop.permute.xlu0 %3747  ;;  %4539 = vrot.lane.b32.xlu0 %v4527_v19, %s6536_s15 }
 0x2aa   : > { %v3754_v1 = vsel %vm3753_vm4, %v3748_v35, %v3750_v40  ;;  %v3752_v52 = vpop.permute.xlu1 %3751  ;;  %5844 = vmatmul.mubr.msk.bf16.vlgmr.msra.gmra.mrb[0].mxu1 %vm541_vm3, %v7500_v3 }
 0x2ab   : > { %v3755_v44 = vsel %vm3753_vm4, %v3750_v40, %v3752_v52  ;;  %3855 = vmatprep.mubr.bf16.mxu1 %v7937_v27 }
 0x2ac   : > { %3761 = vmatprep.subr.bf16.mxu0 %v3755_v44  ;;  %4605 = vrot.lane.b32.xlu1 %v4530_v5, %s6536_s15 }
 0x2ad   : > { %3762 = vmatpush1.bf16.msra.mxu0 %v3754_v1  ;;  %v3815_v36 = vpop.permute.xlu0 %3814  ;;  %4537 = vrot.lane.b32.xlu0 %v4526_v59, %s6536_s15 }
 0x2ae   : > { %3875 = vmatprep.subr.bf16.mxu0 %v3755_v44  ;;  %v3813_v21 = vpop.permute.xlu1 %3812 }
 0x2af   : > { %v3817_v53 = vsel %vm3753_vm4, %v3813_v21, %v3815_v36 }
 0x2b0   : > { %3823 = vmatprep.subr.bf16.mxu1 %v3817_v53  ;;  %4532 = vrot.lane.b32.xlu1 %v7478_v7, %s6511_s21 }
 0x2b1   : > { %v3811_v25 = vpop.permute.xlu0 %3810  ;;  %4607 = vrot.lane.b32.xlu0 %v4531_v28, %s6536_s15 }
 0x2b2   : > { %v3816_v31 = vsel %vm3753_vm4, %v3811_v25, %v3813_v21  ;;  %v3746_v2 = vpop.permute.xlu1 %3745 }
 0x2b3   : > { %5845 = vmatmul.mubr.msk.bf16.vlgmr.msra.gmra.mrb[4].mxu0 %vm541_vm3, %v3746_v2  ;;  %3824 = vmatpush1.bf16.msra.mxu1 %v3816_v31 }
 0x2b4   : > { %3876 = vmatpush1.bf16.msra.mxu0 %v3754_v1  ;;  %3927 = vmatprep.subr.bf16.mxu1 %v3817_v53 }
 0x2b5   : > { %v3871_v16 = vpop.permute.xlu0 %3870  ;;  %4603 = vrot.lane.b32.xlu0 %v4529_v26, %s6536_s15  ;;  %4598 = vrot.lane.b32.xlu1 %v7500_v3, %s6511_s21  ;;  %s6540_s15 = smov [#allocation5]  }
 0x2b6   : > { %v3809_v15 = vpop.permute.xlu1 %3808  ;;  %3907 = vmatprep.mubr.bf16.mxu0 %v7937_v27 }
 0x2b7   : > { %5846 = vmatmul.mubr.msk.bf16.vlgmr.msra.gmra.mrb[4].mxu1 %vm541_vm3, %v3809_v15 }
 0x2b8   : > { %3928 = vmatpush1.bf16.msra.mxu1 %v3816_v31  ;;  %3959 = vmatprep.mubr.bf16.mxu1 %v7937_v27 }
 0x2b9   : > { %v4000_v10 = vpop.permute.xlu0 %3999  ;;  %4667 = vrot.lane.b32.xlu0 %v6758_v43, %s6537_s26  ;;  %4669 = vrot.lane.b32.xlu1 %v6772_v51, %s6537_s26 }
 0x2ba   : > { %v3998_v37 = vpop.permute.xlu1 %3997 }
 0x2bb   : > { %5847 = vmatmul.mubr.msk.bf16.vlgmr.msra.gmra.mrb[0].mxu0 %vm541_vm3, %v3871_v16  ;;  %v4003_v62 = vsel %vm4001_vm5, %v3998_v37, %v4000_v10 }
 0x2bc   : > { %4009 = vmatprep.subr.bf16.mxu0 %v4003_v62  ;;  %4041 = vmatprep.mubr.bf16.mxu0 %v7937_v27 }
 0x2bd   : > { %v3996_v24 = vpop.permute.xlu0 %3995  ;;  %4665 = vrot.lane.b32.xlu0 %v6767_v48, %s6537_s26  ;;  %4730 = vrot.lane.b32.xlu1 %v6782_v57, %s6537_s26 }
 0x2be   : > { %v4002_v42 = vsel %vm4001_vm5, %v3996_v24, %v3998_v37  ;;  %v3923_v39 = vpop.permute.xlu1 %3922 }
 0x2bf   : > { %5848 = vmatmul.mubr.msk.bf16.vlgmr.msra.gmra.mrb[0].mxu1 %vm541_vm3, %v3923_v39  ;;  %4010 = vmatpush1.bf16.msra.mxu0 %v4002_v42 }
 0x2c0   : > { %4127 = vmatprep.subr.bf16.mxu0 %v4003_v62  ;;  %4107 = vmatprep.mubr.bf16.mxu1 %v7937_v27 }
 0x2c1   : > { %v4067_v56 = vpop.permute.xlu0 %4066  ;;  %4732 = vrot.lane.b32.xlu0 %v6777_v54, %s6537_s26  ;;  %4663 = vrot.lane.b32.xlu1 %v7478_v7, %s7941_s30 }
 0x2c2   : > { %v4065_v50 = vpop.permute.xlu1 %4064 }
 0x2c3   : > { %5850 = vmatmul.mubr.msk.bf16.vlgmr.msra.gmra.mrb[4].mxu0 %vm541_vm3, %v6357_v34  ;;  %v4069_v20 = vsel %vm4001_vm5, %v4065_v50, %v4067_v56 }
 0x2c4   : > { %4075 = vmatprep.subr.bf16.mxu1 %v4069_v20  ;;  %4128 = vmatpush1.bf16.msra.mxu0 %v4002_v42 }
 0x2c5   : > { %4728 = vrot.lane.b32.xlu0 %v6785_v58, %s6537_s26  ;;  %4726 = vrot.lane.b32.xlu1 %v7500_v3, %s7941_s30  ;;  %v4789_v61 = vpop.permute.xlu0 %4788  ;;  %s6538_s30 = smov 61   ;;  %s6429_s26 = sshll.u32 %s6540_s15, 4  ;;  %s6430_s26 = int_to_ptr.vmem [resolvable:$false] %s6429_s26 }
 0x2c6   : > { %v4063_v33 = vpop.permute.xlu1 %4062  ;;  %4159 = vmatprep.mubr.bf16.mxu0 %v7937_v27  ;;  %v4797_v55 = vmul.bf16 %v4789_v61, %v6767_v48  ;;  %v4800_v46 = vmul.bf16 %v4789_v61, %v6785_v58  ;;  %s6431_s21 = scalar_lea.vmem %s6430_s26, 2048 }
 0x2c7   : > { %v4068_v14 = vsel %vm4001_vm5, %v4063_v33, %v4065_v50 }
 0x2c8   : > { %4076 = vmatpush1.bf16.msra.mxu1 %v4068_v14 }
 0x2c9   : > { %4179 = vmatprep.subr.bf16.mxu1 %v4069_v20  ;;  %v4123_v4 = vpop.permute.xlu0 %4122 }
 0x2ca   : > { %v4791_v11 = vpop.permute.xlu1 %4790 }
 0x2cb   : > { %v4793_v6 = vsel %vm4792_vm6, %v4789_v61, %v4791_v11  ;;  %v4799_v38 = vmul.bf16 %v4791_v11, %v6772_v51  ;;  %5852 = vmatmul.mubr.msk.bf16.vlgmr.msra.gmra.mrb[4].mxu1 %vm541_vm3, %v6358_v22  ;;  %5853 = vmatmul.mubr.msk.bf16.vlgmr.msra.gmra.mrb[0].mxu0 %vm541_vm3, %v4123_v4  ;;  %v4802_v41 = vmul.bf16 %v4791_v11, %v6777_v54 }
 0x2cc   : > { %v4798_v18 = vmul.bf16 %v4793_v6, %v6758_v43  ;;  %4180 = vmatpush1.bf16.msra.mxu1 %v4068_v14  ;;  %4211 = vmatprep.mubr.bf16.mxu1 %v7937_v27  ;;  %v4801_v12 = vmul.bf16 %v4793_v6, %v6782_v57 }
 0x2cd   : > { %4812 = vrot.lane.b32.xlu1 %v4799_v38, %s6538_s30  ;;  %4292 = vmatprep.mubr.bf16.mxu0 %v7937_v27  ;;  %v4935_v49 = vpop.permute.xlu0 %4934 }
 0x2ce   : > { %4810 = vrot.lane.b32.xlu0 %v4798_v18, %s6538_s30  ;;  %v4175_v17 = vpop.permute.xlu1 %4174  ;;  %v4946_v35 = vmul.bf16 %v4935_v49, %v6785_v58 }
 0x2d1   : > { %4876 = vrot.lane.b32.xlu1 %v4801_v12, %s6538_s30 }
 0x2d2   : > { %4808 = vrot.lane.b32.xlu0 %v4797_v55, %s6538_s30  ;;  %v4937_v29 = vpop.permute.xlu1 %4936  ;;  %v4249_v9 = vpop.permute.xlu0 %4248 }
 0x2d3   : > { %5854 = vmatmul.mubr.msk.bf16.vlgmr.msra.gmra.mrb[0].mxu1 %vm541_vm3, %v4175_v17  ;;  %v4939_v45 = vsel %vm4938_vm8, %v4935_v49, %v4937_v29  ;;  %v4945_v8 = vmul.bf16 %v4937_v29, %v6772_v51  ;;  %v4943_v51 = vmul.bf16 %v4935_v49, %v6767_v48  ;;  %v4948_v5 = vmul.bf16 %v4937_v29, %v6777_v54 }
 0x2d4   : > { %4357 = vmatprep.mubr.bf16.mxu1 %v7937_v27  ;;  %v4947_v19 = vmul.bf16 %v4939_v45, %v6782_v57 }
 0x2d5   : > { %4803 = vrot.lane.b32.xlu1 %v7478_v7, %s6501_s20  ;;  %v4944_v7 = vmul.bf16 %v4939_v45, %v6758_v43 }
 0x2d6   : > { %4878 = vrot.lane.b32.xlu0 %v4802_v41, %s6538_s30  ;;  %v4247_v30 = vpop.permute.xlu0 %4246  ;;  %v4251_v0 = vpop.permute.xlu1 %4250 }
 0x2d7   : > { %v4253_v60 = vsel %vm4252_vm9, %v4247_v30, %v4249_v9  ;;  %v4254_v63 = vsel %vm4252_vm9, %v4249_v9, %v4251_v0 }
 0x2d8   : > { %4260 = vmatprep.subr.bf16.mxu0 %v4254_v63 }
 0x2d9   : > { %4869 = vrot.lane.b32.xlu1 %v7500_v3, %s6501_s20  ;;  %4261 = vmatpush1.bf16.msra.mxu0 %v4253_v60 }
 0x2da   : > { %4874 = vrot.lane.b32.xlu0 %v4800_v46, %s6538_s30  ;;  %v4317_v47 = vpop.permute.xlu0 %4316  ;;  %v4315_v40 = vpop.permute.xlu1 %4314  ;;  %s5894_s30 = sshll.u32 %s6618_s17, 10  ;;  %s5693_s17 = scalar_lea.sflag [#allocation4], %s6695_s27 }
 0x2db   : > { %v4319_v23 = vsel %vm4252_vm9, %v4315_v40, %v4317_v47  ;;  %s7849_s12 = scalar_lea.hbm %s7908_s10, %s5894_s30 }
 0x2dc   : > { %4325 = vmatprep.subr.bf16.mxu1 %v4319_v23  ;;  %v6359_v23 = vld [vmem:[%s7901_s3 + $0xc] ss:$16 sps:$4 sm:$0xff]  }
 0x2dd   : > { %4959 = vrot.lane.b32.xlu1 %v4945_v8, %s6539_s22 }
 0x2de   : > { %4957 = vrot.lane.b32.xlu0 %v4944_v7, %s6539_s22  ;;  %v4313_v32 = vpop.permute.xlu0 %4312  ;;  %v4242_v13 = vpop.permute.xlu1 %4241 }
 0x2df   : > { %v4318_v3 = vsel %vm4252_vm9, %v4313_v32, %v4315_v40  ;;  %5855 = vmatmul.mubr.msk.bf16.vlgmr.msra.gmra.mrb[0].mxu0 %vm541_vm3, %v4242_v13 }
 0x2e0   : > { %4326 = vmatpush1.bf16.msra.mxu1 %v4318_v3  ;;  %4437 = vmatprep.mubr.bf16.mxu0 %v7937_v27 }
 0x2e1   : > { %5024 = vrot.lane.b32.xlu1 %v4947_v19, %s6539_s22 }
 0x2e2   : > { %4955 = vrot.lane.b32.xlu0 %v4943_v51, %s6539_s22  ;;  %v4308_v43 = vpop.permute.xlu1 %4307 }
 0x2e3   : > { %5856 = vmatmul.mubr.msk.bf16.vlgmr.msra.gmra.mrb[0].mxu1 %vm541_vm3, %v4308_v43 }
 0x2e4   : > { %4502 = vmatprep.mubr.bf16.mxu1 %v7937_v27 }
 0x2e5   : > { %5022 = vrot.lane.b32.xlu1 %v4946_v35, %s6539_s22 }
 0x2e6   : > { %5026 = vrot.lane.b32.xlu0 %v4948_v5, %s6539_s22  ;;  %s5706_s22 = sshll.u32 %s7836_s18, 4  ;;  %s7851_s22 = int_to_ptr.vmem [resolvable:$true] %s5706_s22 }
 0x2e7   : > { %s6425_s28 = scalar_lea.vmem %s7851_s22, 1024  ;;  %p6432_p8 = scmp.lt.s32.totalorder %s7851_s22, %s6430_s26 }
 0x2e8   : > { %p6426_p6 = scmp.ne.s32.totalorder %s7851_s22, %s6425_s28  ;;  %p6433_p10 = scmp.lt.s32.totalorder %s6431_s21, %s6425_s28 }
 0x2ea   : > { %p6427_p12 = pnand %p6426_p6, %p7944_p11  ;;  %p6434_p0 = por %p6433_p10, %p6432_p8 }
 0x2ec   : > { %p6428_p13 = pneg %p6427_p12 }
 0x2ee   : > { %p6435_p2 = pnand %p6434_p0, %p6428_p13 }
 0x30a   : > { %v4397_v57 = vpop.permute.xlu1 %4396 }
 0x30b   : > { %v4395_v1 = vpop.permute.xlu0 %4394 }
 0x30c   : > { %v4399_v48 = vsel %vm4376_vm1, %v4395_v1, %v4397_v57 }
 0x30d   : > { %4405 = vmatprep.subr.bf16.mxu0 %v4399_v48 }
 0x30e   : > { %v4460_v52 = vpop.permute.xlu1 %4459 }
 0x30f   : > { %v4393_v59 = vpop.permute.xlu0 %4392 }
 0x310   : > { %v4398_v44 = vsel %vm4376_vm1, %v4393_v59, %v4395_v1 }
 0x311   : > { %4406 = vmatpush1.bf16.msra.mxu0 %v4398_v44 }
 0x312   : > { %v4388_v36 = vpop.permute.xlu1 %4387 }
 0x313   : > { %v4462_v58 = vpop.permute.xlu0 %4461 }
 0x314   : > { %v4464_v21 = vsel %vm4376_vm1, %v4460_v52, %v4462_v58  ;;  %5857 = vmatmul.mubr.msk.bf16.vlgmr.msra.gmra.mrb[0].mxu0 %vm541_vm3, %v4388_v36 }
 0x315   : > { %4470 = vmatprep.subr.bf16.mxu1 %v4464_v21  ;;  %4583 = vmatprep.mubr.bf16.mxu0 %v7937_v27 }
 0x316   : > { %v4453_v54 = vpop.permute.xlu1 %4452 }
 0x317   : > { %v4458_v28 = vpop.permute.xlu0 %4457 }
 0x318   : > { %v4463_v53 = vsel %vm4376_vm1, %v4458_v28, %v4460_v52 }
 0x319   : > { %4471 = vmatpush1.bf16.msra.mxu1 %v4463_v53 }
 0x31a   : > { %v4542_v25 = vpop.permute.xlu1 %4541 }
 0x31b   : > { %v4540_v31 = vpop.permute.xlu0 %4539 }
 0x31c   : > { %5858 = vmatmul.mubr.msk.bf16.vlgmr.msra.gmra.mrb[0].mxu1 %vm541_vm3, %v4453_v54  ;;  %v4545_v2 = vsel %vm4543_vm10, %v4540_v31, %v4542_v25 }
 0x31d   : > { %4551 = vmatprep.subr.bf16.mxu0 %v4545_v2  ;;  %4648 = vmatprep.mubr.bf16.mxu1 %v7937_v27 }
 0x31e   : > { %v4606_v26 = vpop.permute.xlu1 %4605 }
 0x31f   : > { %v4538_v16 = vpop.permute.xlu0 %4537 }
 0x320   : > { %v4544_v15 = vsel %vm4543_vm10, %v4538_v16, %v4540_v31 }
 0x321   : > { %4552 = vmatpush1.bf16.msra.mxu0 %v4544_v15 }
 0x322   : > { %v4533_v10 = vpop.permute.xlu1 %4532 }
 0x323   : > { %v4608_v37 = vpop.permute.xlu0 %4607 }
 0x324   : > { %v4610_v62 = vsel %vm4543_vm10, %v4606_v26, %v4608_v37  ;;  %5859 = vmatmul.mubr.msk.bf16.vlgmr.msra.gmra.mrb[0].mxu0 %vm541_vm3, %v4533_v10 }
 0x325   : > { %4616 = vmatprep.subr.bf16.mxu1 %v4610_v62  ;;  %4711 = vmatprep.mubr.bf16.mxu0 %v7937_v27 }
 0x327   : > { %v4604_v24 = vpop.permute.xlu0 %4603  ;;  %v4599_v42 = vpop.permute.xlu1 %4598 }
 0x328   : > { %v4609_v39 = vsel %vm4543_vm10, %v4604_v24, %v4606_v26 }
 0x329   : > { %4617 = vmatpush1.bf16.msra.mxu1 %v4609_v39 }
 0x32b   : > { %v4668_v34 = vpop.permute.xlu0 %4667  ;;  %v4670_v56 = vpop.permute.xlu1 %4669 }
 0x32c   : > { %5860 = vmatmul.mubr.msk.bf16.vlgmr.msra.gmra.mrb[0].mxu1 %vm541_vm3, %v4599_v42  ;;  %v4673_v50 = vsel %vm4671_vm11, %v4668_v34, %v4670_v56 }
 0x32d   : > { %4679 = vmatprep.subr.bf16.mxu0 %v4673_v50  ;;  %4773 = vmatprep.mubr.bf16.mxu1 %v7937_v27 }
 0x32f   : > { %v4666_v20 = vpop.permute.xlu0 %4665  ;;  %v4731_v61 = vpop.permute.xlu1 %4730 }
 0x330   : > { %v4672_v33 = vsel %vm4671_vm11, %v4666_v20, %v4668_v34 }
 0x331   : > { %4680 = vmatpush1.bf16.msra.mxu0 %v4672_v33 }
 0x333   : > { %v4733_v14 = vpop.permute.xlu0 %4732  ;;  %v4664_v22 = vpop.permute.xlu1 %4663 }
 0x334   : > { %v4735_v4 = vsel %vm4671_vm11, %v4731_v61, %v4733_v14  ;;  %5861 = vmatmul.mubr.msk.bf16.vlgmr.msra.gmra.mrb[0].mxu0 %vm541_vm3, %v4664_v22 }
 0x335   : > { %4741 = vmatprep.subr.bf16.mxu1 %v4735_v4  ;;  %4854 = vmatprep.mubr.bf16.mxu0 %v7937_v27  ;;  %v5114_v4 = vld [vmem:[%s7902_s4] sm:$0xff] }
 0x337   : > { %v4729_v11 = vpop.permute.xlu0 %4728  ;;  %v4727_v38 = vpop.permute.xlu1 %4726 }
 0x338   : > { %v4734_v6 = vsel %vm4671_vm11, %v4729_v11, %v4731_v61 }
 0x339   : > { %4742 = vmatpush1.bf16.msra.mxu1 %v4734_v6 }
 0x33c   : > { %5862 = vmatmul.mubr.msk.bf16.vlgmr.msra.gmra.mrb[0].mxu1 %vm541_vm3, %v4727_v38 }
 0x33d   : > { %4919 = vmatprep.mubr.bf16.mxu1 %v7937_v27 }
 0x33f   : > { %v4813_v18 = vpop.permute.xlu1 %4812 }
 0x340   : > { %v4811_v17 = vpop.permute.xlu0 %4810 }
 0x341   : > { %v4816_v49 = vsel %vm4814_vm12, %v4811_v17, %v4813_v18 }
 0x342   : > { %4822 = vmatprep.subr.bf16.mxu0 %v4816_v49 }
 0x343   : > { %v4877_v12 = vpop.permute.xlu1 %4876 }
 0x344   : > { %v4809_v55 = vpop.permute.xlu0 %4808 }
 0x345   : > { %v4815_v29 = vsel %vm4814_vm12, %v4809_v55, %v4811_v17 }
 0x346   : > { %4823 = vmatpush1.bf16.msra.mxu0 %v4815_v29 }
 0x347   : > { %v4804_v9 = vpop.permute.xlu1 %4803 }
 0x348   : > { %v4879_v41 = vpop.permute.xlu0 %4878 }
 0x349   : > { %5863 = vmatmul.mubr.msk.bf16.vlgmr.msra.gmra.mrb[0].mxu0 %vm541_vm3, %v4804_v9  ;;  %v4881_v30 = vsel %vm4814_vm12, %v4877_v12, %v4879_v41  ;;  %v5115_v41 = vld [vmem:[%s7902_s4 + $0x8] sm:$0xff] }
 0x34a   : > { %4887 = vmatprep.subr.bf16.mxu1 %v4881_v30  ;;  %5001 = vmatprep.mubr.bf16.mxu0 %v7937_v27  ;;  %v5116_v30 = vld [vmem:[%s7902_s4 + $0x10] sm:$0xff] }
 0x34b   : > { %v4870_v0 = vpop.permute.xlu1 %4869 }
 0x34c   : > { %v4875_v45 = vpop.permute.xlu0 %4874 }
 0x34d   : > { %v4880_v60 = vsel %vm4814_vm12, %v4875_v45, %v4877_v12  ;;  %v5220_v45 = vld [vmem:[%s7904_s6] sm:$0xff] }
 0x34e   : > { %4888 = vmatpush1.bf16.msra.mxu1 %v4880_v60  ;;  %v5877_v60 = vld [vmem:[%s7904_s6 + $0x20] sm:$0xff] }
 0x34f   : > { %v4960_v63 = vpop.permute.xlu1 %4959 }
 0x350   : > { %v4958_v46 = vpop.permute.xlu0 %4957 }
 0x351   : > { %5864 = vmatmul.mubr.msk.bf16.vlgmr.msra.gmra.mrb[0].mxu1 %vm541_vm3, %v4870_v0  ;;  %v4963_v8 = vsel %vm4961_vm13, %v4958_v46, %v4960_v63  ;;  %v5117_v0 = vld [vmem:[%s7902_s4 + $0x18] sm:$0xff]  ;;  %v5119_v63 = vld [vmem:[%s7903_s5 + $0x8] sm:$0xff] }
 0x352   : > { %4969 = vmatprep.subr.bf16.mxu0 %v4963_v8  ;;  %5067 = vmatprep.mubr.bf16.mxu1 %v7937_v27  ;;  %v6360_v27 = vld [vmem:[%s7901_s3 + $0x2c] ss:$16 sps:$4 sm:$0xff]  }
 0x353   : > { %v5025_v7 = vpop.permute.xlu1 %5024 }
 0x354   : > { %v4956_v47 = vpop.permute.xlu0 %4955 }
 0x355   : > { %v4962_v40 = vsel %vm4961_vm13, %v4956_v47, %v4958_v46  ;;  %v5118_v46 = vld [vmem:[%s7903_s5] sm:$0xff] }
 0x356   : > { %4970 = vmatpush1.bf16.msra.mxu0 %v4962_v40 }
 0x357   : > { %v5023_v32 = vpop.permute.xlu1 %5022 }
 0x358   : > { %v5027_v13 = vpop.permute.xlu0 %5026  ;;  %v5028_v3 = vsel %vm4961_vm13, %v5023_v32, %v5025_v7  ;;  %v5120_v32 = vld [vmem:[%s7903_s5 + $0x10] sm:$0xff] }
 0x359   : > { %5866 = vmatmul.mubr.msk.bf16.vlgmr.msra.gmra.mrb[0].mxu0 %vm541_vm3, %v6359_v23  ;;  %v5029_v19 = vsel %vm4961_vm13, %v5025_v7, %v5027_v13  ;;  %v5121_v23 = vld [vmem:[%s7903_s5 + $0x18] sm:$0xff] }
 0x35a   : > { %5035 = vmatprep.subr.bf16.mxu1 %v5029_v19  ;;  %5927 = vmatprep.mubr.msk.f32.mxu0 %vm2326_vm7, %v5114_v4 }
 0x35b   : > { %5036 = vmatpush1.bf16.msra.mxu1 %v5028_v3 }
 0x35e   : > { %5868 = vmatmul.mubr.msk.bf16.vlgmr.msra.gmra.mrb[0].mxu1 %vm541_vm3, %v6360_v27 }
 0x35f   : > { %5941 = vmatprep.mubr.msk.f32.mxu1 %vm2326_vm7, %v5220_v45 }
 0x396   : > { %v4043_v51 = vpop.f32.mrb[4].mxu0 }
 0x397   : > { %v4045_v43 = vpop.f32.mrb[5].mxu0 }
 0x398   : > { %v4047_v35 = vpop.f32.mrb[6].mxu0 }
 0x399   : > { %v7695_v5 = vpack.c.bf16 %v4047_v35, %v4043_v51  ;;  %v4049_v57 = vpop.f32.mrb[7].mxu0 }
 0x39a   : > { %v7697_v1 = vpack.c.bf16 %v4049_v57, %v4045_v43 }
 0x39e   : > { %v4109_v48 = vpop.f32.mrb[4].mxu1 }
 0x39f   : > { %v4111_v52 = vpop.f32.mrb[5].mxu1 }
 0x3a0   : > { %v4113_v59 = vpop.f32.mrb[6].mxu1 }
 0x3a1   : > { %v7699_v44 = vpack.c.bf16 %v4113_v59, %v4109_v48  ;;  %v4115_v36 = vpop.f32.mrb[7].mxu1 }
 0x3a2   : > { %v7701_v58 = vpack.c.bf16 %v4115_v36, %v4111_v52 }
 0x42c   : > { %v5003_v21 = vpop.f32.mrb[0].mxu0 }
 0x42d   : > { %v5082_v54 = vadd.f32 %v5003_v21, %v4043_v51  ;;  %v5005_v28 = vpop.f32.mrb[1].mxu0 }
 0x42e   : > { %v5083_v53 = vadd.f32 %v5005_v28, %v4045_v43  ;;  %v5007_v25 = vpop.f32.mrb[2].mxu0 }
 0x42f   : > { %v5084_v31 = vadd.f32 %v5007_v25, %v4047_v35  ;;  %v7703_v2 = vpack.c.bf16 %v5007_v25, %v5003_v21  ;;  %v5009_v26 = vpop.f32.mrb[3].mxu0  ;;  %v5221_v35 = vld [vmem:[%s7904_s6 + $0x8] sm:$0xff] }
 0x430   : > { %v5090_v16 = vadd.f32 %v5083_v53, %v5082_v54  ;;  %v5085_v15 = vadd.f32 %v5009_v26, %v4049_v57  ;;  %v7705_v10 = vpack.c.bf16 %v5009_v26, %v5005_v28  ;;  %v5878_v57 = vld [vmem:[%s7904_s6 + $0x28] sm:$0xff]  ;;  %v5224_v28 = vld [vmem:[%s7905_s7] sm:$0xff] }
 0x431   : > { %v5069_v37 = vpop.f32.mrb[0].mxu1  ;;  %v5225_v21 = vld [vmem:[%s7905_s7 + $0x8] sm:$0xff]  ;;  %v5881_v53 = vld [vmem:[%s7905_s7 + $0x20] sm:$0xff] }
 0x432   : > { %v5093_v62 = vadd.f32 %v5085_v15, %v5084_v31  ;;  %v5086_v24 = vadd.f32 %v5069_v37, %v4109_v48  ;;  %5091 = vadd.xlane.f32.xlu0 %v5090_v16  ;;  %v5071_v42 = vpop.f32.mrb[1].mxu1  ;;  %v5222_v48 = vld [vmem:[%s7904_s6 + $0x10] sm:$0xff]  ;;  %v5882_v54 = vld [vmem:[%s7905_s7 + $0x28] sm:$0xff] }
 0x433   : > { %v5087_v39 = vadd.f32 %v5071_v42, %v4111_v52  ;;  %v5073_v34 = vpop.f32.mrb[2].mxu1  ;;  %v5223_v52 = vld [vmem:[%s7904_s6 + $0x18] sm:$0xff] }
 0x434   : > { %v5088_v56 = vadd.f32 %v5073_v34, %v4113_v59  ;;  %v7707_v50 = vpack.c.bf16 %v5073_v34, %v5069_v37  ;;  %5094 = vadd.xlane.f32.xlu1 %v5093_v62  ;;  %v5075_v20 = vpop.f32.mrb[3].mxu1  ;;  %v5879_v59 = vld [vmem:[%s7904_s6 + $0x30] sm:$0xff]  ;;  %v5227_v34 = vld [vmem:[%s7905_s7 + $0x18] sm:$0xff] }
 0x435   : > { %v5096_v61 = vadd.f32 %v5087_v39, %v5086_v24  ;;  %v5089_v33 = vadd.f32 %v5075_v20, %v4115_v36  ;;  %v7709_v14 = vpack.c.bf16 %v5075_v20, %v5071_v42  ;;  %v5880_v36 = vld [vmem:[%s7904_s6 + $0x38] sm:$0xff] }
 0x437   : > { %v5099_v22 = vadd.f32 %v5089_v33, %v5088_v56  ;;  %5097 = vadd.xlane.f32.xlu0 %v5096_v61 }
 0x43b   : > { %5100 = vadd.xlane.f32.xlu0 %v5099_v22  ;;  %v5226_v22 = vld [vmem:[%s7905_s7 + $0x10] sm:$0xff] }
 0x4bf   : > { %v5092_v11 = vpop.xlane.xlu0 %5091 }
 0x4c0   : > { %v5102_v38 = vmul.f32 0.00390625, %v5092_v11 }
 0x4c1   : > { %v5095_v6 = vpop.xlane.xlu1 %5094 }
 0x4c2   : > { %v5103_v18 = vmul.f32 0.00390625, %v5095_v6  ;;  %v5884_v6 = vld [vmem:[%s7905_s7 + $0x38] sm:$0xff] }
 0x4c4   : > { %v5961_v17 = vpack.c.bf16 %v5103_v18, %v5102_v38  ;;  %v5098_v49 = vpop.xlane.xlu0 %5097 }
 0x4c5   : > { %v5104_v55 = vmul.f32 0.00390625, %v5098_v49  ;;  %v5883_v49 = vld [vmem:[%s7905_s7 + $0x30] sm:$0xff] }
 0x4c6   : > { %5962 = vmatprep.subr.bf16.mxu0 %v5961_v17 }
 0x4c7   : > { %5964 = vmatpush3.bf16.msra.mxu0 %v5961_v17 }
 0x4c8   : > { %v5101_v12 = vpop.xlane.xlu0 %5100 }
 0x4c9   : > { %v5105_v29 = vmul.f32 0.00390625, %v5101_v12 }
 0x4cb   : > { %v5965_v9 = vpack.c.bf16 %v5105_v29, %v5104_v55 }
 0x4cd   : > { %5966 = vmatprep.subr.bf16.mxu0 %v5965_v9 }
 0x4ce   : > { %5968 = vmatpush3.bf16.msra.mxu0 %v5965_v9 }
 0x4d1   : > { %5928 = vmatmul.mubr.msk.f32.vlgmr.msra.gmra.mrb[8].mxu0 %vm2326_vm7, %v5115_v41 }
 0x4d2   : > { %5930 = vmatprep.mubr.msk.f32.mxu0 %vm2326_vm7, %v5116_v30 }
 0x4d5   : > { %5931 = vmatmul.mubr.msk.f32.gmra.mrb[10].mxu0 %vm2326_vm7, %v5117_v0 }
 0x4d6   : > { %5955 = vmatprep.mubr.msk.f32.mxu0 %vm2326_vm7, %v5877_v60 }
 0x5a4   : > { %v5929_v8 = vpop.f32.mrb[8].mxu0 }
 0x5a5   : > { %v5207_v7 = vadd.f32 %v5929_v8, %v5119_v63  ;;  %v5201_v47 = vpop.f32.mrb[9].mxu0 }
 0x5a6   : > { %v5202_v40 = vadd.f32 %v5201_v47, %v5118_v46 }
 0x5a8   : > { %v5969_v13 = vpack.c.bf16 %v5207_v7, %v5202_v40  ;;  %v5932_v19 = vpop.f32.mrb[10].mxu0 }
 0x5a9   : > { %v5217_v3 = vadd.f32 %v5932_v19, %v5121_v23  ;;  %v5211_v27 = vpop.f32.mrb[11].mxu0 }
 0x5aa   : > { %v5212_v51 = vadd.f32 %v5211_v27, %v5120_v32  ;;  %5970 = vmatprep.subr.bf16.mxu1 %v5969_v13  ;;  %5978 = vmatprep.subr.bf16.mxu0 %v5969_v13 }
 0x5ab   : > { %5972 = vmatpush3.bf16.msra.mxu1 %v5969_v13  ;;  %5980 = vmatpush3.bf16.msra.mxu0 %v5969_v13 }
 0x5ac   : > { %v5973_v43 = vpack.c.bf16 %v5217_v3, %v5212_v51 }
 0x5ae   : > { %5974 = vmatprep.subr.bf16.mxu1 %v5973_v43  ;;  %5982 = vmatprep.subr.bf16.mxu0 %v5973_v43 }
 0x5af   : > { %5976 = vmatpush3.bf16.msra.mxu1 %v5973_v43  ;;  %5984 = vmatpush3.bf16.msra.mxu0 %v5973_v43 }
 0x5b0   : > { %5985 = vmatprep.subr.bf16.mxu1 %v5969_v13 }
 0x5b2   : > { %5942 = vmatmul.mubr.msk.f32.vlgmr.msra.gmra.mrb[8].mxu1 %vm2326_vm7, %v5221_v35  ;;  %5956 = vmatmul.mubr.msk.f32.vlgmr.msra.gmra.mrb[12].mxu0 %vm2326_vm7, %v5878_v57 }
 0x5b3   : > { %5987 = vmatpush3.bf16.msra.mxu1 %v5969_v13  ;;  %5944 = vmatprep.mubr.msk.f32.mxu1 %vm2326_vm7, %v5222_v48 }
 0x5b4   : > { %5986 = vmatprep.subr.bf16.mxu1 %v5973_v43 }
 0x5b6   : > { %5945 = vmatmul.mubr.msk.f32.gmra.mrb[10].mxu1 %vm2326_vm7, %v5223_v52 }
 0x5b7   : > { %5988 = vmatpush3.bf16.msra.mxu1 %v5973_v43  ;;  %5958 = vmatprep.mubr.msk.f32.mxu1 %vm2326_vm7, %v5879_v59 }
 0x5ba   : > { %5959 = vmatmul.mubr.msk.f32.vlgmr.msra.gmra.mrb[12].mxu1 %vm2326_vm7, %v5880_v36 }
 0x685   : > { %v5943_v25 = vpop.f32.mrb[8].mxu1  ;;  %v5957_v31 = vpop.f32.mrb[12].mxu0 }
 0x686   : > { %v5312_v26 = vadd.f32 %v5943_v25, %v5225_v21  ;;  %v5419_v16 = vadd.f32 %v5957_v31, %v5882_v54  ;;  %v5306_v15 = vpop.f32.mrb[9].mxu1  ;;  %v5413_v37 = vpop.f32.mrb[13].mxu0 }
 0x687   : > { %v5307_v62 = vadd.f32 %v5306_v15, %v5224_v28  ;;  %v5414_v24 = vadd.f32 %v5881_v53, %v5413_v37 }
 0x688   : > { %v5433_v42 = vmax.f32 %v5312_v26, %v5419_v16 }
 0x689   : > { %v5432_v39 = vmax.f32 %v5307_v62, %v5414_v24  ;;  %v5946_v56 = vpop.f32.mrb[10].mxu1 }
 0x68a   : > { %v5437_v20 = vsub.f32 %v5312_v26, %v5433_v42  ;;  %v5449_v61 = vsub.f32 %v5419_v16, %v5433_v42  ;;  %v5316_v33 = vpop.f32.mrb[11].mxu1  ;;  %v5322_v17 = vadd.f32 %v5946_v56, %v5227_v34  ;;  %v5514_v42 = vunpack.c.h.bf16 %v7703_v2 }
 0x68b   : > { %v5436_v4 = vsub.f32 %v5307_v62, %v5432_v39  ;;  %v5448_v11 = vsub.f32 %v5414_v24, %v5432_v39  ;;  %v5317_v29 = vadd.f32 %v5316_v33, %v5226_v22  ;;  %v5515_v39 = vunpack.c.h.bf16 %v7705_v10 }
 0x68c   : > { %v5442_v38 = vmul.f32 1.442695, %v5437_v20  ;;  %v5454_v18 = vmul.f32 1.442695, %v5449_v61  ;;  %v5474_v34 = vunpack.c.h.bf16 %v7695_v5  ;;  %v5475_v56 = vunpack.c.h.bf16 %v7697_v1 }
 0x68d   : > { %v5440_v12 = vmul.f32 1.442695, %v5436_v4  ;;  %v5452_v55 = vmul.f32 1.442695, %v5448_v11  ;;  %v5960_v9 = vpop.f32.mrb[12].mxu1 }
 0x68e   : > { %6361 = vpow2.f32 %v5442_v38  ;;  %v5429_v41 = vadd.f32 %v5960_v9, %v5884_v6  ;;  %v5423_v30 = vpop.f32.mrb[13].mxu1 }
 0x68f   : > { %6363 = vpow2.f32 %v5454_v18  ;;  %v5424_v0 = vadd.f32 %v5883_v49, %v5423_v30  ;;  %v5472_v49 = vunpack.c.l.bf16 %v7695_v5  ;;  %v5476_v5 = vunpack.c.l.bf16 %v7699_v44 }
 0x690   : > { %6365 = vpow2.f32 %v5440_v12  ;;  %v5435_v45 = vmax.f32 %v5322_v17, %v5429_v41  ;;  %v5473_v12 = vunpack.c.l.bf16 %v7697_v1  ;;  %v5477_v1 = vunpack.c.l.bf16 %v7701_v58 }
 0x691   : > { %6367 = vpow2.f32 %v5452_v55  ;;  %v5434_v60 = vmax.f32 %v5317_v29, %v5424_v0  ;;  %v5512_v55 = vunpack.c.l.bf16 %v7703_v2  ;;  %v5517_v2 = vunpack.c.l.bf16 %v7709_v14 }
 0x692   : > { %v5439_v63 = vsub.f32 %v5322_v17, %v5435_v45  ;;  %v5451_v46 = vsub.f32 %v5429_v41, %v5435_v45 }
 0x693   : > { %v5438_v8 = vsub.f32 %v5317_v29, %v5434_v60  ;;  %v5450_v7 = vsub.f32 %v5424_v0, %v5434_v60  ;;  %v5513_v29 = vunpack.c.l.bf16 %v7705_v10 }
 0x694   : > { %v5446_v47 = vmul.f32 1.442695, %v5439_v63  ;;  %v5458_v40 = vmul.f32 1.442695, %v5451_v46 }
 0x695   : > { %v5444_v23 = vmul.f32 1.442695, %v5438_v8  ;;  %v5456_v32 = vmul.f32 1.442695, %v5450_v7 }
 0x696   : > { %6369 = vpow2.f32 %v5446_v47  ;;  %v5516_v47 = vunpack.c.l.bf16 %v7707_v50 }
 0x697   : > { %6371 = vpow2.f32 %v5458_v40 }
 0x698   : > { %v6362_v13 = vpop.eup %6361  ;;  %6373 = vpow2.f32 %v5444_v23 }
 0x699   : > { %v6364_v19 = vpop.eup %6363  ;;  %6375 = vpow2.f32 %v5456_v32 }
 0x69a   : > { %v6366_v3 = vpop.eup %6365  ;;  %v5461_v27 = vadd.f32 %v6364_v19, %v6362_v13 }
 0x69b   : > { %v6368_v51 = vpop.eup %6367 }
 0x69c   : > { %6377 = vrcp.f32 %v5461_v27  ;;  %v5460_v43 = vadd.f32 %v6368_v51, %v6366_v3 }
 0x69e   : > { %6379 = vrcp.f32 %v5460_v43  ;;  %v5518_v43 = vunpack.c.h.bf16 %v7707_v50  ;;  %v5623_v50 = vld [vmem:[%s7906_s8 + $0x18] sm:$0xff] }
 0x6a0   : > { %v6370_v35 = vpop.eup %6369 }
 0x6a1   : > { %v6372_v57 = vpop.eup %6371 }
 0x6a2   : > { %v6374_v48 = vpop.eup %6373  ;;  %v5463_v52 = vadd.f32 %v6372_v57, %v6370_v35 }
 0x6a3   : > { %v6376_v59 = vpop.eup %6375 }
 0x6a4   : > { %6381 = vrcp.f32 %v5463_v52  ;;  %v5462_v36 = vadd.f32 %v6376_v59, %v6374_v48 }
 0x6a6   : > { %v6378_v21 = vpop.eup %6377  ;;  %6383 = vrcp.f32 %v5462_v36 }
 0x6a7   : > { %v5509_v54 = vmul.f32 %v6378_v21, %v6364_v19  ;;  %v5469_v28 = vmul.f32 %v6378_v21, %v6362_v13  ;;  %v5478_v19 = vunpack.c.h.bf16 %v7699_v44  ;;  %v5620_v44 = vld [vmem:[%s7906_s8] sm:$0xff] }
 0x6a8   : > { %v6380_v53 = vpop.eup %6379 }
 0x6a9   : > { %5527 = vperm.xlu1 %6342, %v5509_v54   ;;  %5487 = vperm.xlu0 %6341, %v5469_v28   ;;  %v5468_v25 = vmul.f32 %v6380_v53, %v6366_v3  ;;  %v5508_v31 = vmul.f32 %v6380_v53, %v6368_v51  ;;  %v5479_v3 = vunpack.c.h.bf16 %v7701_v58  ;;  %v5622_v58 = vld [vmem:[%s7906_s8 + $0x10] sm:$0xff] }
 0x6ad   : > { %5482 = vperm.xlu1 %6342, %v5468_v25   ;;  %v5653_v25 = vld [vmem:[%s7907_s9 + $0x8] sm:$0xff] }
 0x6ae   : > { %v6382_v26 = vpop.eup %6381 }
 0x6af   : > { %v5471_v16 = vmul.f32 %v6382_v26, %v6370_v35  ;;  %v5511_v15 = vmul.f32 %v6382_v26, %v6372_v57  ;;  %v5519_v35 = vunpack.c.h.bf16 %v7709_v14  ;;  %v5621_v14 = vld [vmem:[%s7906_s8 + $0x8] sm:$0xff] }
 0x6b0   : > { %v6384_v37 = vpop.eup %6383 }
 0x6b1   : > { %5522 = vperm.xlu1 %6342, %v5508_v31   ;;  %v5470_v62 = vmul.f32 %v6384_v37, %v6374_v48  ;;  %v5510_v24 = vmul.f32 %v6384_v37, %v6376_v59  ;;  %v5652_v31 = vld [vmem:[%s7907_s9] sm:$0xff] }
 0x6b5   : > { %5497 = vperm.xlu1 %6342, %v5471_v16  }
 0x6b9   : > { %5492 = vperm.xlu1 %6342, %v5470_v62  }
 0x6bd   : > { %5532 = vperm.xlu1 %6342, %v5510_v24  }
 0x6c1   : > { %5537 = vperm.xlu1 %6342, %v5511_v15  }
 0x728   : > { %v5528_v20 = vpop.permute.xlu1 %5527  ;;  %v5488_v61 = vpop.permute.xlu0 %5487 }
 0x729   : > { %v5542_v33 = vmul.f32 %v5528_v20, %v5514_v42  ;;  %v5543_v22 = vmul.f32 %v5528_v20, %v5515_v39  ;;  %v5502_v4 = vmul.f32 %v5488_v61, %v5474_v34  ;;  %v5503_v11 = vmul.f32 %v5488_v61, %v5475_v56 }
 0x72b   : > { %v5550_v6 = vadd.f32 %v5542_v33, %v5502_v4  ;;  %v5551_v38 = vadd.f32 %v5543_v22, %v5503_v11 }
 0x72c   : > { %v5483_v18 = vpop.permute.xlu1 %5482 }
 0x72d   : > { %v5559_v17 = vadd.f32 %v5551_v38, %v5550_v6  ;;  %v5500_v41 = vmul.f32 %v5483_v18, %v5472_v49  ;;  %v5501_v30 = vmul.f32 %v5483_v18, %v5473_v12 }
 0x72f   : > { %5560 = vadd.xlane.f32.xlu0 %v5559_v17 }
 0x730   : > { %v5523_v9 = vpop.permute.xlu1 %5522 }
 0x731   : > { %v5540_v0 = vmul.f32 %v5523_v9, %v5512_v55  ;;  %v5541_v45 = vmul.f32 %v5523_v9, %v5513_v29 }
 0x733   : > { %v5548_v60 = vadd.f32 %v5540_v0, %v5500_v41  ;;  %v5549_v63 = vadd.f32 %v5541_v45, %v5501_v30  ;;  %v5655_v45 = vld [vmem:[%s7907_s9 + $0x18] sm:$0xff] }
 0x734   : > { %v5498_v46 = vpop.permute.xlu1 %5497 }
 0x735   : > { %v5556_v8 = vadd.f32 %v5549_v63, %v5548_v60  ;;  %v5506_v57 = vmul.f32 %v5498_v46, %v5478_v19  ;;  %v5507_v52 = vmul.f32 %v5498_v46, %v5479_v3 }
 0x737   : > { %5557 = vadd.xlane.f32.xlu1 %v5556_v8 }
 0x738   : > { %v5493_v7 = vpop.permute.xlu1 %5492 }
 0x739   : > { %v5504_v40 = vmul.f32 %v5493_v7, %v5476_v5  ;;  %v5505_v23 = vmul.f32 %v5493_v7, %v5477_v1 }
 0x73c   : > { %v5533_v10 = vpop.permute.xlu1 %5532 }
 0x73d   : > { %v5544_v32 = vmul.f32 %v5533_v10, %v5516_v47  ;;  %v5545_v13 = vmul.f32 %v5533_v10, %v5517_v2 }
 0x73f   : > { %v5552_v27 = vadd.f32 %v5544_v32, %v5504_v40  ;;  %v5553_v51 = vadd.f32 %v5545_v13, %v5505_v23 }
 0x740   : > { %v5538_v48 = vpop.permute.xlu1 %5537 }
 0x741   : > { %v5546_v59 = vmul.f32 %v5538_v48, %v5518_v43  ;;  %v5547_v36 = vmul.f32 %v5538_v48, %v5519_v35  ;;  %v5562_v21 = vadd.f32 %v5553_v51, %v5552_v27 }
 0x743   : > { %v5554_v54 = vadd.f32 %v5546_v59, %v5506_v57  ;;  %v5555_v28 = vadd.f32 %v5547_v36, %v5507_v52  ;;  %5563 = vadd.xlane.f32.xlu1 %v5562_v21 }
 0x745   : > { %v5565_v53 = vadd.f32 %v5555_v28, %v5554_v54 }
 0x747   : > { %5566 = vadd.xlane.f32.xlu0 %v5565_v53 }
 0x754   : > { %5626 = vperm.xlu1 %6342, %v5620_v44  }
 0x758   : > { %5636 = vperm.xlu1 %6342, %v5622_v58  }
 0x75c   : > { %5641 = vperm.xlu1 %6342, %v5623_v50  }
 0x75d   : > { %5631 = vperm.xlu0 %6341, %v5621_v14  }
 0x760   : > { %5663 = vperm.xlu1 %6342, %v5653_v25  }
 0x761   : > { %5658 = vperm.xlu0 %6341, %v5652_v31  }
 0x7bc   : > { %v5561_v26 = vpop.xlane.xlu0 %5560 }
 0x7bd   : > { %v5569_v16 = vmul.f32 0.00390625, %v5561_v26 }
 0x7bf   : > { %v5574_v15 = vsub.f32 %v5550_v6, %v5569_v16  ;;  %v5575_v37 = vsub.f32 %v5551_v38, %v5569_v16 }
 0x7c1   : > { %v5582_v62 = vmul.f32 %v5574_v15, %v5574_v15  ;;  %v5583_v24 = vmul.f32 %v5575_v37, %v5575_v37 }
 0x7c3   : > { %v5591_v42 = vadd.f32 %v5583_v24, %v5582_v62 }
 0x7c4   : > { %v5558_v39 = vpop.xlane.xlu1 %5557 }
 0x7c5   : > { %v5568_v34 = vmul.f32 0.00390625, %v5558_v39  ;;  %5592 = vadd.xlane.f32.xlu0 %v5591_v42 }
 0x7c7   : > { %v5572_v56 = vsub.f32 %v5548_v60, %v5568_v34  ;;  %v5573_v20 = vsub.f32 %v5549_v63, %v5568_v34  ;;  %v5654_v60 = vld [vmem:[%s7907_s9 + $0x10] sm:$0xff] }
 0x7c9   : > { %v5580_v61 = vmul.f32 %v5572_v56, %v5572_v56  ;;  %v5581_v33 = vmul.f32 %v5573_v20, %v5573_v20 }
 0x7cb   : > { %v5588_v22 = vadd.f32 %v5581_v33, %v5580_v61 }
 0x7cd   : > { %5589 = vadd.xlane.f32.xlu1 %v5588_v22 }
 0x7d0   : > { %v5564_v4 = vpop.xlane.xlu1 %5563 }
 0x7d1   : > { %v5570_v11 = vmul.f32 0.00390625, %v5564_v4 }
 0x7d3   : > { %v5576_v18 = vsub.f32 %v5552_v27, %v5570_v11  ;;  %v5577_v17 = vsub.f32 %v5553_v51, %v5570_v11 }
 0x7d4   : > { %v5567_v49 = vpop.xlane.xlu0 %5566  ;;  %v5627_v63 = vpop.permute.xlu1 %5626 }
 0x7d5   : > { %v5584_v12 = vmul.f32 %v5576_v18, %v5576_v18  ;;  %v5585_v6 = vmul.f32 %v5577_v17, %v5577_v17  ;;  %v5571_v38 = vmul.f32 0.00390625, %v5567_v49 }
 0x7d7   : > { %v5578_v55 = vsub.f32 %v5554_v54, %v5571_v38  ;;  %v5579_v29 = vsub.f32 %v5555_v28, %v5571_v38  ;;  %v5594_v9 = vadd.f32 %v5585_v6, %v5584_v12 }
 0x7d8   : > { %v5637_v8 = vpop.permute.xlu1 %5636 }
 0x7d9   : > { %v5586_v41 = vmul.f32 %v5578_v55, %v5578_v55  ;;  %v5587_v30 = vmul.f32 %v5579_v29, %v5579_v29  ;;  %5595 = vadd.xlane.f32.xlu1 %v5594_v9 }
 0x7db   : > { %v5597_v0 = vadd.f32 %v5587_v30, %v5586_v41 }
 0x7dc   : > { %v5632_v46 = vpop.permute.xlu0 %5631  ;;  %v5642_v5 = vpop.permute.xlu1 %5641 }
 0x7dd   : > { %5598 = vadd.xlane.f32.xlu0 %v5597_v0 }
 0x7e0   : > { %v5659_v7 = vpop.permute.xlu0 %5658  ;;  %v5664_v10 = vpop.permute.xlu1 %5663 }
 0x7ea   : > { %5673 = vperm.xlu1 %6342, %v5655_v45  }
 0x7f3   : > { %5668 = vperm.xlu0 %6341, %v5654_v60  }
 0x852   : > { %v5593_v1 = vpop.xlane.xlu0 %5592 }
 0x853   : > { %v5601_v47 = vmul.f32 0.00390625, %v5593_v1 }
 0x855   : > { %v5605_v2 = vadd.f32 1e-05, %v5601_v47 }
 0x857   : > { %6385 = vrsqrt.f32 %v5605_v2 }
 0x85a   : > { %v5590_v40 = vpop.xlane.xlu1 %5589 }
 0x85b   : > { %v5600_v23 = vmul.f32 0.00390625, %v5590_v40 }
 0x85d   : > { %v5604_v32 = vadd.f32 1e-05, %v5600_v23 }
 0x85f   : > { %6387 = vrsqrt.f32 %v5604_v32 }
 0x861   : > { %v6386_v13 = vpop.eup %6385 }
 0x862   : > { %v5614_v19 = vmul.f32 %v6386_v13, %v5574_v15  ;;  %v5615_v3 = vmul.f32 %v6386_v13, %v5575_v37 }
 0x864   : > { %v5646_v27 = vmul.f32 %v5632_v46, %v5614_v19  ;;  %v5647_v51 = vmul.f32 %v5632_v46, %v5615_v3 }
 0x866   : > { %v5678_v43 = vadd.f32 %v5664_v10, %v5646_v27  ;;  %v5679_v35 = vadd.f32 %v5664_v10, %v5647_v51  ;;  %v5596_v57 = vpop.xlane.xlu1 %5595 }
 0x867   : > { %v5602_v48 = vmul.f32 0.00390625, %v5596_v57 }
 0x868   : > { %5686 = vst [vmem:[%s7836_s18 + $0x10] sm:$0xff] %v5678_v43  ;;  %5687 = vst [vmem:[%s7836_s18 + $0x18] sm:$0xff] %v5679_v35 }
 0x869   : > { %v6388_v52 = vpop.eup %6387  ;;  %v5606_v59 = vadd.f32 1e-05, %v5602_v48 }
 0x86a   : > { %v5612_v36 = vmul.f32 %v6388_v52, %v5572_v56  ;;  %v5613_v21 = vmul.f32 %v6388_v52, %v5573_v20  ;;  %v5599_v54 = vpop.xlane.xlu0 %5598  ;;  %v5674_v61 = vpop.permute.xlu1 %5673 }
 0x86b   : > { %6389 = vrsqrt.f32 %v5606_v59  ;;  %v5603_v28 = vmul.f32 0.00390625, %v5599_v54 }
 0x86c   : > { %v5644_v53 = vmul.f32 %v5627_v63, %v5612_v36  ;;  %v5645_v44 = vmul.f32 %v5627_v63, %v5613_v21 }
 0x86d   : > { %v5607_v58 = vadd.f32 1e-05, %v5603_v28 }
 0x86e   : > { %v5676_v50 = vadd.f32 %v5659_v7, %v5644_v53  ;;  %v5677_v14 = vadd.f32 %v5659_v7, %v5645_v44 }
 0x86f   : > { %6391 = vrsqrt.f32 %v5607_v58 }
 0x870   : > { %5684 = vst [vmem:[%s7836_s18] sm:$0xff] %v5676_v50  ;;  %5685 = vst [vmem:[%s7836_s18 + $0x8] sm:$0xff] %v5677_v14 }
 0x872   : > { %v5669_v62 = vpop.permute.xlu0 %5668 }
 0x875   : > { %v6390_v25 = vpop.eup %6389 }
 0x876   : > { %v5616_v31 = vmul.f32 %v6390_v25, %v5576_v18  ;;  %v5617_v26 = vmul.f32 %v6390_v25, %v5577_v17 }
 0x878   : > { %v5648_v16 = vmul.f32 %v5637_v8, %v5616_v31  ;;  %v5649_v15 = vmul.f32 %v5637_v8, %v5617_v26 }
 0x879   : > { %v6392_v37 = vpop.eup %6391 }
 0x87a   : > { %v5618_v24 = vmul.f32 %v6392_v37, %v5578_v55  ;;  %v5619_v42 = vmul.f32 %v6392_v37, %v5579_v29  ;;  %v5680_v39 = vadd.f32 %v5669_v62, %v5648_v16  ;;  %v5681_v34 = vadd.f32 %v5669_v62, %v5649_v15 }
 0x87c   : > { %v5650_v56 = vmul.f32 %v5642_v5, %v5618_v24  ;;  %v5651_v20 = vmul.f32 %v5642_v5, %v5619_v42  ;;  %5688 = vst [vmem:[%s7836_s18 + $0x20] sm:$0xff] %v5680_v39  ;;  %5689 = vst [vmem:[%s7836_s18 + $0x28] sm:$0xff] %v5681_v34 }
 0x87e   : > { %v5682_v33 = vadd.f32 %v5674_v61, %v5650_v56  ;;  %v5683_v22 = vadd.f32 %v5674_v61, %v5651_v20 }
 0x880   : > { %5690 = vst [vmem:[%s7836_s18 + $0x30] sm:$0xff] %v5682_v33  ;;  %5691 = vst [vmem:[%s7836_s18 + $0x38] sm:$0xff] %v5683_v22 }
 0x881   : > { %6438 = shalt.err (!%p6435_p2)
}
 0x882   : > { %s6439_s11 = scalar_lea.hbm %s7849_s12, 1024  ;;  %s6443_s30 = scalar_lea.hbm %s7908_s10, 2048 }
 0x883   : > { %p6440_p4 = scmp.ne.s32.totalorder %s7849_s12, %s6439_s11  ;;  %p6444_p9 = scmp.lt.u32.totalorder %s7849_s12, %s7908_s10 }
 0x884   : > { %p6445_p1 = scmp.lt.u32.totalorder %s6443_s30, %s6439_s11  ;;  %p6447_p6 = scmp.lt.u32.totalorder %s6439_s11, %s7849_s12 }
 0x885   : > { %p6441_p5 = pnand %p6440_p4, %p7944_p11 }
 0x886   : > { %p6446_p3 = por %p6445_p1, %p6444_p9 }
 0x887   : > { %p6442_p7 = pneg %p6441_p5 }
 0x888   : > { %p6448_p12 = por %p6447_p6, %p6446_p3 }
 0x88a   : > { %p6449_p13 = pnand %p6448_p12, %p6442_p7 }
 0x88c   : > { %6452 = shalt.err (!%p6449_p13)
}
 0x88d   : > { %s6541_s28 = smov 256  }
 0x88e   : > { %6250 = dma.vmem_to_hbm [thread:$0]  (%p7944_p11), %s7851_s22, 1024, %s7849_s12, %s5693_s17, %s6541_s28, %s6541_s28, %s6501_s20  }
 0x88f PF: > { %s5721_s15 = sand.u32 1, %s6479_s13   ;;  %p7945_p8 = scmp.ne.s32.totalorder %s7932_s25, 0 }
 0x890   : > { %p7946_p10 = scmp.ge.s32.totalorder %s6491_s16, 2  ;;  %s5722_s26 = scalar_lea.sflag [#allocation4], %s5721_s15 }
 0x892   : > { %p6257_p0 = pnand %p7946_p10, %p7945_p8 }
 0x894   : > { %6474 = dma.done.wait (!%p6257_p0), %s5722_s26, 1024  }
 0x895   : > { %6476 = vsyncadd (!%p6257_p0), %s5722_s26, 4294966272  ;;  %s7947_s16 = sld [smem:[#allocation9_spill]]  ;;  %s7948_s24 = sld [smem:[#allocation8_spill]] }
 0x896   : > { %s7949_s15 = sld [smem:[#allocation10_spill]]  ;;  %s7950_s13 = smov %s6483_s14 }
 0x89b   : > { %p23_p2 = scmp.ge.s32.totalorder %s7947_s16, 4   ;;  %s7951_s14 = smov %s7948_s24 }
 0x89d   :  { %25 = sbr.rel (!%p23_p2) target bundleno = 5 (0x5), region = 107 }
 0x8a4   :  { %5727 = vsyncpa [#allocation3], 1 }
 0x8a5   :  { %5729 = vsyncpa [#allocation3 + $0x1], 1 }
 0x8a6   :  { %5730 = vsyncpa [#allocation4], 1 }
 0x8a7   :  { %5732 = vsyncpa [#allocation4 + $0x1], 1 }

</bundles_post_ra>
